<compile_context>
chip_gen: v7x
topology: tpu7x:2x2x1
jax: 0.10.0
libtpu: 0.0.40
codegen_flags: <defaults>
</compile_context>

<pallas_src>
import functools
import math

import jax
import jax.numpy as jnp
import numpy as np
from jax.experimental import pallas as pl
from jax.experimental.pallas import tpu as pltpu


# ---------------------------------------------------------------------------
# Kernel
# ---------------------------------------------------------------------------
def _attn_kernel(q_ref, k_ref, v_ref,
                 wq_ref, bq_ref, wk_ref, bk_ref, wv_ref, bv_ref,
                 wo_ref, bo_ref,
                 o_ref, *, n_heads: int, g_block: int, seq_q: int, seq_kv: int,
                 d_model: int, approx_recip: bool):
    """One grid step: G (b,v) slices — projections, per-head attention, output projection."""
    G, L, S, D, H = g_block, seq_q, seq_kv, d_model, n_heads
    E = D // H
    cdt = q_ref.dtype                      # MXU operand dtype (bf16 by default, or f32)

    # Works for both the lane-dense (G, L*D) and the 3-D (G, L, D) block layouts.
    q2 = q_ref[...].reshape(G * L, D)
    k2 = k_ref[...].reshape(G * S, D)
    v2 = v_ref[...].reshape(G * S, D)

    # ---- Projections: one large (rows, D) @ (D, D) matmul each, f32 accumulation ----
    # 1/sqrt(E) is already folded into wq/bq by the wrapper. Cast to the compute dtype
    # once, right after the bias add (no f32 copies stay live across the head loop).
    qp = (jnp.dot(q2, wq_ref[...], preferred_element_type=jnp.float32)
          + bq_ref[...]).astype(cdt).reshape(G, L, D)
    kp = (jnp.dot(k2, wk_ref[...], preferred_element_type=jnp.float32)
          + bk_ref[...]).astype(cdt).reshape(G, S, D)
    vp = (jnp.dot(v2, wv_ref[...], preferred_element_type=jnp.float32)
          + bv_ref[...]).astype(cdt).reshape(G, S, D)

    # ---- Per-head attention (scores / softmax / PV contract over E by construction),
    #      batched over the G (b,v) slices. H is static and small. ----
    head_outs = []
    for h in range(H):
        sl = slice(h * E, (h + 1) * E)
        s = jnp.einsum('gle,gse->gls', qp[:, :, sl], kp[:, :, sl],
                       preferred_element_type=jnp.float32)          # (G, L, S) f32
        s = s - jnp.max(s, axis=-1, keepdims=True)
        p = jnp.exp(s)
        denom = jnp.sum(p, axis=-1, keepdims=True)
        if approx_recip:
            p = p * pl.reciprocal(denom, approx=True)                # EUP slot, ~free
        else:
            p = p / denom
        head_outs.append(jnp.einsum('gls,gse->gle', p.astype(cdt), vp[:, :, sl],
                                    preferred_element_type=jnp.float32))  # (G, L, E) f32

    # ---- Single K=D output projection over the concatenated head outputs ----
    attn = jnp.concatenate(head_outs, axis=-1).reshape(G * L, D).astype(cdt)
    out = jnp.dot(attn, wo_ref[...], preferred_element_type=jnp.float32) + bo_ref[...]
    o_ref[...] = out.reshape(o_ref.shape).astype(o_ref.dtype)


# ---------------------------------------------------------------------------
# Chip / VMEM budget helpers
# ---------------------------------------------------------------------------
@functools.lru_cache(maxsize=None)
def _tpu_budget():
    """Best-effort (vmem_limit_bytes, min_grid_steps) for the attached TPU generation."""
    kind = ""
    try:
        kind = jax.devices()[0].device_kind.lower()
    except Exception:
        pass
    # Single-TensorCore chips: v5e / v6e (Trillium). Everything else (v4/v5p/v7x/unknown)
    # is treated as multi-TC so the parallel grid axis keeps >= 2 steps.
    single_tc = any(t in kind for t in
                    ("v5e", "v5 lite", "v5lite", "v6e", "v6 lite", "v6lite", "trillium"))
    vmem_physical = None
    try:
        info = pltpu.get_tpu_info()
        vmem_physical = getattr(info, "vmem_capacity_bytes", None)
    except Exception:
        vmem_physical = None
    if not vmem_physical:
        vmem_physical = (128 << 20) if single_tc else (64 << 20)   # conservative default
    vmem_limit = min(int(vmem_physical) * 3 // 4, 96 << 20)
    min_grid_steps = 1 if single_tc else 2
    return vmem_limit, min_grid_steps


def _lane_pad(n):  # last dim pads to a multiple of 128 lanes in VMEM
    return -(-n // 128) * 128


def _sub_pad(n):   # second-to-last dim pads to a multiple of 8 sublanes
    return -(-n // 8) * 8


def _block_vmem_bytes(G, L, S, D, in_sz, out_sz, weight_buffers):
    """Rough VMEM bytes for one grid step (double-buffered I/O + weights + live temps)."""
    f32 = 4
    Dp, Sp = _lane_pad(D), _lane_pad(S)
    io = 2 * (G * _sub_pad(L) * Dp * in_sz            # q block
              + 2 * G * _sub_pad(S) * Dp * in_sz      # k, v blocks
              + G * _sub_pad(L) * Dp * out_sz)        # output block
    wts = weight_buffers * (4 * D * Dp * in_sz + 4 * _sub_pad(1) * Dp * f32)
    inter = (G * (_sub_pad(L) + 2 * _sub_pad(S)) * Dp * in_sz   # projected q/k/v (cdt)
             + 2 * G * _sub_pad(L) * Sp * f32                   # one head's scores + probs
             + 2 * G * _sub_pad(L) * Dp * f32)                  # head outputs + f32 result
    return io + wts + inter


def _pick_bv_block(bv, L, S, D, in_sz, out_sz, weight_buffers, vmem_budget, min_grid_steps):
    """Largest divisor of B*V fitting the VMEM budget, keeping >= min_grid_steps steps."""
    best = 1
    for g in range(1, bv + 1):
        if bv % g:
            continue
        if min_grid_steps > 1 and bv >= min_grid_steps and bv // g < min_grid_steps:
            continue
        if g > 1 and _block_vmem_bytes(g, L, S, D, in_sz, out_sz, weight_buffers) > vmem_budget:
            continue
        best = max(best, g)
    return best


# ---------------------------------------------------------------------------
# pallas_call builder
# ---------------------------------------------------------------------------
def _build_call(*, BV, L, S, D, G, H, out_dtype, fold_lanes, single_buffer_weights,
                vmem_limit_bytes, cost, approx_recip):
    grid = (BV // G,)
    # Constant-index weight/bias blocks: single-buffer them (multi-buffering buys nothing
    # since they are never re-fetched, and it halves their VMEM footprint).
    w_kwargs = dict(pipeline_mode=pl.Buffered(1)) if single_buffer_weights else {}
    w_spec = pl.BlockSpec((D, D), lambda i: (0, 0), **w_kwargs)
    b_spec = pl.BlockSpec((1, D), lambda i: (0, 0), **w_kwargs)

    if fold_lanes:
        # Lane-dense layout: minor dim L*D / S*D (multiple of 128) instead of D (< 128).
        q_spec = pl.BlockSpec((G, L * D), lambda i: (i, 0))
        k_spec = pl.BlockSpec((G, S * D), lambda i: (i, 0))
        out_spec = pl.BlockSpec((G, L * D), lambda i: (i, 0))
        out_shape = jax.ShapeDtypeStruct((BV, L * D), out_dtype)
    else:
        q_spec = pl.BlockSpec((G, L, D), lambda i: (i, 0, 0))
        k_spec = pl.BlockSpec((G, S, D), lambda i: (i, 0, 0))
        out_spec = pl.BlockSpec((G, L, D), lambda i: (i, 0, 0))
        out_shape = jax.ShapeDtypeStruct((BV, L, D), out_dtype)

    kernel = functools.partial(_attn_kernel, n_heads=H, g_block=G, seq_q=L, seq_kv=S,
                               d_model=D, approx_recip=approx_recip)

    return pl.pallas_call(
        kernel,
        out_shape=out_shape,
        grid_spec=pltpu.PrefetchScalarGridSpec(
            num_scalar_prefetch=0,
            grid=grid,
            in_specs=[q_spec, k_spec, k_spec,
                      w_spec, b_spec, w_spec, b_spec, w_spec, b_spec,
                      w_spec, b_spec],
            out_specs=out_spec,
        ),
        compiler_params=pltpu.CompilerParams(
            dimension_semantics=("parallel",),
            vmem_limit_bytes=int(vmem_limit_bytes)),
        cost_estimate=cost,
    )


# ---------------------------------------------------------------------------
# Public wrapper
# ---------------------------------------------------------------------------
def attention_layer_forward(queries, keys, values, params, n_heads,
                            *, compute_dtype=jnp.bfloat16, bv_block=None,
                            approx_softmax_recip=True):
    """Pallas-backed AttentionLayer.forward(flag='full').

    compute_dtype: dtype of MXU operands (bf16 default on all generations — the v5e MXU
    is bf16-native). Accumulation, biases and softmax stay float32.
    approx_softmax_recip: use the EUP approximate reciprocal (~1e-3 rel error) for the
    softmax denominator; set False for logit-sensitive / training reuse.
    """
    B, V, L, D = queries.shape
    S = keys.shape[2]
    assert D % n_heads == 0, "d_model must be divisible by n_heads"
    BV = B * V
    cdt = compute_dtype
    in_sz = jnp.dtype(cdt).itemsize
    out_sz = jnp.dtype(queries.dtype).itemsize

    vmem_limit, min_grid_steps = _tpu_budget()
    if bv_block is None:
        # Target <= ~half the scoped VMEM limit so double-buffering has headroom.
        G = _pick_bv_block(BV, L, S, D, in_sz, out_sz, weight_buffers=1,
                           vmem_budget=vmem_limit // 2, min_grid_steps=min_grid_steps)
    else:
        G = bv_block
    assert BV % G == 0, "bv_block must divide B*V"

    # nn.Linear stores W as (out, in); pre-transpose to (in, out) so kernel does x @ W + b.
    # 1/sqrt(E) is constant-folded into the query projection weights/bias.
    scale = 1.0 / math.sqrt(D // n_heads)
    wq = (params["wq"].T * scale).astype(cdt)
    wk = params["wk"].T.astype(cdt)
    wv = params["wv"].T.astype(cdt)
    wo = params["wo"].T.astype(cdt)
    bq = (params["bq"] * scale).reshape(1, D).astype(jnp.float32)
    bk = params["bk"].reshape(1, D).astype(jnp.float32)
    bv_ = params["bv"].reshape(1, D).astype(jnp.float32)
    bo = params["bo"].reshape(1, D).astype(jnp.float32)

    # Advisory cost hint for XLA scheduling around the custom call.
    flops = 2 * BV * (2 * L + 2 * S) * D * D + 4 * BV * L * S * D
    trans = BV * n_heads * L * S
    bytes_acc = ((BV * L * D + 2 * BV * S * D) * in_sz + BV * L * D * out_sz
                 + 4 * D * D * in_sz + 4 * D * 4)
    cost = pl.CostEstimate(flops=int(flops), transcendentals=int(trans),
                           bytes_accessed=int(bytes_acc))

    # Lane-dense folding is worth it only when D is lane-sparse and the folded minor dim
    # is a multiple of 128; keep the block's second-minor dim (G) tiling-legal.
    fold_ok = (D % 128 != 0 and (L * D) % 128 == 0 and (S * D) % 128 == 0
               and (G == BV or G % 8 == 0))

    configs = []
    for fold in ((True, False) if fold_ok else (False,)):
        for single_buf_w in (True, False):
            configs.append((fold, single_buf_w))

    errs = []
    out = None
    for fold, single_buf_w in configs:
        if fold:
            qf = queries.reshape(BV, L * D).astype(cdt)
            kf = keys.reshape(BV, S * D).astype(cdt)
            vf = values.reshape(BV, S * D).astype(cdt)
        else:
            qf = queries.reshape(BV, L, D).astype(cdt)
            kf = keys.reshape(BV, S, D).astype(cdt)
            vf = values.reshape(BV, S, D).astype(cdt)
        try:
            call = _build_call(BV=BV, L=L, S=S, D=D, G=G, H=n_heads,
                               out_dtype=queries.dtype, fold_lanes=fold,
                               single_buffer_weights=single_buf_w,
                               vmem_limit_bytes=vmem_limit, cost=cost,
                               approx_recip=approx_softmax_recip)
            out = jax.block_until_ready(
                call(qf, kf, vf, wq, bq, wk, bk, wv, bv_, wo, bo))
            break
        except Exception as e:
            # Graceful degrade if pl.Buffered(1) / the lane-folded reshape does not lower
            # on this jax version: fall back to the known-good 3-D double-buffered layout.
            errs.append(e)
            out = None
    if out is None:
        raise errs[-1]

    return out.reshape(B, V, L, D)


# ---------------------------------------------------------------------------
# Pure-JAX reference & param init
# ---------------------------------------------------------------------------
def attention_layer_reference(queries, keys, values, params, n_heads):
    """Pure-JAX reference mirroring the PyTorch module (flag='full', eval-mode dropout)."""
    B, V, L, D = queries.shape
    S = keys.shape[2]
    H = n_heads
    E = D // H

    def lin(x, w, b):
        return jnp.einsum("...i,oi->...o", x, w) + b

    q = lin(queries, params["wq"], params["bq"]).reshape(B, V, L, H, E)
    k = lin(keys, params["wk"], params["bk"]).reshape(B, V, S, H, E)
    v = lin(values, params["wv"], params["bv"]).reshape(B, V, S, H, E)

    scale = 1.0 / math.sqrt(E)
    scores = jnp.einsum("bvlhe,bvshe->bvhls", q, k)
    A = jax.nn.softmax(scale * scores, axis=-1)
    out = jnp.einsum("bvhls,bvshd->bvlhd", A, v).reshape(B, V, L, D)
    return lin(out, params["wo"], params["bo"])


def init_params(key, d_model):
    ks = jax.random.split(key, 8)
    scale = 1.0 / math.sqrt(d_model)
    return {
        "wq": jax.random.uniform(ks[0], (d_model, d_model), jnp.float32, -scale, scale),
        "bq": jax.random.uniform(ks[1], (d_model,), jnp.float32, -scale, scale),
        "wk": jax.random.uniform(ks[2], (d_model, d_model), jnp.float32, -scale, scale),
        "bk": jax.random.uniform(ks[3], (d_model,), jnp.float32, -scale, scale),
        "wv": jax.random.uniform(ks[4], (d_model, d_model), jnp.float32, -scale, scale),
        "bv": jax.random.uniform(ks[5], (d_model,), jnp.float32, -scale, scale),
        "wo": jax.random.uniform(ks[6], (d_model, d_model), jnp.float32, -scale, scale),
        "bo": jax.random.uniform(ks[7], (d_model,), jnp.float32, -scale, scale),
    }


if __name__ == "__main__":
    B, V, L, S = 2, 2, 8, 8
    d_model, n_heads = 32, 4

    key = jax.random.PRNGKey(0)
    kq, kk, kv, kp = jax.random.split(key, 4)
    queries = jax.random.normal(kq, (B, V, L, d_model), jnp.float32)
    keys = jax.random.normal(kk, (B, V, S, d_model), jnp.float32)
    values = jax.random.normal(kv, (B, V, S, d_model), jnp.float32)
    params = init_params(kp, d_model)

    ref = attention_layer_reference(queries, keys, values, params, n_heads)

    # Default: bf16 MXU operands on all generations, f32 accumulation + f32 softmax.
    out_bf16 = jax.block_until_ready(
        attention_layer_forward(queries, keys, values, params, n_heads))
    np.testing.assert_allclose(np.asarray(out_bf16), np.asarray(ref),
                               rtol=7.5e-2, atol=7.5e-2)

    # Full-f32 MXU operand path (tighter tolerance check).
    out_f32 = jax.block_until_ready(
        attention_layer_forward(queries, keys, values, params, n_heads,
                                compute_dtype=jnp.float32))
    np.testing.assert_allclose(np.asarray(out_f32), np.asarray(ref),
                               rtol=5e-3, atol=5e-3)

    print("KERNEL_OK")
</pallas_src>

<mosaic_0001>
module attributes {stable_mosaic.version = 11 : i64} {
  func.func @_attn_kernel(%arg0: i32, %arg1: memref<2x8x32xbf16, #tpu.memory_space<vmem>>, %arg2: memref<2x8x32xbf16, #tpu.memory_space<vmem>>, %arg3: memref<2x8x32xbf16, #tpu.memory_space<vmem>>, %arg4: memref<32x32xbf16, #tpu.memory_space<vmem>>, %arg5: memref<1x32xf32, #tpu.memory_space<vmem>>, %arg6: memref<32x32xbf16, #tpu.memory_space<vmem>>, %arg7: memref<1x32xf32, #tpu.memory_space<vmem>>, %arg8: memref<32x32xbf16, #tpu.memory_space<vmem>>, %arg9: memref<1x32xf32, #tpu.memory_space<vmem>>, %arg10: memref<32x32xbf16, #tpu.memory_space<vmem>>, %arg11: memref<1x32xf32, #tpu.memory_space<vmem>>, %arg12: memref<2x8x32xf32, #tpu.memory_space<vmem>>) attributes {dimension_semantics = [#tpu.dimension_semantics<parallel>], iteration_bounds = array<i64: 2>, scalar_prefetch = 0 : i64, scratch_operands = 0 : i64, tpu.core_type = #tpu.core_type<tc>, window_params = [{transform_indices = @transform_0, window_bounds = array<i64: 2, 8, 32>}, {transform_indices = @transform_1, window_bounds = array<i64: 2, 8, 32>}, {transform_indices = @transform_2, window_bounds = array<i64: 2, 8, 32>}, {pipeline_mode = #tpu.pipeline_mode<synchronous>, transform_indices = @transform_3, window_bounds = array<i64: 32, 32>}, {pipeline_mode = #tpu.pipeline_mode<synchronous>, transform_indices = @transform_4, window_bounds = array<i64: 1, 32>}, {pipeline_mode = #tpu.pipeline_mode<synchronous>, transform_indices = @transform_5, window_bounds = array<i64: 32, 32>}, {pipeline_mode = #tpu.pipeline_mode<synchronous>, transform_indices = @transform_6, window_bounds = array<i64: 1, 32>}, {pipeline_mode = #tpu.pipeline_mode<synchronous>, transform_indices = @transform_7, window_bounds = array<i64: 32, 32>}, {pipeline_mode = #tpu.pipeline_mode<synchronous>, transform_indices = @transform_8, window_bounds = array<i64: 1, 32>}, {pipeline_mode = #tpu.pipeline_mode<synchronous>, transform_indices = @transform_9, window_bounds = array<i64: 32, 32>}, {pipeline_mode = #tpu.pipeline_mode<synchronous>, transform_indices = @transform_10, window_bounds = array<i64: 1, 32>}, {transform_indices = @transform_11, window_bounds = array<i64: 2, 8, 32>}]} {
    %c0 = arith.constant 0 : index
    %c0_0 = arith.constant 0 : index
    %c0_1 = arith.constant 0 : index
    %0 = vector.load %arg1[%c0, %c0_0, %c0_1] : memref<2x8x32xbf16, #tpu.memory_space<vmem>>, vector<2x8x32xbf16>
    %1 = vector.shape_cast %0 : vector<2x8x32xbf16> to vector<16x32xbf16>
    %c0_2 = arith.constant 0 : index
    %c0_3 = arith.constant 0 : index
    %c0_4 = arith.constant 0 : index
    %2 = vector.load %arg2[%c0_2, %c0_3, %c0_4] : memref<2x8x32xbf16, #tpu.memory_space<vmem>>, vector<2x8x32xbf16>
    %3 = vector.shape_cast %2 : vector<2x8x32xbf16> to vector<16x32xbf16>
    %c0_5 = arith.constant 0 : index
    %c0_6 = arith.constant 0 : index
    %c0_7 = arith.constant 0 : index
    %4 = vector.load %arg3[%c0_5, %c0_6, %c0_7] : memref<2x8x32xbf16, #tpu.memory_space<vmem>>, vector<2x8x32xbf16>
    %5 = vector.shape_cast %4 : vector<2x8x32xbf16> to vector<16x32xbf16>
    %c0_8 = arith.constant 0 : index
    %c0_9 = arith.constant 0 : index
    %6 = vector.load %arg4[%c0_8, %c0_9] : memref<32x32xbf16, #tpu.memory_space<vmem>>, vector<32x32xbf16>
    %cst = arith.constant dense<0.000000e+00> : vector<16x32xf32>
    %7 = tpu.matmul %1, %6, %cst {dimension_numbers = #tpu.dot_dimension_numbers<[1], [0], [0], [1], [0, 0, 1, 1], [], []>} : vector<16x32xbf16>, vector<32x32xbf16>, vector<16x32xf32> -> vector<16x32xf32>
    %c0_10 = arith.constant 0 : index
    %c0_11 = arith.constant 0 : index
    %8 = vector.load %arg5[%c0_10, %c0_11] : memref<1x32xf32, #tpu.memory_space<vmem>>, vector<1x32xf32>
    %9 = vector.broadcast %8 : vector<1x32xf32> to vector<16x32xf32>
    %10 = arith.addf %7, %9 : vector<16x32xf32>
    %11 = arith.truncf %10 : vector<16x32xf32> to vector<16x32xbf16>
    %12 = vector.shape_cast %11 : vector<16x32xbf16> to vector<2x8x32xbf16>
    %c0_12 = arith.constant 0 : index
    %c0_13 = arith.constant 0 : index
    %13 = vector.load %arg6[%c0_12, %c0_13] : memref<32x32xbf16, #tpu.memory_space<vmem>>, vector<32x32xbf16>
    %cst_14 = arith.constant dense<0.000000e+00> : vector<16x32xf32>
    %14 = tpu.matmul %3, %13, %cst_14 {dimension_numbers = #tpu.dot_dimension_numbers<[1], [0], [0], [1], [0, 0, 1, 1], [], []>} : vector<16x32xbf16>, vector<32x32xbf16>, vector<16x32xf32> -> vector<16x32xf32>
    %c0_15 = arith.constant 0 : index
    %c0_16 = arith.constant 0 : index
    %15 = vector.load %arg7[%c0_15, %c0_16] : memref<1x32xf32, #tpu.memory_space<vmem>>, vector<1x32xf32>
    %16 = vector.broadcast %15 : vector<1x32xf32> to vector<16x32xf32>
    %17 = arith.addf %14, %16 : vector<16x32xf32>
    %18 = arith.truncf %17 : vector<16x32xf32> to vector<16x32xbf16>
    %19 = vector.shape_cast %18 : vector<16x32xbf16> to vector<2x8x32xbf16>
    %c0_17 = arith.constant 0 : index
    %c0_18 = arith.constant 0 : index
    %20 = vector.load %arg8[%c0_17, %c0_18] : memref<32x32xbf16, #tpu.memory_space<vmem>>, vector<32x32xbf16>
    %cst_19 = arith.constant dense<0.000000e+00> : vector<16x32xf32>
    %21 = tpu.matmul %5, %20, %cst_19 {dimension_numbers = #tpu.dot_dimension_numbers<[1], [0], [0], [1], [0, 0, 1, 1], [], []>} : vector<16x32xbf16>, vector<32x32xbf16>, vector<16x32xf32> -> vector<16x32xf32>
    %c0_20 = arith.constant 0 : index
    %c0_21 = arith.constant 0 : index
    %22 = vector.load %arg9[%c0_20, %c0_21] : memref<1x32xf32, #tpu.memory_space<vmem>>, vector<1x32xf32>
    %23 = vector.broadcast %22 : vector<1x32xf32> to vector<16x32xf32>
    %24 = arith.addf %21, %23 : vector<16x32xf32>
    %25 = arith.truncf %24 : vector<16x32xf32> to vector<16x32xbf16>
    %26 = vector.shape_cast %25 : vector<16x32xbf16> to vector<2x8x32xbf16>
    %27 = vector.extract_strided_slice %12 {offsets = [0, 0, 0], sizes = [2, 8, 8], strides = [1, 1, 1]} : vector<2x8x32xbf16> to vector<2x8x8xbf16>
    %28 = vector.extract_strided_slice %19 {offsets = [0, 0, 0], sizes = [2, 8, 8], strides = [1, 1, 1]} : vector<2x8x32xbf16> to vector<2x8x8xbf16>
    "tpu.trace_start"() <{level = 10 : i32, message = "gle,gse->gls"}> : () -> ()
    %cst_22 = arith.constant dense<0.000000e+00> : vector<2x8x8xf32>
    %29 = tpu.matmul %27, %28, %cst_22 {dimension_numbers = #tpu.dot_dimension_numbers<[2], [2], [1], [1], [0, 0, 0, 1, 1, 1], [0], [0]>} : vector<2x8x8xbf16>, vector<2x8x8xbf16>, vector<2x8x8xf32> -> vector<2x8x8xf32>
    "tpu.trace_stop"() : () -> ()
    %cst_23 = arith.constant dense<0xFF800000> : vector<2x8xf32>
    %30 = vector.multi_reduction <maximumf>, %29, %cst_23 [2] : vector<2x8x8xf32> to vector<2x8xf32>
    %31 = vector.shape_cast %30 : vector<2x8xf32> to vector<2x8x1xf32>
    %32 = vector.broadcast %31 : vector<2x8x1xf32> to vector<2x8x8xf32>
    %33 = arith.subf %29, %32 : vector<2x8x8xf32>
    %34 = math.exp %33 : vector<2x8x8xf32>
    %cst_24 = arith.constant dense<0.000000e+00> : vector<2x8xf32>
    %35 = vector.multi_reduction <add>, %34, %cst_24 [2] : vector<2x8x8xf32> to vector<2x8xf32>
    %36 = vector.shape_cast %35 : vector<2x8xf32> to vector<2x8x1xf32>
    %37 = tpu.reciprocal %36 {approx = true} : vector<2x8x1xf32> -> vector<2x8x1xf32>
    %38 = vector.broadcast %37 : vector<2x8x1xf32> to vector<2x8x8xf32>
    %39 = arith.mulf %34, %38 : vector<2x8x8xf32>
    %40 = arith.truncf %39 : vector<2x8x8xf32> to vector<2x8x8xbf16>
    %41 = vector.extract_strided_slice %26 {offsets = [0, 0, 0], sizes = [2, 8, 8], strides = [1, 1, 1]} : vector<2x8x32xbf16> to vector<2x8x8xbf16>
    "tpu.trace_start"() <{level = 10 : i32, message = "gls,gse->gle"}> : () -> ()
    %cst_25 = arith.constant dense<0.000000e+00> : vector<2x8x8xf32>
    %42 = tpu.matmul %40, %41, %cst_25 {dimension_numbers = #tpu.dot_dimension_numbers<[2], [1], [1], [2], [0, 0, 0, 1, 1, 2], [0], [0]>} : vector<2x8x8xbf16>, vector<2x8x8xbf16>, vector<2x8x8xf32> -> vector<2x8x8xf32>
    "tpu.trace_stop"() : () -> ()
    %43 = vector.extract_strided_slice %12 {offsets = [0, 0, 8], sizes = [2, 8, 8], strides = [1, 1, 1]} : vector<2x8x32xbf16> to vector<2x8x8xbf16>
    %44 = vector.extract_strided_slice %19 {offsets = [0, 0, 8], sizes = [2, 8, 8], strides = [1, 1, 1]} : vector<2x8x32xbf16> to vector<2x8x8xbf16>
    "tpu.trace_start"() <{level = 10 : i32, message = "gle,gse->gls"}> : () -> ()
    %cst_26 = arith.constant dense<0.000000e+00> : vector<2x8x8xf32>
    %45 = tpu.matmul %43, %44, %cst_26 {dimension_numbers = #tpu.dot_dimension_numbers<[2], [2], [1], [1], [0, 0, 0, 1, 1, 1], [0], [0]>} : vector<2x8x8xbf16>, vector<2x8x8xbf16>, vector<2x8x8xf32> -> vector<2x8x8xf32>
    "tpu.trace_stop"() : () -> ()
    %cst_27 = arith.constant dense<0xFF800000> : vector<2x8xf32>
    %46 = vector.multi_reduction <maximumf>, %45, %cst_27 [2] : vector<2x8x8xf32> to vector<2x8xf32>
    %47 = vector.shape_cast %46 : vector<2x8xf32> to vector<2x8x1xf32>
    %48 = vector.broadcast %47 : vector<2x8x1xf32> to vector<2x8x8xf32>
    %49 = arith.subf %45, %48 : vector<2x8x8xf32>
    %50 = math.exp %49 : vector<2x8x8xf32>
    %cst_28 = arith.constant dense<0.000000e+00> : vector<2x8xf32>
    %51 = vector.multi_reduction <add>, %50, %cst_28 [2] : vector<2x8x8xf32> to vector<2x8xf32>
    %52 = vector.shape_cast %51 : vector<2x8xf32> to vector<2x8x1xf32>
    %53 = tpu.reciprocal %52 {approx = true} : vector<2x8x1xf32> -> vector<2x8x1xf32>
    %54 = vector.broadcast %53 : vector<2x8x1xf32> to vector<2x8x8xf32>
    %55 = arith.mulf %50, %54 : vector<2x8x8xf32>
    %56 = arith.truncf %55 : vector<2x8x8xf32> to vector<2x8x8xbf16>
    %57 = vector.extract_strided_slice %26 {offsets = [0, 0, 8], sizes = [2, 8, 8], strides = [1, 1, 1]} : vector<2x8x32xbf16> to vector<2x8x8xbf16>
    "tpu.trace_start"() <{level = 10 : i32, message = "gls,gse->gle"}> : () -> ()
    %cst_29 = arith.constant dense<0.000000e+00> : vector<2x8x8xf32>
    %58 = tpu.matmul %56, %57, %cst_29 {dimension_numbers = #tpu.dot_dimension_numbers<[2], [1], [1], [2], [0, 0, 0, 1, 1, 2], [0], [0]>} : vector<2x8x8xbf16>, vector<2x8x8xbf16>, vector<2x8x8xf32> -> vector<2x8x8xf32>
    "tpu.trace_stop"() : () -> ()
    %59 = vector.extract_strided_slice %12 {offsets = [0, 0, 16], sizes = [2, 8, 8], strides = [1, 1, 1]} : vector<2x8x32xbf16> to vector<2x8x8xbf16>
    %60 = vector.extract_strided_slice %19 {offsets = [0, 0, 16], sizes = [2, 8, 8], strides = [1, 1, 1]} : vector<2x8x32xbf16> to vector<2x8x8xbf16>
    "tpu.trace_start"() <{level = 10 : i32, message = "gle,gse->gls"}> : () -> ()
    %cst_30 = arith.constant dense<0.000000e+00> : vector<2x8x8xf32>
    %61 = tpu.matmul %59, %60, %cst_30 {dimension_numbers = #tpu.dot_dimension_numbers<[2], [2], [1], [1], [0, 0, 0, 1, 1, 1], [0], [0]>} : vector<2x8x8xbf16>, vector<2x8x8xbf16>, vector<2x8x8xf32> -> vector<2x8x8xf32>
    "tpu.trace_stop"() : () -> ()
    %cst_31 = arith.constant dense<0xFF800000> : vector<2x8xf32>
    %62 = vector.multi_reduction <maximumf>, %61, %cst_31 [2] : vector<2x8x8xf32> to vector<2x8xf32>
    %63 = vector.shape_cast %62 : vector<2x8xf32> to vector<2x8x1xf32>
    %64 = vector.broadcast %63 : vector<2x8x1xf32> to vector<2x8x8xf32>
    %65 = arith.subf %61, %64 : vector<2x8x8xf32>
    %66 = math.exp %65 : vector<2x8x8xf32>
    %cst_32 = arith.constant dense<0.000000e+00> : vector<2x8xf32>
    %67 = vector.multi_reduction <add>, %66, %cst_32 [2] : vector<2x8x8xf32> to vector<2x8xf32>
    %68 = vector.shape_cast %67 : vector<2x8xf32> to vector<2x8x1xf32>
    %69 = tpu.reciprocal %68 {approx = true} : vector<2x8x1xf32> -> vector<2x8x1xf32>
    %70 = vector.broadcast %69 : vector<2x8x1xf32> to vector<2x8x8xf32>
    %71 = arith.mulf %66, %70 : vector<2x8x8xf32>
    %72 = arith.truncf %71 : vector<2x8x8xf32> to vector<2x8x8xbf16>
    %73 = vector.extract_strided_slice %26 {offsets = [0, 0, 16], sizes = [2, 8, 8], strides = [1, 1, 1]} : vector<2x8x32xbf16> to vector<2x8x8xbf16>
    "tpu.trace_start"() <{level = 10 : i32, message = "gls,gse->gle"}> : () -> ()
    %cst_33 = arith.constant dense<0.000000e+00> : vector<2x8x8xf32>
    %74 = tpu.matmul %72, %73, %cst_33 {dimension_numbers = #tpu.dot_dimension_numbers<[2], [1], [1], [2], [0, 0, 0, 1, 1, 2], [0], [0]>} : vector<2x8x8xbf16>, vector<2x8x8xbf16>, vector<2x8x8xf32> -> vector<2x8x8xf32>
    "tpu.trace_stop"() : () -> ()
    %75 = vector.extract_strided_slice %12 {offsets = [0, 0, 24], sizes = [2, 8, 8], strides = [1, 1, 1]} : vector<2x8x32xbf16> to vector<2x8x8xbf16>
    %76 = vector.extract_strided_slice %19 {offsets = [0, 0, 24], sizes = [2, 8, 8], strides = [1, 1, 1]} : vector<2x8x32xbf16> to vector<2x8x8xbf16>
    "tpu.trace_start"() <{level = 10 : i32, message = "gle,gse->gls"}> : () -> ()
    %cst_34 = arith.constant dense<0.000000e+00> : vector<2x8x8xf32>
    %77 = tpu.matmul %75, %76, %cst_34 {dimension_numbers = #tpu.dot_dimension_numbers<[2], [2], [1], [1], [0, 0, 0, 1, 1, 1], [0], [0]>} : vector<2x8x8xbf16>, vector<2x8x8xbf16>, vector<2x8x8xf32> -> vector<2x8x8xf32>
    "tpu.trace_stop"() : () -> ()
    %cst_35 = arith.constant dense<0xFF800000> : vector<2x8xf32>
    %78 = vector.multi_reduction <maximumf>, %77, %cst_35 [2] : vector<2x8x8xf32> to vector<2x8xf32>
    %79 = vector.shape_cast %78 : vector<2x8xf32> to vector<2x8x1xf32>
    %80 = vector.broadcast %79 : vector<2x8x1xf32> to vector<2x8x8xf32>
    %81 = arith.subf %77, %80 : vector<2x8x8xf32>
    %82 = math.exp %81 : vector<2x8x8xf32>
    %cst_36 = arith.constant dense<0.000000e+00> : vector<2x8xf32>
    %83 = vector.multi_reduction <add>, %82, %cst_36 [2] : vector<2x8x8xf32> to vector<2x8xf32>
    %84 = vector.shape_cast %83 : vector<2x8xf32> to vector<2x8x1xf32>
    %85 = tpu.reciprocal %84 {approx = true} : vector<2x8x1xf32> -> vector<2x8x1xf32>
    %86 = vector.broadcast %85 : vector<2x8x1xf32> to vector<2x8x8xf32>
    %87 = arith.mulf %82, %86 : vector<2x8x8xf32>
    %88 = arith.truncf %87 : vector<2x8x8xf32> to vector<2x8x8xbf16>
    %89 = vector.extract_strided_slice %26 {offsets = [0, 0, 24], sizes = [2, 8, 8], strides = [1, 1, 1]} : vector<2x8x32xbf16> to vector<2x8x8xbf16>
    "tpu.trace_start"() <{level = 10 : i32, message = "gls,gse->gle"}> : () -> ()
    %cst_37 = arith.constant dense<0.000000e+00> : vector<2x8x8xf32>
    %90 = tpu.matmul %88, %89, %cst_37 {dimension_numbers = #tpu.dot_dimension_numbers<[2], [1], [1], [2], [0, 0, 0, 1, 1, 2], [0], [0]>} : vector<2x8x8xbf16>, vector<2x8x8xbf16>, vector<2x8x8xf32> -> vector<2x8x8xf32>
    "tpu.trace_stop"() : () -> ()
    %91 = tpu.concatenate %42, %58, %74, %90 in 2 : vector<2x8x8xf32>, vector<2x8x8xf32>, vector<2x8x8xf32>, vector<2x8x8xf32> -> vector<2x8x32xf32>
    %92 = vector.shape_cast %91 : vector<2x8x32xf32> to vector<16x32xf32>
    %93 = arith.truncf %92 : vector<16x32xf32> to vector<16x32xbf16>
    %c0_38 = arith.constant 0 : index
    %c0_39 = arith.constant 0 : index
    %94 = vector.load %arg10[%c0_38, %c0_39] : memref<32x32xbf16, #tpu.memory_space<vmem>>, vector<32x32xbf16>
    %cst_40 = arith.constant dense<0.000000e+00> : vector<16x32xf32>
    %95 = tpu.matmul %93, %94, %cst_40 {dimension_numbers = #tpu.dot_dimension_numbers<[1], [0], [0], [1], [0, 0, 1, 1], [], []>} : vector<16x32xbf16>, vector<32x32xbf16>, vector<16x32xf32> -> vector<16x32xf32>
    %c0_41 = arith.constant 0 : index
    %c0_42 = arith.constant 0 : index
    %96 = vector.load %arg11[%c0_41, %c0_42] : memref<1x32xf32, #tpu.memory_space<vmem>>, vector<1x32xf32>
    %97 = vector.broadcast %96 : vector<1x32xf32> to vector<16x32xf32>
    %98 = arith.addf %95, %97 : vector<16x32xf32>
    %99 = vector.shape_cast %98 : vector<16x32xf32> to vector<2x8x32xf32>
    %c0_43 = arith.constant 0 : index
    %c0_44 = arith.constant 0 : index
    %c0_45 = arith.constant 0 : index
    %100 = vector.load %arg12[%c0_43, %c0_44, %c0_45] : memref<2x8x32xf32, #tpu.memory_space<vmem>>, vector<2x8x32xf32>
    tpu.vector_store %arg12[%c0_43, %c0_44, %c0_45], %99 {strides = array<i32>} : memref<2x8x32xf32, #tpu.memory_space<vmem>>, vector<2x8x32xf32>,
    return
  }
  func.func @transform_0(%arg0: i32) -> (i32, i32, i32) {
    %c0_i32 = arith.constant 0 : i32
    %c0_i32_0 = arith.constant 0 : i32
    %c0_i32_1 = arith.constant 0 : i32
    return %arg0, %c0_i32, %c0_i32_0 : i32, i32, i32
  }
  func.func @transform_1(%arg0: i32) -> (i32, i32, i32) {
    %c0_i32 = arith.constant 0 : i32
    %c0_i32_0 = arith.constant 0 : i32
    %c0_i32_1 = arith.constant 0 : i32
    return %arg0, %c0_i32, %c0_i32_0 : i32, i32, i32
  }
  func.func @transform_2(%arg0: i32) -> (i32, i32, i32) {
    %c0_i32 = arith.constant 0 : i32
    %c0_i32_0 = arith.constant 0 : i32
    %c0_i32_1 = arith.constant 0 : i32
    return %arg0, %c0_i32, %c0_i32_0 : i32, i32, i32
  }
  func.func @transform_3(%arg0: i32) -> (i32, i32) {
    %c0_i32 = arith.constant 0 : i32
    %c0_i32_0 = arith.constant 0 : i32
    %c0_i32_1 = arith.constant 0 : i32
    return %c0_i32, %c0_i32_0 : i32, i32
  }
  func.func @transform_4(%arg0: i32) -> (i32, i32) {
    %c0_i32 = arith.constant 0 : i32
    %c0_i32_0 = arith.constant 0 : i32
    %c0_i32_1 = arith.constant 0 : i32
    return %c0_i32, %c0_i32_0 : i32, i32
  }
  func.func @transform_5(%arg0: i32) -> (i32, i32) {
    %c0_i32 = arith.constant 0 : i32
    %c0_i32_0 = arith.constant 0 : i32
    %c0_i32_1 = arith.constant 0 : i32
    return %c0_i32, %c0_i32_0 : i32, i32
  }
  func.func @transform_6(%arg0: i32) -> (i32, i32) {
    %c0_i32 = arith.constant 0 : i32
    %c0_i32_0 = arith.constant 0 : i32
    %c0_i32_1 = arith.constant 0 : i32
    return %c0_i32, %c0_i32_0 : i32, i32
  }
  func.func @transform_7(%arg0: i32) -> (i32, i32) {
    %c0_i32 = arith.constant 0 : i32
    %c0_i32_0 = arith.constant 0 : i32
    %c0_i32_1 = arith.constant 0 : i32
    return %c0_i32, %c0_i32_0 : i32, i32
  }
  func.func @transform_8(%arg0: i32) -> (i32, i32) {
    %c0_i32 = arith.constant 0 : i32
    %c0_i32_0 = arith.constant 0 : i32
    %c0_i32_1 = arith.constant 0 : i32
    return %c0_i32, %c0_i32_0 : i32, i32
  }
  func.func @transform_9(%arg0: i32) -> (i32, i32) {
    %c0_i32 = arith.constant 0 : i32
    %c0_i32_0 = arith.constant 0 : i32
    %c0_i32_1 = arith.constant 0 : i32
    return %c0_i32, %c0_i32_0 : i32, i32
  }
  func.func @transform_10(%arg0: i32) -> (i32, i32) {
    %c0_i32 = arith.constant 0 : i32
    %c0_i32_0 = arith.constant 0 : i32
    %c0_i32_1 = arith.constant 0 : i32
    return %c0_i32, %c0_i32_0 : i32, i32
  }
  func.func @transform_11(%arg0: i32) -> (i32, i32, i32) {
    %c0_i32 = arith.constant 0 : i32
    %c0_i32_0 = arith.constant 0 : i32
    %c0_i32_1 = arith.constant 0 : i32
    return %arg0, %c0_i32, %c0_i32_0 : i32, i32, i32
  }
}

module attributes {stable_mosaic.version = 11 : i64} {
  func.func @_attn_kernel(%arg0: i32, %arg1: memref<2x8x32xbf16, #tpu.memory_space<vmem>>, %arg2: memref<2x8x32xbf16, #tpu.memory_space<vmem>>, %arg3: memref<2x8x32xbf16, #tpu.memory_space<vmem>>, %arg4: memref<32x32xbf16, #tpu.memory_space<vmem>>, %arg5: memref<1x32xf32, #tpu.memory_space<vmem>>, %arg6: memref<32x32xbf16, #tpu.memory_space<vmem>>, %arg7: memref<1x32xf32, #tpu.memory_space<vmem>>, %arg8: memref<32x32xbf16, #tpu.memory_space<vmem>>, %arg9: memref<1x32xf32, #tpu.memory_space<vmem>>, %arg10: memref<32x32xbf16, #tpu.memory_space<vmem>>, %arg11: memref<1x32xf32, #tpu.memory_space<vmem>>, %arg12: memref<2x8x32xf32, #tpu.memory_space<vmem>>) attributes {dimension_semantics = [#tpu.dimension_semantics<parallel>], iteration_bounds = array<i64: 2>, scalar_prefetch = 0 : i64, scratch_operands = 0 : i64, tpu.core_type = #tpu.core_type<tc>, window_params = [{transform_indices = @transform_0, window_bounds = array<i64: 2, 8, 32>}, {transform_indices = @transform_1, window_bounds = array<i64: 2, 8, 32>}, {transform_indices = @transform_2, window_bounds = array<i64: 2, 8, 32>}, {pipeline_mode = #tpu.pipeline_mode<synchronous>, transform_indices = @transform_3, window_bounds = array<i64: 32, 32>}, {pipeline_mode = #tpu.pipeline_mode<synchronous>, transform_indices = @transform_4, window_bounds = array<i64: 1, 32>}, {pipeline_mode = #tpu.pipeline_mode<synchronous>, transform_indices = @transform_5, window_bounds = array<i64: 32, 32>}, {pipeline_mode = #tpu.pipeline_mode<synchronous>, transform_indices = @transform_6, window_bounds = array<i64: 1, 32>}, {pipeline_mode = #tpu.pipeline_mode<synchronous>, transform_indices = @transform_7, window_bounds = array<i64: 32, 32>}, {pipeline_mode = #tpu.pipeline_mode<synchronous>, transform_indices = @transform_8, window_bounds = array<i64: 1, 32>}, {pipeline_mode = #tpu.pipeline_mode<synchronous>, transform_indices = @transform_9, window_bounds = array<i64: 32, 32>}, {pipeline_mode = #tpu.pipeline_mode<synchronous>, transform_indices = @transform_10, window_bounds = array<i64: 1, 32>}, {transform_indices = @transform_11, window_bounds = array<i64: 2, 8, 32>}]} {
    %c0 = arith.constant 0 : index
    %c0_0 = arith.constant 0 : index
    %c0_1 = arith.constant 0 : index
    %0 = vector.load %arg1[%c0, %c0_0, %c0_1] : memref<2x8x32xbf16, #tpu.memory_space<vmem>>, vector<2x8x32xbf16>
    %1 = vector.shape_cast %0 : vector<2x8x32xbf16> to vector<16x32xbf16>
    %c0_2 = arith.constant 0 : index
    %c0_3 = arith.constant 0 : index
    %c0_4 = arith.constant 0 : index
    %2 = vector.load %arg2[%c0_2, %c0_3, %c0_4] : memref<2x8x32xbf16, #tpu.memory_space<vmem>>, vector<2x8x32xbf16>
    %3 = vector.shape_cast %2 : vector<2x8x32xbf16> to vector<16x32xbf16>
    %c0_5 = arith.constant 0 : index
    %c0_6 = arith.constant 0 : index
    %c0_7 = arith.constant 0 : index
    %4 = vector.load %arg3[%c0_5, %c0_6, %c0_7] : memref<2x8x32xbf16, #tpu.memory_space<vmem>>, vector<2x8x32xbf16>
    %5 = vector.shape_cast %4 : vector<2x8x32xbf16> to vector<16x32xbf16>
    %c0_8 = arith.constant 0 : index
    %c0_9 = arith.constant 0 : index
    %6 = vector.load %arg4[%c0_8, %c0_9] : memref<32x32xbf16, #tpu.memory_space<vmem>>, vector<32x32xbf16>
    %cst = arith.constant dense<0.000000e+00> : vector<16x32xf32>
    %7 = tpu.matmul %1, %6, %cst {dimension_numbers = #tpu.dot_dimension_numbers<[1], [0], [0], [1], [0, 0, 1, 1], [], []>} : vector<16x32xbf16>, vector<32x32xbf16>, vector<16x32xf32> -> vector<16x32xf32>
    %c0_10 = arith.constant 0 : index
    %c0_11 = arith.constant 0 : index
    %8 = vector.load %arg5[%c0_10, %c0_11] : memref<1x32xf32, #tpu.memory_space<vmem>>, vector<1x32xf32>
    %9 = vector.broadcast %8 : vector<1x32xf32> to vector<16x32xf32>
    %10 = arith.addf %7, %9 : vector<16x32xf32>
    %11 = arith.truncf %10 : vector<16x32xf32> to vector<16x32xbf16>
    %12 = vector.shape_cast %11 : vector<16x32xbf16> to vector<2x8x32xbf16>
    %c0_12 = arith.constant 0 : index
    %c0_13 = arith.constant 0 : index
    %13 = vector.load %arg6[%c0_12, %c0_13] : memref<32x32xbf16, #tpu.memory_space<vmem>>, vector<32x32xbf16>
    %cst_14 = arith.constant dense<0.000000e+00> : vector<16x32xf32>
    %14 = tpu.matmul %3, %13, %cst_14 {dimension_numbers = #tpu.dot_dimension_numbers<[1], [0], [0], [1], [0, 0, 1, 1], [], []>} : vector<16x32xbf16>, vector<32x32xbf16>, vector<16x32xf32> -> vector<16x32xf32>
    %c0_15 = arith.constant 0 : index
    %c0_16 = arith.constant 0 : index
    %15 = vector.load %arg7[%c0_15, %c0_16] : memref<1x32xf32, #tpu.memory_space<vmem>>, vector<1x32xf32>
    %16 = vector.broadcast %15 : vector<1x32xf32> to vector<16x32xf32>
    %17 = arith.addf %14, %16 : vector<16x32xf32>
    %18 = arith.truncf %17 : vector<16x32xf32> to vector<16x32xbf16>
    %19 = vector.shape_cast %18 : vector<16x32xbf16> to vector<2x8x32xbf16>
    %c0_17 = arith.constant 0 : index
    %c0_18 = arith.constant 0 : index
    %20 = vector.load %arg8[%c0_17, %c0_18] : memref<32x32xbf16, #tpu.memory_space<vmem>>, vector<32x32xbf16>
    %cst_19 = arith.constant dense<0.000000e+00> : vector<16x32xf32>
    %21 = tpu.matmul %5, %20, %cst_19 {dimension_numbers = #tpu.dot_dimension_numbers<[1], [0], [0], [1], [0, 0, 1, 1], [], []>} : vector<16x32xbf16>, vector<32x32xbf16>, vector<16x32xf32> -> vector<16x32xf32>
    %c0_20 = arith.constant 0 : index
    %c0_21 = arith.constant 0 : index
    %22 = vector.load %arg9[%c0_20, %c0_21] : memref<1x32xf32, #tpu.memory_space<vmem>>, vector<1x32xf32>
    %23 = vector.broadcast %22 : vector<1x32xf32> to vector<16x32xf32>
    %24 = arith.addf %21, %23 : vector<16x32xf32>
    %25 = arith.truncf %24 : vector<16x32xf32> to vector<16x32xbf16>
    %26 = vector.shape_cast %25 : vector<16x32xbf16> to vector<2x8x32xbf16>
    %27 = vector.extract_strided_slice %12 {offsets = [0, 0, 0], sizes = [2, 8, 8], strides = [1, 1, 1]} : vector<2x8x32xbf16> to vector<2x8x8xbf16>
    %28 = vector.extract_strided_slice %19 {offsets = [0, 0, 0], sizes = [2, 8, 8], strides = [1, 1, 1]} : vector<2x8x32xbf16> to vector<2x8x8xbf16>
    "tpu.trace_start"() <{level = 10 : i32, message = "gle,gse->gls"}> : () -> ()
    %cst_22 = arith.constant dense<0.000000e+00> : vector<2x8x8xf32>
    %29 = tpu.matmul %27, %28, %cst_22 {dimension_numbers = #tpu.dot_dimension_numbers<[2], [2], [1], [1], [0, 0, 0, 1, 1, 1], [0], [0]>} : vector<2x8x8xbf16>, vector<2x8x8xbf16>, vector<2x8x8xf32> -> vector<2x8x8xf32>
    "tpu.trace_stop"() : () -> ()
    %cst_23 = arith.constant dense<0xFF800000> : vector<2x8xf32>
    %30 = vector.multi_reduction <maximumf>, %29, %cst_23 [2] : vector<2x8x8xf32> to vector<2x8xf32>
    %31 = vector.shape_cast %30 : vector<2x8xf32> to vector<2x8x1xf32>
    %32 = vector.broadcast %31 : vector<2x8x1xf32> to vector<2x8x8xf32>
    %33 = arith.subf %29, %32 : vector<2x8x8xf32>
    %34 = math.exp %33 : vector<2x8x8xf32>
    %cst_24 = arith.constant dense<0.000000e+00> : vector<2x8xf32>
    %35 = vector.multi_reduction <add>, %34, %cst_24 [2] : vector<2x8x8xf32> to vector<2x8xf32>
    %36 = vector.shape_cast %35 : vector<2x8xf32> to vector<2x8x1xf32>
    %37 = tpu.reciprocal %36 {approx = true} : vector<2x8x1xf32> -> vector<2x8x1xf32>
    %38 = vector.broadcast %37 : vector<2x8x1xf32> to vector<2x8x8xf32>
    %39 = arith.mulf %34, %38 : vector<2x8x8xf32>
    %40 = arith.truncf %39 : vector<2x8x8xf32> to vector<2x8x8xbf16>
    %41 = vector.extract_strided_slice %26 {offsets = [0, 0, 0], sizes = [2, 8, 8], strides = [1, 1, 1]} : vector<2x8x32xbf16> to vector<2x8x8xbf16>
    "tpu.trace_start"() <{level = 10 : i32, message = "gls,gse->gle"}> : () -> ()
    %cst_25 = arith.constant dense<0.000000e+00> : vector<2x8x8xf32>
    %42 = tpu.matmul %40, %41, %cst_25 {dimension_numbers = #tpu.dot_dimension_numbers<[2], [1], [1], [2], [0, 0, 0, 1, 1, 2], [0], [0]>} : vector<2x8x8xbf16>, vector<2x8x8xbf16>, vector<2x8x8xf32> -> vector<2x8x8xf32>
    "tpu.trace_stop"() : () -> ()
    %43 = vector.extract_strided_slice %12 {offsets = [0, 0, 8], sizes = [2, 8, 8], strides = [1, 1, 1]} : vector<2x8x32xbf16> to vector<2x8x8xbf16>
    %44 = vector.extract_strided_slice %19 {offsets = [0, 0, 8], sizes = [2, 8, 8], strides = [1, 1, 1]} : vector<2x8x32xbf16> to vector<2x8x8xbf16>
    "tpu.trace_start"() <{level = 10 : i32, message = "gle,gse->gls"}> : () -> ()
    %cst_26 = arith.constant dense<0.000000e+00> : vector<2x8x8xf32>
    %45 = tpu.matmul %43, %44, %cst_26 {dimension_numbers = #tpu.dot_dimension_numbers<[2], [2], [1], [1], [0, 0, 0, 1, 1, 1], [0], [0]>} : vector<2x8x8xbf16>, vector<2x8x8xbf16>, vector<2x8x8xf32> -> vector<2x8x8xf32>
    "tpu.trace_stop"() : () -> ()
    %cst_27 = arith.constant dense<0xFF800000> : vector<2x8xf32>
    %46 = vector.multi_reduction <maximumf>, %45, %cst_27 [2] : vector<2x8x8xf32> to vector<2x8xf32>
    %47 = vector.shape_cast %46 : vector<2x8xf32> to vector<2x8x1xf32>
    %48 = vector.broadcast %47 : vector<2x8x1xf32> to vector<2x8x8xf32>
    %49 = arith.subf %45, %48 : vector<2x8x8xf32>
    %50 = math.exp %49 : vector<2x8x8xf32>
    %cst_28 = arith.constant dense<0.000000e+00> : vector<2x8xf32>
    %51 = vector.multi_reduction <add>, %50, %cst_28 [2] : vector<2x8x8xf32> to vector<2x8xf32>
    %52 = vector.shape_cast %51 : vector<2x8xf32> to vector<2x8x1xf32>
    %53 = tpu.reciprocal %52 {approx = true} : vector<2x8x1xf32> -> vector<2x8x1xf32>
    %54 = vector.broadcast %53 : vector<2x8x1xf32> to vector<2x8x8xf32>
    %55 = arith.mulf %50, %54 : vector<2x8x8xf32>
    %56 = arith.truncf %55 : vector<2x8x8xf32> to vector<2x8x8xbf16>
    %57 = vector.extract_strided_slice %26 {offsets = [0, 0, 8], sizes = [2, 8, 8], strides = [1, 1, 1]} : vector<2x8x32xbf16> to vector<2x8x8xbf16>
    "tpu.trace_start"() <{level = 10 : i32, message = "gls,gse->gle"}> : () -> ()
    %cst_29 = arith.constant dense<0.000000e+00> : vector<2x8x8xf32>
    %58 = tpu.matmul %56, %57, %cst_29 {dimension_numbers = #tpu.dot_dimension_numbers<[2], [1], [1], [2], [0, 0, 0, 1, 1, 2], [0], [0]>} : vector<2x8x8xbf16>, vector<2x8x8xbf16>, vector<2x8x8xf32> -> vector<2x8x8xf32>
    "tpu.trace_stop"() : () -> ()
    %59 = vector.extract_strided_slice %12 {offsets = [0, 0, 16], sizes = [2, 8, 8], strides = [1, 1, 1]} : vector<2x8x32xbf16> to vector<2x8x8xbf16>
    %60 = vector.extract_strided_slice %19 {offsets = [0, 0, 16], sizes = [2, 8, 8], strides = [1, 1, 1]} : vector<2x8x32xbf16> to vector<2x8x8xbf16>
    "tpu.trace_start"() <{level = 10 : i32, message = "gle,gse->gls"}> : () -> ()
    %cst_30 = arith.constant dense<0.000000e+00> : vector<2x8x8xf32>
    %61 = tpu.matmul %59, %60, %cst_30 {dimension_numbers = #tpu.dot_dimension_numbers<[2], [2], [1], [1], [0, 0, 0, 1, 1, 1], [0], [0]>} : vector<2x8x8xbf16>, vector<2x8x8xbf16>, vector<2x8x8xf32> -> vector<2x8x8xf32>
    "tpu.trace_stop"() : () -> ()
    %cst_31 = arith.constant dense<0xFF800000> : vector<2x8xf32>
    %62 = vector.multi_reduction <maximumf>, %61, %cst_31 [2] : vector<2x8x8xf32> to vector<2x8xf32>
    %63 = vector.shape_cast %62 : vector<2x8xf32> to vector<2x8x1xf32>
    %64 = vector.broadcast %63 : vector<2x8x1xf32> to vector<2x8x8xf32>
    %65 = arith.subf %61, %64 : vector<2x8x8xf32>
    %66 = math.exp %65 : vector<2x8x8xf32>
    %cst_32 = arith.constant dense<0.000000e+00> : vector<2x8xf32>
    %67 = vector.multi_reduction <add>, %66, %cst_32 [2] : vector<2x8x8xf32> to vector<2x8xf32>
    %68 = vector.shape_cast %67 : vector<2x8xf32> to vector<2x8x1xf32>
    %69 = tpu.reciprocal %68 {approx = true} : vector<2x8x1xf32> -> vector<2x8x1xf32>
    %70 = vector.broadcast %69 : vector<2x8x1xf32> to vector<2x8x8xf32>
    %71 = arith.mulf %66, %70 : vector<2x8x8xf32>
    %72 = arith.truncf %71 : vector<2x8x8xf32> to vector<2x8x8xbf16>
    %73 = vector.extract_strided_slice %26 {offsets = [0, 0, 16], sizes = [2, 8, 8], strides = [1, 1, 1]} : vector<2x8x32xbf16> to vector<2x8x8xbf16>
    "tpu.trace_start"() <{level = 10 : i32, message = "gls,gse->gle"}> : () -> ()
    %cst_33 = arith.constant dense<0.000000e+00> : vector<2x8x8xf32>
    %74 = tpu.matmul %72, %73, %cst_33 {dimension_numbers = #tpu.dot_dimension_numbers<[2], [1], [1], [2], [0, 0, 0, 1, 1, 2], [0], [0]>} : vector<2x8x8xbf16>, vector<2x8x8xbf16>, vector<2x8x8xf32> -> vector<2x8x8xf32>
    "tpu.trace_stop"() : () -> ()
    %75 = vector.extract_strided_slice %12 {offsets = [0, 0, 24], sizes = [2, 8, 8], strides = [1, 1, 1]} : vector<2x8x32xbf16> to vector<2x8x8xbf16>
    %76 = vector.extract_strided_slice %19 {offsets = [0, 0, 24], sizes = [2, 8, 8], strides = [1, 1, 1]} : vector<2x8x32xbf16> to vector<2x8x8xbf16>
    "tpu.trace_start"() <{level = 10 : i32, message = "gle,gse->gls"}> : () -> ()
    %cst_34 = arith.constant dense<0.000000e+00> : vector<2x8x8xf32>
    %77 = tpu.matmul %75, %76, %cst_34 {dimension_numbers = #tpu.dot_dimension_numbers<[2], [2], [1], [1], [0, 0, 0, 1, 1, 1], [0], [0]>} : vector<2x8x8xbf16>, vector<2x8x8xbf16>, vector<2x8x8xf32> -> vector<2x8x8xf32>
    "tpu.trace_stop"() : () -> ()
    %cst_35 = arith.constant dense<0xFF800000> : vector<2x8xf32>
    %78 = vector.multi_reduction <maximumf>, %77, %cst_35 [2] : vector<2x8x8xf32> to vector<2x8xf32>
    %79 = vector.shape_cast %78 : vector<2x8xf32> to vector<2x8x1xf32>
    %80 = vector.broadcast %79 : vector<2x8x1xf32> to vector<2x8x8xf32>
    %81 = arith.subf %77, %80 : vector<2x8x8xf32>
    %82 = math.exp %81 : vector<2x8x8xf32>
    %cst_36 = arith.constant dense<0.000000e+00> : vector<2x8xf32>
    %83 = vector.multi_reduction <add>, %82, %cst_36 [2] : vector<2x8x8xf32> to vector<2x8xf32>
    %84 = vector.shape_cast %83 : vector<2x8xf32> to vector<2x8x1xf32>
    %85 = tpu.reciprocal %84 {approx = true} : vector<2x8x1xf32> -> vector<2x8x1xf32>
    %86 = vector.broadcast %85 : vector<2x8x1xf32> to vector<2x8x8xf32>
    %87 = arith.mulf %82, %86 : vector<2x8x8xf32>
    %88 = arith.truncf %87 : vector<2x8x8xf32> to vector<2x8x8xbf16>
    %89 = vector.extract_strided_slice %26 {offsets = [0, 0, 24], sizes = [2, 8, 8], strides = [1, 1, 1]} : vector<2x8x32xbf16> to vector<2x8x8xbf16>
    "tpu.trace_start"() <{level = 10 : i32, message = "gls,gse->gle"}> : () -> ()
    %cst_37 = arith.constant dense<0.000000e+00> : vector<2x8x8xf32>
    %90 = tpu.matmul %88, %89, %cst_37 {dimension_numbers = #tpu.dot_dimension_numbers<[2], [1], [1], [2], [0, 0, 0, 1, 1, 2], [0], [0]>} : vector<2x8x8xbf16>, vector<2x8x8xbf16>, vector<2x8x8xf32> -> vector<2x8x8xf32>
    "tpu.trace_stop"() : () -> ()
    %91 = tpu.concatenate %42, %58, %74, %90 in 2 : vector<2x8x8xf32>, vector<2x8x8xf32>, vector<2x8x8xf32>, vector<2x8x8xf32> -> vector<2x8x32xf32>
    %92 = vector.shape_cast %91 : vector<2x8x32xf32> to vector<16x32xf32>
    %93 = arith.truncf %92 : vector<16x32xf32> to vector<16x32xbf16>
    %c0_38 = arith.constant 0 : index
    %c0_39 = arith.constant 0 : index
    %94 = vector.load %arg10[%c0_38, %c0_39] : memref<32x32xbf16, #tpu.memory_space<vmem>>, vector<32x32xbf16>
    %cst_40 = arith.constant dense<0.000000e+00> : vector<16x32xf32>
    %95 = tpu.matmul %93, %94, %cst_40 {dimension_numbers = #tpu.dot_dimension_numbers<[1], [0], [0], [1], [0, 0, 1, 1], [], []>} : vector<16x32xbf16>, vector<32x32xbf16>, vector<16x32xf32> -> vector<16x32xf32>
    %c0_41 = arith.constant 0 : index
    %c0_42 = arith.constant 0 : index
    %96 = vector.load %arg11[%c0_41, %c0_42] : memref<1x32xf32, #tpu.memory_space<vmem>>, vector<1x32xf32>
    %97 = vector.broadcast %96 : vector<1x32xf32> to vector<16x32xf32>
    %98 = arith.addf %95, %97 : vector<16x32xf32>
    %99 = vector.shape_cast %98 : vector<16x32xf32> to vector<2x8x32xf32>
    %c0_43 = arith.constant 0 : index
    %c0_44 = arith.constant 0 : index
    %c0_45 = arith.constant 0 : index
    %100 = vector.load %arg12[%c0_43, %c0_44, %c0_45] : memref<2x8x32xf32, #tpu.memory_space<vmem>>, vector<2x8x32xf32>
    tpu.vector_store %arg12[%c0_43, %c0_44, %c0_45], %99 {strides = array<i32>} : memref<2x8x32xf32, #tpu.memory_space<vmem>>, vector<2x8x32xf32>,
    return
  }
  func.func @transform_0(%arg0: i32) -> (i32, i32, i32) {
    %c0_i32 = arith.constant 0 : i32
    %c0_i32_0 = arith.constant 0 : i32
    %c0_i32_1 = arith.constant 0 : i32
    return %arg0, %c0_i32, %c0_i32_0 : i32, i32, i32
  }
  func.func @transform_1(%arg0: i32) -> (i32, i32, i32) {
    %c0_i32 = arith.constant 0 : i32
    %c0_i32_0 = arith.constant 0 : i32
    %c0_i32_1 = arith.constant 0 : i32
    return %arg0, %c0_i32, %c0_i32_0 : i32, i32, i32
  }
  func.func @transform_2(%arg0: i32) -> (i32, i32, i32) {
    %c0_i32 = arith.constant 0 : i32
    %c0_i32_0 = arith.constant 0 : i32
    %c0_i32_1 = arith.constant 0 : i32
    return %arg0, %c0_i32, %c0_i32_0 : i32, i32, i32
  }
  func.func @transform_3(%arg0: i32) -> (i32, i32) {
    %c0_i32 = arith.constant 0 : i32
    %c0_i32_0 = arith.constant 0 : i32
    %c0_i32_1 = arith.constant 0 : i32
    return %c0_i32, %c0_i32_0 : i32, i32
  }
  func.func @transform_4(%arg0: i32) -> (i32, i32) {
    %c0_i32 = arith.constant 0 : i32
    %c0_i32_0 = arith.constant 0 : i32
    %c0_i32_1 = arith.constant 0 : i32
    return %c0_i32, %c0_i32_0 : i32, i32
  }
  func.func @transform_5(%arg0: i32) -> (i32, i32) {
    %c0_i32 = arith.constant 0 : i32
    %c0_i32_0 = arith.constant 0 : i32
    %c0_i32_1 = arith.constant 0 : i32
    return %c0_i32, %c0_i32_0 : i32, i32
  }
  func.func @transform_6(%arg0: i32) -> (i32, i32) {
    %c0_i32 = arith.constant 0 : i32
    %c0_i32_0 = arith.constant 0 : i32
    %c0_i32_1 = arith.constant 0 : i32
    return %c0_i32, %c0_i32_0 : i32, i32
  }
  func.func @transform_7(%arg0: i32) -> (i32, i32) {
    %c0_i32 = arith.constant 0 : i32
    %c0_i32_0 = arith.constant 0 : i32
    %c0_i32_1 = arith.constant 0 : i32
    return %c0_i32, %c0_i32_0 : i32, i32
  }
  func.func @transform_8(%arg0: i32) -> (i32, i32) {
    %c0_i32 = arith.constant 0 : i32
    %c0_i32_0 = arith.constant 0 : i32
    %c0_i32_1 = arith.constant 0 : i32
    return %c0_i32, %c0_i32_0 : i32, i32
  }
  func.func @transform_9(%arg0: i32) -> (i32, i32) {
    %c0_i32 = arith.constant 0 : i32
    %c0_i32_0 = arith.constant 0 : i32
    %c0_i32_1 = arith.constant 0 : i32
    return %c0_i32, %c0_i32_0 : i32, i32
  }
  func.func @transform_10(%arg0: i32) -> (i32, i32) {
    %c0_i32 = arith.constant 0 : i32
    %c0_i32_0 = arith.constant 0 : i32
    %c0_i32_1 = arith.constant 0 : i32
    return %c0_i32, %c0_i32_0 : i32, i32
  }
  func.func @transform_11(%arg0: i32) -> (i32, i32, i32) {
    %c0_i32 = arith.constant 0 : i32
    %c0_i32_0 = arith.constant 0 : i32
    %c0_i32_1 = arith.constant 0 : i32
    return %arg0, %c0_i32, %c0_i32_0 : i32, i32, i32
  }
}

</mosaic_0001>

<bundles_post_ra>
// kernel: tpu_custom_call.1
= control target key start
LH: loop header
LB: loop body
LE: loop exit
PB: predicated region body
PF: predicated region fallthrough
CT: control target
= control target key end

     0   :  { %s3205_s0 = inlined_call_operand.hbm [shape: bf16[4,8,32], index: 0, kind: input, shape index: {}]   ;;  %s3206_s1 = inlined_call_operand.hbm [shape: bf16[4,8,32], index: 1, kind: input, shape index: {}]   ;;  %s3207_s2 = inlined_call_operand.hbm [shape: bf16[4,8,32], index: 2, kind: input, shape index: {}]   ;;  %s3208_s3 = inlined_call_operand.hbm [shape: bf16[32,32], index: 3, kind: input, shape index: {}]   ;;  %s3209_s4 = inlined_call_operand.vmem [shape: f32[1,32], index: 4, kind: input, shape index: {}]   ;;  %s3210_s5 = inlined_call_operand.vmem [shape: bf16[32,32], index: 5, kind: input, shape index: {}]   ;;  %s3211_s6 = inlined_call_operand.vmem [shape: f32[1,32], index: 6, kind: input, shape index: {}]   ;;  %s3212_s7 = inlined_call_operand.hbm [shape: bf16[32,32], index: 7, kind: input, shape index: {}]   ;;  %s3213_s8 = inlined_call_operand.hbm [shape: f32[1,32], index: 8, kind: input, shape index: {}]   ;;  %s3214_s9 = inlined_call_operand.vmem [shape: bf16[32,32], index: 9, kind: input, shape index: {}]   ;;  %s3215_s10 = inlined_call_operand.vmem [shape: f32[1,32], index: 10, kind: input, shape index: {}]   ;;  %s3216_s11 = inlined_call_operand.hbm [shape: f32[4,8,32], index: 11, kind: output, shape index: {}]  }
   0x1   :  { %3244 = sst [smem:[#allocation25_spill]] %s3206_s1 }
   0x2   :  { %3245 = sst [smem:[#allocation26_spill]] %s3208_s3 }
   0x3   :  { %3246 = sst [smem:[#allocation27_spill]] %s3209_s4 }
   0x4   :  { %3247 = sst [smem:[#allocation28_spill]] %s3210_s5 }
   0x5   :  { %3248 = sst [smem:[#allocation29_spill]] %s3211_s6 }
   0x6   :  { %3249 = sst [smem:[#allocation30_spill]] %s3214_s9 }
   0x7   :  { %3250 = sst [smem:[#allocation31_spill]] %s3215_s10 }
   0x8   :  { %3251 = sst [smem:[#allocation32_spill]] %s3216_s11 }
   0x9   :  { %16 = vsyncpa [#allocation3], 0 }
   0xa   :  { %18 = vsyncpa [#allocation3 + $0x1], 0 }
   0xb   :  { %19 = vsyncpa [#allocation6], 0 }
   0xc   :  { %21 = vsyncpa [#allocation6 + $0x1], 0 }
   0xd   :  { %22 = vsyncpa [#allocation9], 0 }
   0xe   :  { %23 = vsyncpa [#allocation12], 0 }
   0xf   :  { %24 = vsyncpa [#allocation4], 0 }
  0x10   :  { %26 = vsyncpa [#allocation4 + $0x1], 0  ;;  %s2640_s17 = smov 0   ;;  %s2642_s18 = smov 0  }
  0x11   :  { %s2644_s19 = smov 0   ;;  %s2646_s20 = smov 0  }
  0x12 LB: > { %3252 = sst [smem:[#allocation19_spill]] %s2548_s17  ;;  %s2661_s21 = sadd.s32 4294967295, %s2560_s20   ;;  %s2560_s20 = sphi %s2646_s20, %s3297_s20   ;;  %s2556_s19 = sphi %s2644_s19, %s3301_s19   ;;  %s2552_s18 = sphi %s2642_s18, %s3300_s18   ;;  %s2548_s17 = sphi %s2640_s17, %s3299_s17  }
  0x13   : > { %3253 = sst [smem:[#allocation20_spill]] %s2560_s20  ;;  %s1901_s22 = sadd.s32 4294967294, %s2560_s20  }
  0x14   : > { %s2665_s23 = sadd.s32 1, %s2560_s20   ;;  %s39_s24 = sadd.s32 1, %s2556_s19 }
  0x15   : > { %3254 = sst [smem:[#allocation21_spill]] %s2665_s23  ;;  %s36_s25 = ssub.s32 %s2560_s20, %s2665_s23 }
  0x16   : > { %p46_p0 = scmp.ne.s32.totalorder %s2556_s19, %s2552_s18  ;;  %p37_p1 = scmp.eq.s32.totalorder %s36_s25, 0 }
  0x17   : > { %p47_p2 = scmp.eq.s32.totalorder %s2560_s20, 0  ;;  %p52_p3 = scmp.ne.s32.totalorder %s2552_s18, %s2548_s17 }
  0x18   : > { %p3222_p4 = scmp.eq.s32.totalorder %s2661_s21, 0  ;;  %p296_p7 = scmp.eq.s32.totalorder %s2661_s21, 1 }
  0x19   : > { %s2677_s26 = scalar_select %p37_p1, %s2556_s19, %s39_s24  }
  0x1a   : > { %p2679_p5 = por %p47_p2, %p46_p0  ;;  %p2685_p6 = por %p3222_p4, %p52_p3 }
  0x1b   : > { %3255 = sst [smem:[#allocation22_spill]] %s2677_s26  ;;  %p302_p8 = scmp.eq.s32.totalorder %s1901_s22, 1 }
  0x1c   : > { %s3256_s27 = scalar_select %p2679_p5, 1, 0 }
  0x1d   : > { %s3257_s28 = scalar_select %p2685_p6, 1, 0 }
  0x1e   : > { %p1902_p9 = scmp.ge.s32.totalorder %s2560_s20, 1  ;;  %p309_p10 = scmp.lt.s32.totalorder %s2560_s20, 3 }
  0x1f   : > { %p2692_p11 = por %p296_p7, %p46_p0  ;;  %p2696_p12 = por %p302_p8, %p52_p3 }
  0x20   : > { %p2700_p13 = pnand %p1902_p9, %p309_p10  ;;  %s2562_s13 = smov [#allocation8]  }
  0x21   : > { %s3258_s29 = scalar_select %p2692_p11, 1, 0 }
  0x22   : > { %s3260_s30 = scalar_select %p2696_p12, 1, 0 }
  0x23   : > { %3259 = sst [smem:[#allocation23_spill]] %s3258_s29  ;;  %p2172_p1 = pneg %p2700_p13 }
  0x24   : > { %3261 = sst [smem:[#allocation24_spill]] %s3260_s30  ;;  %s321_s14 = sshll.u32 %s2562_s13, 4  ;;  %s322_s14 = int_to_ptr.vmem [resolvable:$true] %s321_s14 }
  0x25   : > { %s3262_s12 = scalar_select %p2700_p13, 1, 0 }
  0x26   : > { %p2708_p2 = pnand %p2172_p1, %p3222_p4  ;;  %s3221_s16 = sand.u32 1, %s2556_s19  }
  0x27   : > { %s2717_s22 = sshll.u32 %s3221_s16, 3  ;;  %s3264_s3 = sld [smem:[#allocation26_spill]] }
  0x28   : > { %s3263_s15 = scalar_select %p2708_p2, 1, 0 }
  0x29   : > { %p2727_p8 = pneg %p2708_p2 }
  0x2b   : > { %s3265_s13 = scalar_select %p2727_p8, 1, 0 }
  0x2d   : > { %s2308_s26 = scalar_lea.hbm %s3264_s3, 256 }
  0x2e   : > { %p2309_p7 = scmp.ne.s32.totalorder %s3264_s3, %s2308_s26  ;;  %p2315_p1 = scmp.lt.u32.totalorder %s2308_s26, %s3264_s3 }
  0x30   : > { %p2311_p9 = pnand %p2727_p8, %p2309_p7 }
  0x32   : > { %p2312_p10 = pneg %p2311_p9 }
  0x34   : > { %p2317_p0 = pnand %p2315_p1, %p2312_p10 }
  0x36   : > { %2320 = shalt.err (!%p2317_p0)
}
  0x37   : > { %s2321_s24 = scalar_lea.vmem %s322_s14, 256  ;;  %p2329_p11 = scmp.lt.s32.totalorder %s322_s14, %s322_s14 }
  0x38   : > { %p2322_p4 = scmp.ne.s32.totalorder %s322_s14, %s2321_s24  ;;  %p2330_p6 = scmp.lt.s32.totalorder %s2321_s24, %s2321_s24 }
  0x3a   : > { %p2324_p3 = pnand %p2322_p4, %p2727_p8  ;;  %p2331_p13 = por %p2330_p6, %p2329_p11 }
  0x3c   : > { %p2325_p12 = pneg %p2324_p3 }
  0x3e   : > { %p2332_p5 = pnand %p2331_p13, %p2325_p12 }
  0x40   : > { %2335 = shalt.err (!%p2332_p5)
}
  0x41   : > { %s3229_s23 = smov 64   ;;  %s3231_s17 = smov 4  }
  0x42   : > { %2175 = dma.hbm_to_vmem [thread:$0]  (!%p2708_p2), %s3264_s3, 256, %s322_s14, [#allocation9], %s3229_s23, %s3229_s23, %s3231_s17  }
  0x43   : > { %s2747_s16 = sshll.u32 %s2560_s20, 7  ;;  %p3266_p4 = scmp.ne.s32.totalorder %s3256_s27, 0 }
  0x44   : > { %p3267_p5 = scmp.lt.s32.totalorder %s2560_s20, 2  ;;  %s395_s24 = sand.u32 1, %s2560_s20  }
  0x45   : > { %s3269_s1 = sld [smem:[#allocation25_spill]]  ;;  %s399_s14 = scalar_lea.vmem [#allocation5], %s2717_s22 }
  0x46   : > { %p2753_p6 = pnand %p3267_p5, %p3266_p4  ;;  %s406_s26 = sshll.u32 %s399_s14, 4  ;;  %s2765_s26 = int_to_ptr.vmem [resolvable:$true] %s406_s26 }
  0x47   : > { %s2767_s27 = scalar_lea.sflag [#allocation6], %s395_s24 }
  0x48   : > { %s3268_s25 = scalar_select %p2753_p6, 1, 0 }
  0x49   : > { %p2773_p12 = pneg %p2753_p6 }
  0x4b   : > { %s2762_s10 = scalar_lea.hbm %s3269_s1, %s2747_s16  ;;  %s2341_s17 = scalar_lea.hbm %s3269_s1, 256 }
  0x4c   : > { %s2336_s30 = scalar_lea.hbm %s2762_s10, 128  ;;  %p2342_p3 = scmp.lt.u32.totalorder %s2762_s10, %s3269_s1 }
  0x4d   : > { %p2337_p11 = scmp.ne.s32.totalorder %s2762_s10, %s2336_s30  ;;  %p2343_p7 = scmp.lt.u32.totalorder %s2341_s17, %s2336_s30 }
  0x4e   : > { %s3270_s23 = scalar_select %p2773_p12, 1, 0 }
  0x4f   : > { %p2339_p13 = pnand %p2773_p12, %p2337_p11  ;;  %p2344_p9 = por %p2343_p7, %p2342_p3 }
  0x50   : > { %p2345_p10 = scmp.lt.u32.totalorder %s2336_s30, %s2762_s10 }
  0x51   : > { %p2340_p0 = pneg %p2339_p13 }
  0x52   : > { %p2346_p1 = por %p2345_p10, %p2344_p9 }
  0x54   : > { %p2347_p4 = pnand %p2346_p1, %p2340_p0 }
  0x56   : > { %2350 = shalt.err (!%p2347_p4)
}
  0x57   : > { %s2351_s24 = scalar_lea.vmem %s2765_s26, 128  ;;  %s2565_s11 = smov [#allocation5]  }
  0x58   : > { %p2352_p5 = scmp.ne.s32.totalorder %s2765_s26, %s2351_s24  ;;  %s2356_s29 = sshll.u32 %s2565_s11, 4  ;;  %s2357_s29 = int_to_ptr.vmem [resolvable:$false] %s2356_s29 }
  0x59   : > { %s2358_s3 = scalar_lea.vmem %s2357_s29, 256  ;;  %p2359_p2 = scmp.lt.s32.totalorder %s2765_s26, %s2357_s29 }
  0x5a   : > { %p2354_p11 = pnand %p2352_p5, %p2773_p12  ;;  %p2360_p8 = scmp.lt.s32.totalorder %s2358_s3, %s2351_s24 }
  0x5c   : > { %p2355_p13 = pneg %p2354_p11  ;;  %p2361_p3 = por %p2360_p8, %p2359_p2 }
  0x5e   : > { %p2362_p7 = pnand %p2361_p3, %p2355_p13 }
  0x60   : > { %2365 = shalt.err (!%p2362_p7)
}
  0x61   : > { %s3271_s17 = smov 4   ;;  %s3272_s30 = smov 64  }
  0x62   : > { %2188 = dma.hbm_to_vmem [thread:$0]  (!%p2753_p6), %s2762_s10, 128, %s2765_s26, %s2767_s27, %s3272_s30, %s3272_s30, %s3271_s17  }
  0x63   : > { %s2566_s14 = smov [#allocation10]   ;;  %s2567_s11 = smov [#allocation11]  }
  0x64   : > { %s343_s1 = sshll.u32 %s2566_s14, 4  ;;  %s357_s20 = sshll.u32 %s2567_s11, 4  ;;  %s344_s1 = int_to_ptr.vmem [resolvable:$true] %s343_s1  ;;  %s358_s20 = int_to_ptr.vmem [resolvable:$true] %s357_s20 }
  0x65   : > { %s2366_s3 = scalar_lea.hbm %s3212_s7, 256  ;;  %p3273_p8 = scmp.ne.s32.totalorder %s3265_s13, 0 }
  0x66   : > { %p2367_p2 = scmp.ne.s32.totalorder %s3212_s7, %s2366_s3  ;;  %p2373_p10 = scmp.lt.u32.totalorder %s2366_s3, %s3212_s7 }
  0x68   : > { %p2369_p0 = pnand %p2367_p2, %p3273_p8 }
  0x6a   : > { %p2370_p9 = pneg %p2369_p0 }
  0x6c   : > { %p2375_p1 = pnand %p2373_p10, %p2370_p9 }
  0x6e   : > { %2378 = shalt.err (!%p2375_p1)
}
  0x6f   : > { %s2379_s10 = scalar_lea.vmem %s344_s1, 256  ;;  %p2387_p13 = scmp.lt.s32.totalorder %s344_s1, %s344_s1 }
  0x70   : > { %p2380_p4 = scmp.ne.s32.totalorder %s344_s1, %s2379_s10  ;;  %p2388_p3 = scmp.lt.s32.totalorder %s2379_s10, %s2379_s10 }
  0x72   : > { %p2382_p5 = pnand %p2380_p4, %p3273_p8  ;;  %p2389_p7 = por %p2388_p3, %p2387_p13 }
  0x74   : > { %p2383_p11 = pneg %p2382_p5 }
  0x76   : > { %p2390_p6 = pnand %p2389_p7, %p2383_p11 }
  0x78   : > { %2393 = shalt.err (!%p2390_p6)
}
  0x79   : > { %p3274_p2 = scmp.ne.s32.totalorder %s3263_s15, 0  ;;  %s2394_s26 = scalar_lea.hbm %s3213_s8, 16 }
  0x7a   : > { %p2395_p0 = scmp.ne.s32.totalorder %s3213_s8, %s2394_s26  ;;  %p2401_p10 = scmp.lt.u32.totalorder %s2394_s26, %s3213_s8 }
  0x7b   : > { %2178 = dma.hbm_to_vmem [thread:$0]  (!%p3274_p2), %s3212_s7, 256, %s344_s1, [#allocation9], %s3272_s30, %s3272_s30, %s3271_s17  }
  0x7c   : > { %p2397_p6 = pnand %p2395_p0, %p3273_p8 }
  0x7e   : > { %p2398_p9 = pneg %p2397_p6 }
  0x80   : > { %p2403_p1 = pnand %p2401_p10, %p2398_p9 }
  0x82   : > { %2406 = shalt.err (!%p2403_p1)
}
  0x83   : > { %s2407_s3 = scalar_lea.vmem %s358_s20, 16  ;;  %s2414_s1 = scalar_lea.vmem %s358_s20, 32 }
  0x84   : > { %p2408_p4 = scmp.ne.s32.totalorder %s358_s20, %s2407_s3  ;;  %p2415_p13 = scmp.lt.s32.totalorder %s358_s20, %s358_s20 }
  0x85   : > { %p2416_p3 = scmp.lt.s32.totalorder %s2414_s1, %s2407_s3 }
  0x86   : > { %p2410_p5 = pnand %p2408_p4, %p3273_p8 }
  0x87   : > { %p2417_p7 = por %p2416_p3, %p2415_p13 }
  0x88   : > { %p2411_p11 = pneg %p2410_p5 }
  0x8a   : > { %p2418_p12 = pnand %p2417_p7, %p2411_p11 }
  0x8c   : > { %2421 = shalt.err (!%p2418_p12)
}
  0x8d   : > { %2181 = dma.hbm_to_vmem [thread:$0]  (!%p3274_p2), %s3213_s8, 16, %s358_s20, [#allocation12]  }
  0x8e   : > { %s2843_s6 = scalar_lea.hbm %s3205_s0, %s2747_s16  ;;  %s378_s9 = scalar_lea.vmem [#allocation2], %s2717_s22 }
  0x8f   : > { %s385_s15 = sshll.u32 %s378_s9, 4  ;;  %s2852_s11 = scalar_lea.hbm %s3207_s2, %s2747_s16  ;;  %s2846_s15 = int_to_ptr.vmem [resolvable:$true] %s385_s15 }
  0x90   : > { %s3275_s29 = sand.u32 1, %s2556_s19   ;;  %s2422_s24 = scalar_lea.hbm %s2843_s6, 128 }
  0x91   : > { %s2856_s20 = scalar_lea.sflag [#allocation3], %s3275_s29  ;;  %p2423_p12 = scmp.ne.s32.totalorder %s2843_s6, %s2422_s24 }
  0x92   : > { %p3276_p8 = scmp.ne.s32.totalorder %s3270_s23, 0  ;;  %s2427_s10 = scalar_lea.hbm %s3205_s0, 256 }
  0x93   : > { %p2428_p6 = scmp.lt.u32.totalorder %s2843_s6, %s3205_s0  ;;  %p2429_p9 = scmp.lt.u32.totalorder %s2427_s10, %s2422_s24 }
  0x94   : > { %p2425_p2 = pnand %p2423_p12, %p3276_p8  ;;  %p2431_p1 = scmp.lt.u32.totalorder %s2422_s24, %s2843_s6 }
  0x95   : > { %p2430_p10 = por %p2429_p9, %p2428_p6 }
  0x96   : > { %p2426_p0 = pneg %p2425_p2 }
  0x97   : > { %p2432_p4 = por %p2431_p1, %p2430_p10 }
  0x99   : > { %p2433_p5 = pnand %p2432_p4, %p2426_p0 }
  0x9b   : > { %2436 = shalt.err (!%p2433_p5)
}
  0x9c   : > { %s2437_s16 = scalar_lea.vmem %s2846_s15, 128  ;;  %s2568_s5 = smov [#allocation2]  }
  0x9d   : > { %p2438_p11 = scmp.ne.s32.totalorder %s2846_s15, %s2437_s16  ;;  %s2442_s9 = sshll.u32 %s2568_s5, 4  ;;  %s2443_s9 = int_to_ptr.vmem [resolvable:$false] %s2442_s9 }
  0x9e   : > { %s2444_s26 = scalar_lea.vmem %s2443_s9, 256  ;;  %p2445_p7 = scmp.lt.s32.totalorder %s2846_s15, %s2443_s9 }
  0x9f   : > { %p2440_p13 = pnand %p2438_p11, %p3276_p8  ;;  %p2446_p12 = scmp.lt.s32.totalorder %s2444_s26, %s2437_s16 }
  0xa1   : > { %p2441_p3 = pneg %p2440_p13  ;;  %p2447_p2 = por %p2446_p12, %p2445_p7 }
  0xa3   : > { %p2448_p6 = pnand %p2447_p2, %p2441_p3 }
  0xa5   : > { %2451 = shalt.err (!%p2448_p6)
}
  0xa6   : > { %p3277_p0 = scmp.ne.s32.totalorder %s3268_s25, 0  ;;  %s420_s14 = scalar_lea.vmem [#allocation7], %s2717_s22 }
  0xa7   : > { %s427_s29 = sshll.u32 %s420_s14, 4  ;;  %s2452_s24 = scalar_lea.hbm %s2852_s11, 128  ;;  %s2884_s29 = int_to_ptr.vmem [resolvable:$true] %s427_s29 }
  0xa8   : > { %2185 = dma.hbm_to_vmem [thread:$0]  (!%p3277_p0), %s2843_s6, 128, %s2846_s15, %s2856_s20, %s3272_s30, %s3272_s30, %s3271_s17  }
  0xa9   : > { %p2453_p9 = scmp.ne.s32.totalorder %s2852_s11, %s2452_s24  ;;  %s2457_s10 = scalar_lea.hbm %s3207_s2, 256 }
  0xaa   : > { %p2458_p4 = scmp.lt.u32.totalorder %s2852_s11, %s3207_s2  ;;  %p2459_p5 = scmp.lt.u32.totalorder %s2457_s10, %s2452_s24 }
  0xab   : > { %p2455_p10 = pnand %p2453_p9, %p3276_p8  ;;  %p2461_p13 = scmp.lt.u32.totalorder %s2452_s24, %s2852_s11 }
  0xac   : > { %p2460_p11 = por %p2459_p5, %p2458_p4 }
  0xad   : > { %p2456_p1 = pneg %p2455_p10 }
  0xae   : > { %p2462_p3 = por %p2461_p13, %p2460_p11 }
  0xb0   : > { %p2463_p7 = pnand %p2462_p3, %p2456_p1 }
  0xb2   : > { %2466 = shalt.err (!%p2463_p7)
}
  0xb3   : > { %s2467_s22 = scalar_lea.vmem %s2884_s29, 128  ;;  %s2569_s6 = smov [#allocation7]  }
  0xb4   : > { %p2468_p12 = scmp.ne.s32.totalorder %s2884_s29, %s2467_s22  ;;  %s2472_s15 = sshll.u32 %s2569_s6, 4  ;;  %s2473_s15 = int_to_ptr.vmem [resolvable:$false] %s2472_s15 }
  0xb5   : > { %s2474_s20 = scalar_lea.vmem %s2473_s15, 256  ;;  %p2475_p9 = scmp.lt.s32.totalorder %s2884_s29, %s2473_s15 }
  0xb6   : > { %p2470_p2 = pnand %p2468_p12, %p3276_p8  ;;  %p2476_p10 = scmp.lt.s32.totalorder %s2474_s20, %s2467_s22 }
  0xb8   : > { %p2471_p6 = pneg %p2470_p2  ;;  %p2477_p4 = por %p2476_p10, %p2475_p9 }
  0xba   : > { %p2478_p5 = pnand %p2477_p4, %p2471_p6 }
  0xbc   : > { %2481 = shalt.err (!%p2478_p5)
}
  0xbd   : > { %2191 = dma.hbm_to_vmem [thread:$0]  (!%p3277_p0), %s2852_s11, 128, %s2884_s29, %s2767_s27, %s3272_s30, %s3272_s30, %s3271_s17  }
  0xbe   : > { %p3278_p8 = scmp.ne.s32.totalorder %s3262_s12, 0 }
  0xbf   : > { %s2914_s23 = sand.u32 (!%p3278_p8), 1, %s2552_s18   ;;  %p3279_p1 = scmp.ne.s32.totalorder (!%p3278_p8), %s3257_s28, 0 }
  0xc0   : > { %439 = sbr.rel (%p3278_p8) target bundleno = 3156 (0xc54), region = 64  ;;  %s2917_s16 = sshll.u32 (!%p3278_p8), %s2914_s23, 3 }
  0xc1   : > { %s442_s25 = scalar_lea.sflag (!%p3278_p8), [#allocation3], %s2914_s23  ;;  %s445_s5 = scalar_lea.vmem (!%p3278_p8), [#allocation2], %s2917_s16 }
  0xc7   : > { %2527 = dma.done.wait (%p3279_p1), %s442_s25, 128  }
  0xc8   : > { %2529 = vsyncadd (%p3279_p1), %s442_s25, 4294967168  ;;  %s450_s12 = sand.u32 1, %s2661_s21   ;;  %s454_s17 = scalar_lea.vmem [#allocation5], %s2917_s16 }
  0xc9   : > { %s451_s27 = scalar_lea.sflag [#allocation6], %s450_s12 }
  0xca   : > { %2531 = dma.done.wait (%p3279_p1), %s451_s27, 256  }
  0xcb   : > { %2533 = vsyncadd (%p3279_p1), %s451_s27, 4294967040  ;;  %s463_s30 = scalar_lea.vmem [#allocation7], %s2917_s16  ;;  %p3280_p0 = scmp.eq.s32.totalorder %s2661_s21, 0 }
  0xcd   : > { %2535 = dma.done.wait (%p3280_p0), [#allocation9], 512   ;;  %p3281_p11 = pmov %p3280_p0 }
  0xce   : > { %p3282_p13 = pmov %p3280_p0 }
  0xcf   : > { %2537 = vsyncadd (%p3281_p11), [#allocation9], 4294966784 }
  0xd0   : > { %2539 = dma.done.wait (%p3282_p13), [#allocation12], 16   ;;  %p3283_p3 = pmov %p3280_p0 }
  0xd1   : > { %v2570_v0 = vmov 0.0   ;;  %vm2571_vm0 = vmmov 0   ;;  %s3284_s9 = sld [smem:[#allocation28_spill]]  ;;  %v2267_v3 = vld [vmem:[#allocation8] sm:$0xff]   ;;  %v2269_v4 = vld [vmem:[#allocation8 + $0x8] sm:$0xff]   ;;  %vm563_vm1 = vcmask 261120  }
  0xd2   : > { %2541 = vsyncadd (%p3283_p3), [#allocation12], 4294967280  ;;  %2032 = vmatprep.subr.bf16.mxu1 %v2570_v0  ;;  %2024 = vmatprep.subr.bf16.mxu0 %v2570_v0  ;;  %v2268_v5 = vld [vmem:[%s454_s17] sm:$0xff]   ;;  %v2270_v6 = vld [vmem:[%s445_s5] sm:$0xff]   ;;  %s3285_s3 = sld [smem:[#allocation29_spill]]  ;;  %s3286_s4 = sld [smem:[#allocation27_spill]] }
  0xd3   : > { %2036 = vmatprep.mubr.msk.bf16.mxu1 %vm2571_vm0, %v2570_v0  ;;  %2028 = vmatprep.mubr.msk.bf16.mxu0 %vm2571_vm0, %v2570_v0  ;;  %v2271_v7 = vld [vmem:[#allocation10] sm:$0xff]   ;;  %v2272_v8 = vld [vmem:[#allocation10 + $0x8] sm:$0xff]   ;;  %vm770_vm2 = vcmask 64512   ;;  %s2572_s13 = smov 120   ;;  %v1938_v30 = vld [vmem:[#allocation11] ss:$0 sm:$0xff] }
  0xd4   : > { %2025 = vmatpush3.bf16.msra.mxu0 %v2267_v3  ;;  %v2273_v9 = vld [vmem:[%s463_s30] sm:$0xff]   ;;  %vm890_vm3 = vcmask 1043456   ;;  %s2573_s22 = smov 112   ;;  %s2574_s6 = smov 104   ;;  %vm1666_vm4 = vcmask 130048   ;;  %vm1669_vm5 = vcmask 195584  }
  0xd5   : > { %2026 = vmatprep.subr.bf16.mxu0 %v2570_v0  ;;  %s2575_s15 = smov 8   ;;  %s2576_s20 = smov 16  }
  0xd6   : > { %s3287_s5 = sld [smem:[#allocation30_spill]]  ;;  %s2577_s17 = smov 24  }
  0xd7   : > { %v2265_v1 = vld [vmem:[%s3284_s9] sm:$0xff]   ;;  %v2266_v2 = vld [vmem:[%s3284_s9 + $0x8] sm:$0xff]   ;;  %s1923_s30 = sshll.u32 %s2914_s23, 4  ;;  %s3288_s26 = sld [smem:[#allocation31_spill]] }
  0xd8   : > { %2033 = vmatpush3.bf16.msra.mxu1 %v2265_v1  ;;  %2027 = vmatpush3.bf16.msra.mxu0 %v2269_v4  ;;  %v1931_v10 = vld [vmem:[%s3285_s3] ss:$0 sm:$0xff]  ;;  %s523_s14 = scalar_lea.vmem [#allocation13], %s1923_s30  ;;  %s3289_s29 = sld [smem:[#allocation23_spill]] }
  0xd9   : > { %2034 = vmatprep.subr.bf16.mxu1 %v2570_v0  ;;  %2040 = vmatprep.subr.bf16.mxu0 %v2570_v0  ;;  %v1924_v15 = vld [vmem:[%s3286_s4] ss:$0 sm:$0xff]  ;;  %s1756_s24 = sshll.u32 %s523_s14, 4  ;;  %s1979_s3 = sshll.u32 %s2661_s21, 8  ;;  %s3153_s24 = int_to_ptr.vmem [resolvable:$true] %s1756_s24 }
  0xda   : > { %s3290_s4 = sld [smem:[#allocation32_spill]]  ;;  %s1743_s21 = scalar_lea.sflag [#allocation4], %s2914_s23 }
  0xdb   : > { %2029 = vmatmul.mubr.msk.bf16.vlgmr.msra.gmra.mrb[0].mxu0 %vm563_vm1, %v2270_v6 }
  0xdc   : > { %2035 = vmatpush3.bf16.msra.mxu1 %v2266_v2  ;;  %2041 = vmatpush3.bf16.msra.mxu0 %v2271_v7 }
  0xdd   : > { %2048 = vmatprep.subr.bf16.mxu1 %v2570_v0  ;;  %2044 = vmatprep.mubr.msk.bf16.mxu0 %vm2571_vm0, %v2570_v0 }
  0xde   : > { %2042 = vmatprep.subr.bf16.mxu0 %v2570_v0  ;;  %p3291_p12 = scmp.ne.s32.totalorder %s3289_s29, 0 }
  0xdf   : > { %2037 = vmatmul.mubr.msk.bf16.vlgmr.msra.gmra.mrb[0].mxu1 %vm563_vm1, %v2268_v5 }
  0xe0   : > { %2050 = vmatprep.mubr.msk.bf16.mxu1 %vm2571_vm0, %v2570_v0  ;;  %2043 = vmatpush3.bf16.msra.mxu0 %v2272_v8 }
  0xe1   : > { %2054 = vmatprep.subr.bf16.mxu0 %v2570_v0 }
  0xe3   : > { %2045 = vmatmul.mubr.msk.bf16.vlgmr.msra.gmra.mrb[4].mxu0 %vm563_vm1, %v2273_v9 }
  0xe4   : > { %2056 = vmatprep.mubr.msk.bf16.mxu0 %vm2571_vm0, %v2570_v0 }
 0x1ae   : > { %v601_v16 = vpop.f32.mrb[0].mxu0 }
 0x1af   : > { %v2030_v20 = vpop.f32.mrb[1].mxu0  ;;  %v602_v23 = vadd.f32 %v1924_v15, %v601_v16 }
 0x1b0   : > { %v604_v21 = vpop.f32.mrb[2].mxu0 }
 0x1b1   : > { %v2031_v25 = vpop.f32.mrb[3].mxu0  ;;  %v2986_v27 = vpack.c.bf16 %v602_v23, %v602_v23  ;;  %v605_v28 = vadd.f32 %v1924_v15, %v604_v21 }
 0x1b2   : > { %v679_v11 = vpop.f32.mrb[0].mxu1 }
 0x1b3   : > { %v680_v12 = vadd.f32 %v1931_v10, %v679_v11  ;;  %v2038_v13 = vpop.f32.mrb[1].mxu1  ;;  %v2989_v29 = vpack.c.bf16 %v605_v28, %v605_v28 }
 0x1b4   : > { %v682_v14 = vpop.f32.mrb[2].mxu1 }
 0x1b5   : > { %v2975_v17 = vpack.c.bf16 %v680_v12, %v680_v12  ;;  %v683_v18 = vadd.f32 %v1931_v10, %v682_v14  ;;  %v2039_v19 = vpop.f32.mrb[3].mxu1 }
 0x1b6   : > { %v757_v31 = vpop.f32.mrb[4].mxu0 }
 0x1b7   : > { %v2977_v22 = vpack.c.bf16 %v683_v18, %v683_v18  ;;  %v775_v24 = vsel %vm770_vm2, %v2975_v17, 0  ;;  %v758_v32 = vadd.f32 %v1938_v30, %v757_v31  ;;  %v2046_v33 = vpop.f32.mrb[5].mxu0 }
 0x1b8   : > { %2049 = vmatpush3.bf16.xpose.msra.mxu1 %v775_v24  ;;  %v760_v34 = vpop.f32.mrb[6].mxu0 }
 0x1b9   : > { %1032 = vrot.lane.b32.xlu1 %v2977_v22, %s2572_s13  ;;  %v821_v26 = vsel %vm770_vm2, %v2977_v22, 0  ;;  %2060 = vmatprep.subr.bf16.mxu1 %v2570_v0  ;;  %v761_v35 = vadd.f32 %v1938_v30, %v760_v34  ;;  %v2047_v36 = vpop.f32.mrb[7].mxu0  ;;  %v2999_v37 = vpack.c.bf16 %v758_v32, %v758_v32 }
 0x1ba   : > { %2055 = vmatpush3.bf16.xpose.msra.mxu0 %v821_v26 }
 0x1bb   : > { %2066 = vmatprep.subr.bf16.mxu0 %v2570_v0  ;;  %v3001_v38 = vpack.c.bf16 %v761_v35, %v761_v35  ;;  %v892_v39 = vsel %vm890_vm3, %v2999_v37, 0 }
 0x1bd   : > { %v938_v40 = vsel %vm890_vm3, %v3001_v38, 0 }
 0x1bf   : > { %2051 = vmatmul.mubr.msk.bf16.vlgmr.msra.gmra.mrb[4].mxu1 %vm770_vm2, %v2986_v27 }
 0x1c0   : > { %2062 = vmatprep.mubr.msk.bf16.mxu1 %vm2571_vm0, %v2570_v0  ;;  %2061 = vmatpush3.bf16.msra.mxu1 %v892_v39 }
 0x1c1   : > { %2057 = vmatmul.mubr.msk.bf16.vlgmr.msra.gmra.mrb[8].mxu0 %vm770_vm2, %v2989_v29  ;;  %2072 = vmatprep.subr.bf16.mxu1 %v2570_v0 }
 0x1c2   : > { %2068 = vmatprep.mubr.msk.bf16.mxu0 %vm2571_vm0, %v2570_v0  ;;  %2067 = vmatpush3.bf16.msra.mxu0 %v938_v40 }
 0x1c3   : > { %2078 = vmatprep.subr.bf16.mxu0 %v2570_v0 }
 0x22b   : > { %v1033_v61 = vpop.permute.xlu1 %1032 }
 0x22c   : > { %v1038_v9 = vsel %vm770_vm2, %v1033_v61, 0 }
 0x292   : > { %v811_v41 = vpop.f32.mrb[4].mxu1 }
 0x293   : > { %v2052_v42 = vpop.f32.mrb[5].mxu1  ;;  %v863_v43 = vsel %vm770_vm2, %v811_v41, -inf }
 0x294   : > { %864 = vmax.xlane.f32.xlu0 %v863_v43  ;;  %v814_v44 = vpop.f32.mrb[6].mxu1  ;;  %v857_v45 = vpop.f32.mrb[8].mxu0 }
 0x295   : > { %v2053_v46 = vpop.f32.mrb[7].mxu1  ;;  %v2058_v47 = vpop.f32.mrb[9].mxu0  ;;  %v866_v50 = vsel %vm770_vm2, %v857_v45, -inf }
 0x296   : > { %v860_v48 = vpop.f32.mrb[10].mxu0 }
 0x297   : > { %v2059_v49 = vpop.f32.mrb[11].mxu0 }
 0x298   : > { %867 = vmax.xlane.f32.xlu0 %v866_v50 }
 0x2ae   : > { %982 = vrot.lane.b32.xlu0 %v2975_v17, %s2572_s13 }
 0x321   : > { %v865_v51 = vpop.xlane.xlu0 %864 }
 0x322   : > { %v869_v52 = vsub.f32 %v811_v41, %v865_v51 }
 0x324   : > { %v871_v53 = vmul.f32 1.442695, %v869_v52 }
 0x325   : > { %v868_v54 = vpop.xlane.xlu0 %867 }
 0x326   : > { %2276 = vpow2.f32 %v871_v53  ;;  %v870_v55 = vsub.f32 %v857_v45, %v868_v54 }
 0x328   : > { %v873_v56 = vmul.f32 1.442695, %v870_v55 }
 0x329   : > { %v983_v3 = vpop.permute.xlu0 %982 }
 0x32a   : > { %2278 = vpow2.f32 %v873_v56  ;;  %v988_v6 = vsel %vm770_vm2, %v983_v3, 0 }
 0x330   : > { %v2277_v57 = vpop.eup %2276 }
 0x331   : > { %v875_v58 = vsel %vm770_vm2, %v2277_v57, 0.0 }
 0x332   : > { %876 = vadd.xlane.f32.xlu1 %v875_v58 }
 0x334   : > { %v2279_v59 = vpop.eup %2278 }
 0x335   : > { %v878_v60 = vsel %vm770_vm2, %v2279_v59, 0.0 }
 0x336   : > { %879 = vadd.xlane.f32.xlu1 %v878_v60 }
 0x347   : > { %980 = vrot.lane.b32.xlu1 %v2986_v27, %s2572_s13 }
 0x34b   : > { %1030 = vrot.lane.b32.xlu1 %v2989_v29, %s2572_s13 }
 0x3bf   : > { %v877_v62 = vpop.xlane.xlu1 %876 }
 0x3c0   : > { %2280 = vrcp.f32 %v877_v62 }
 0x3c3   : > { %v880_v63 = vpop.xlane.xlu1 %879 }
 0x3c4   : > { %2282 = vrcp.f32 %v880_v63 }
 0x3c7   : > { %v981_v10 = vpop.permute.xlu1 %980 }
 0x3ca   : > { %v2281_v1 = vpop.eup %2280 }
 0x3cb   : > { %v883_v2 = vmul.f32 %v2281_v1, %v2277_v57  ;;  %v1031_v11 = vpop.permute.xlu1 %1030 }
 0x3cd   : > { %v885_v4 = vpack.c.bf16 %v883_v2, %v883_v2 }
 0x3ce   : > { %v2283_v5 = vpop.eup %2282 }
 0x3cf   : > { %v884_v7 = vmul.f32 %v2283_v5, %v2279_v59  ;;  %2063 = vmatmul.mubr.msk.bf16.vlgmr.msra.gmra.mrb[8].mxu1 %vm770_vm2, %v885_v4 }
 0x3d0   : > { %2073 = vmatpush3.bf16.xpose.msra.mxu1 %v988_v6  ;;  %2074 = vmatprep.mubr.msk.bf16.mxu1 %vm2571_vm0, %v2570_v0 }
 0x3d1   : > { %v886_v8 = vpack.c.bf16 %v884_v7, %v884_v7  ;;  %2084 = vmatprep.subr.bf16.mxu1 %v2570_v0 }
 0x3d3   : > { %2069 = vmatmul.mubr.msk.bf16.vlgmr.msra.gmra.mrb[12].mxu0 %vm770_vm2, %v886_v8 }
 0x3d4   : > { %2079 = vmatpush3.bf16.xpose.msra.mxu0 %v1038_v9  ;;  %2080 = vmatprep.mubr.msk.bf16.mxu0 %vm2571_vm0, %v2570_v0 }
 0x3d5   : > { %2090 = vmatprep.subr.bf16.mxu0 %v2570_v0 }
 0x3d7   : > { %2075 = vmatmul.mubr.msk.bf16.vlgmr.msra.gmra.mrb[12].mxu1 %vm770_vm2, %v981_v10 }
 0x3d8   : > { %2086 = vmatprep.mubr.msk.bf16.mxu1 %vm2571_vm0, %v2570_v0 }
 0x3db   : > { %2081 = vmatmul.mubr.msk.bf16.vlgmr.msra.gmra.mrb[16].mxu0 %vm770_vm2, %v1031_v11 }
 0x3dc   : > { %2092 = vmatprep.mubr.msk.bf16.mxu0 %vm2571_vm0, %v2570_v0 }
 0x4a2   : > { %v3035_v12 = vpop.f32.mrb[8].mxu1 }
 0x4a3   : > { %v2064_v13 = vpop.f32.mrb[9].mxu1 }
 0x4a4   : > { %v931_v14 = vpop.f32.mrb[10].mxu1 }
 0x4a5   : > { %v2065_v15 = vpop.f32.mrb[11].mxu1 }
 0x4a6   : > { %v3037_v16 = vpop.f32.mrb[12].mxu0 }
 0x4a7   : > { %v2070_v18 = vpop.f32.mrb[13].mxu0 }
 0x4a8   : > { %v977_v19 = vpop.f32.mrb[14].mxu0 }
 0x4a9   : > { %v2071_v20 = vpop.f32.mrb[15].mxu0 }
 0x4aa   : > { %v1024_v21 = vpop.f32.mrb[12].mxu1 }
 0x4ab   : > { %v2076_v23 = vpop.f32.mrb[13].mxu1  ;;  %v1080_v24 = vsel %vm770_vm2, %v1024_v21, -inf }
 0x4ac   : > { %1081 = vmax.xlane.f32.xlu0 %v1080_v24  ;;  %v1027_v25 = vpop.f32.mrb[14].mxu1 }
 0x4ad   : > { %v2077_v26 = vpop.f32.mrb[15].mxu1 }
 0x4ae   : > { %v1074_v28 = vpop.f32.mrb[16].mxu0 }
 0x4af   : > { %v2082_v30 = vpop.f32.mrb[17].mxu0  ;;  %v1083_v31 = vsel %vm770_vm2, %v1074_v28, -inf }
 0x4b0   : > { %1084 = vmax.xlane.f32.xlu1 %v1083_v31  ;;  %v1077_v32 = vpop.f32.mrb[18].mxu0 }
 0x4b1   : > { %v2083_v33 = vpop.f32.mrb[19].mxu0 }
 0x4c1   : > { %1152 = vrot.lane.b32.xlu1 %v3001_v38, %s2572_s13 }
 0x4c5   : > { %1202 = vrot.lane.b32.xlu1 %v2975_v17, %s2573_s22 }
 0x4c9   : > { %1252 = vrot.lane.b32.xlu1 %v2977_v22, %s2573_s22 }
 0x4cd   : > { %1250 = vrot.lane.b32.xlu1 %v2989_v29, %s2573_s22 }
 0x539   : > { %v1082_v34 = vpop.xlane.xlu0 %1081 }
 0x53a   : > { %v1086_v35 = vsub.f32 %v1024_v21, %v1082_v34 }
 0x53c   : > { %v1088_v36 = vmul.f32 1.442695, %v1086_v35 }
 0x53d   : > { %v1085_v39 = vpop.xlane.xlu1 %1084 }
 0x53e   : > { %2284 = vpow2.f32 %v1088_v36  ;;  %v1087_v40 = vsub.f32 %v1074_v28, %v1085_v39 }
 0x540   : > { %v1090_v41 = vmul.f32 1.442695, %v1087_v40 }
 0x541   : > { %v1153_v42 = vpop.permute.xlu1 %1152 }
 0x542   : > { %2286 = vpow2.f32 %v1090_v41  ;;  %v1158_v43 = vsel %vm890_vm3, %v1153_v42, 0 }
 0x543   : > { %2091 = vmatpush3.bf16.msra.mxu0 %v1158_v43 }
 0x544   : > { %2102 = vmatprep.subr.bf16.mxu0 %v2570_v0 }
 0x545   : > { %v1203_v53 = vpop.permute.xlu1 %1202 }
 0x546   : > { %v1208_v59 = vsel %vm770_vm2, %v1203_v53, 0 }
 0x548   : > { %v2285_v44 = vpop.eup %2284 }
 0x549   : > { %v1092_v45 = vsel %vm770_vm2, %v2285_v44, 0.0  ;;  %v1253_v58 = vpop.permute.xlu1 %1252 }
 0x54a   : > { %1093 = vadd.xlane.f32.xlu0 %v1092_v45  ;;  %v1258_v61 = vsel %vm770_vm2, %v1253_v58, 0 }
 0x54c   : > { %v2287_v46 = vpop.eup %2286 }
 0x54d   : > { %v1095_v47 = vsel %vm770_vm2, %v2287_v46, 0.0  ;;  %v1251_v63 = vpop.permute.xlu1 %1250 }
 0x54e   : > { %1096 = vadd.xlane.f32.xlu0 %v1095_v47 }
 0x564   : > { %1104 = vrot.lane.b32.xlu0 %v2999_v37, %s2572_s13  ;;  %s3159_s13 = scalar_lea.hbm %s3290_s4, %s1979_s3 }
 0x568   : > { %1200 = vrot.lane.b32.xlu0 %v2986_v27, %s2573_s22 }
 0x5d7   : > { %v1094_v48 = vpop.xlane.xlu0 %1093 }
 0x5d8   : > { %2288 = vrcp.f32 %v1094_v48 }
 0x5db   : > { %v1097_v49 = vpop.xlane.xlu0 %1096 }
 0x5dc   : > { %2290 = vrcp.f32 %v1097_v49 }
 0x5df   : > { %v1105_v50 = vpop.permute.xlu0 %1104 }
 0x5e0   : > { %v1110_v51 = vsel %vm890_vm3, %v1105_v50, 0 }
 0x5e1   : > { %2085 = vmatpush3.bf16.msra.mxu1 %v1110_v51 }
 0x5e2   : > { %v2289_v52 = vpop.eup %2288  ;;  %2096 = vmatprep.subr.bf16.mxu1 %v2570_v0 }
 0x5e3   : > { %v1100_v54 = vmul.f32 %v2289_v52, %v2285_v44  ;;  %v1201_v62 = vpop.permute.xlu0 %1200 }
 0x5e5   : > { %v1102_v55 = vpack.c.bf16 %v1100_v54, %v1100_v54 }
 0x5e6   : > { %v2291_v56 = vpop.eup %2290 }
 0x5e7   : > { %v1101_v57 = vmul.f32 %v2291_v56, %v2287_v46  ;;  %2087 = vmatmul.mubr.msk.bf16.vlgmr.msra.gmra.mrb[16].mxu1 %vm770_vm2, %v1102_v55 }
 0x5e8   : > { %2098 = vmatprep.mubr.msk.bf16.mxu1 %vm2571_vm0, %v2570_v0 }
 0x5e9   : > { %v1103_v60 = vpack.c.bf16 %v1101_v57, %v1101_v57 }
 0x5ea   : > { %2097 = vmatpush3.bf16.xpose.msra.mxu1 %v1208_v59 }
 0x5eb   : > { %2093 = vmatmul.mubr.msk.bf16.vlgmr.msra.gmra.mrb[20].mxu0 %vm770_vm2, %v1103_v60  ;;  %2108 = vmatprep.subr.bf16.mxu1 %v2570_v0 }
 0x5ec   : > { %2103 = vmatpush3.bf16.xpose.msra.mxu0 %v1258_v61  ;;  %2104 = vmatprep.mubr.msk.bf16.mxu0 %vm2571_vm0, %v2570_v0 }
 0x5ed   : > { %2114 = vmatprep.subr.bf16.mxu0 %v2570_v0 }
 0x5f1   : > { %2099 = vmatmul.mubr.msk.bf16.vlgmr.msra.gmra.mrb[20].mxu1 %vm770_vm2, %v1201_v62 }
 0x5f2   : > { %2110 = vmatprep.mubr.msk.bf16.mxu1 %vm2571_vm0, %v2570_v0 }
 0x5f3   : > { %2105 = vmatmul.mubr.msk.bf16.vlgmr.msra.gmra.mrb[24].mxu0 %vm770_vm2, %v1251_v63 }
 0x5f4   : > { %2116 = vmatprep.mubr.msk.bf16.mxu0 %vm2571_vm0, %v2570_v0 }
 0x6ba   : > { %v3075_v1 = vpop.f32.mrb[16].mxu1 }
 0x6bb   : > { %v2088_v2 = vpop.f32.mrb[17].mxu1 }
 0x6bc   : > { %v1149_v3 = vpop.f32.mrb[18].mxu1 }
 0x6bd   : > { %v2089_v4 = vpop.f32.mrb[19].mxu1 }
 0x6be   : > { %v3077_v5 = vpop.f32.mrb[20].mxu0 }
 0x6bf   : > { %v2250_v6 = vpack.i.bf16 %v3077_v5, %v3075_v1  ;;  %v2094_v7 = vpop.f32.mrb[21].mxu0 }
 0x6c0   : > { %v1197_v8 = vpop.f32.mrb[22].mxu0 }
 0x6c1   : > { %v2095_v9 = vpop.f32.mrb[23].mxu0 }
 0x6c4   : > { %v1244_v10 = vpop.f32.mrb[20].mxu1 }
 0x6c5   : > { %v2100_v11 = vpop.f32.mrb[21].mxu1  ;;  %v1300_v13 = vsel %vm770_vm2, %v1244_v10, -inf }
 0x6c6   : > { %1301 = vmax.xlane.f32.xlu0 %v1300_v13  ;;  %v1247_v14 = vpop.f32.mrb[22].mxu1  ;;  %v1294_v15 = vpop.f32.mrb[24].mxu0 }
 0x6c7   : > { %v2101_v18 = vpop.f32.mrb[23].mxu1  ;;  %v2106_v19 = vpop.f32.mrb[25].mxu0  ;;  %v1303_v20 = vsel %vm770_vm2, %v1294_v15, -inf }
 0x6c8   : > { %1304 = vmax.xlane.f32.xlu1 %v1303_v20  ;;  %v1297_v21 = vpop.f32.mrb[26].mxu0 }
 0x6c9   : > { %v2107_v23 = vpop.f32.mrb[27].mxu0 }
 0x6d9   : > { %1372 = vrot.lane.b32.xlu1 %v3001_v38, %s2573_s22 }
 0x6dd   : > { %1422 = vrot.lane.b32.xlu1 %v2975_v17, %s2574_s6 }
 0x6e1   : > { %1472 = vrot.lane.b32.xlu1 %v2977_v22, %s2574_s6 }
 0x6e5   : > { %1470 = vrot.lane.b32.xlu1 %v2989_v29, %s2574_s6 }
 0x753   : > { %v1302_v24 = vpop.xlane.xlu0 %1301 }
 0x754   : > { %v1306_v25 = vsub.f32 %v1244_v10, %v1302_v24 }
 0x755   : > { %v1305_v26 = vpop.xlane.xlu1 %1304 }
 0x756   : > { %v1308_v28 = vmul.f32 1.442695, %v1306_v25  ;;  %v1307_v30 = vsub.f32 %v1294_v15, %v1305_v26 }
 0x758   : > { %2292 = vpow2.f32 %v1308_v28  ;;  %v1310_v31 = vmul.f32 1.442695, %v1307_v30 }
 0x759   : > { %v1373_v32 = vpop.permute.xlu1 %1372 }
 0x75a   : > { %2294 = vpow2.f32 %v1310_v31  ;;  %v1378_v33 = vsel %vm890_vm3, %v1373_v32, 0 }
 0x75b   : > { %2115 = vmatpush3.bf16.msra.mxu0 %v1378_v33 }
 0x75c   : > { %2126 = vmatprep.subr.bf16.mxu0 %v2570_v0 }
 0x75d   : > { %v1423_v42 = vpop.permute.xlu1 %1422 }
 0x761   : > { %v1473_v47 = vpop.permute.xlu1 %1472 }
 0x762   : > { %v2293_v17 = vpop.eup %2292  ;;  %v1478_v49 = vsel %vm770_vm2, %v1473_v47, 0 }
 0x763   : > { %v1312_v22 = vsel %vm770_vm2, %v2293_v17, 0.0 }
 0x764   : > { %v2295_v34 = vpop.eup %2294  ;;  %1313 = vadd.xlane.f32.xlu0 %v1312_v22  ;;  %v2275_v22 = vld [vmem:[%s3287_s5 + $0x8] sm:$0xff]  }
 0x765   : > { %v1315_v29 = vsel %vm770_vm2, %v2295_v34, 0.0  ;;  %v1471_v51 = vpop.permute.xlu1 %1470 }
 0x768   : > { %1316 = vadd.xlane.f32.xlu0 %v1315_v29 }
 0x77e   : > { %1324 = vrot.lane.b32.xlu0 %v2999_v37, %s2573_s22  ;;  %s2482_s22 = scalar_lea.vmem %s3153_s24, 256 }
 0x77f   : > { %p2483_p7 = scmp.ne.s32.totalorder %s3153_s24, %s2482_s22 }
 0x781   : > { %p2484_p2 = pnand %p2483_p7, %p3291_p12 }
 0x782   : > { %1420 = vrot.lane.b32.xlu0 %v2986_v27, %s2574_s6  ;;  %v1428_v27 = vsel %vm770_vm2, %v1423_v42, 0 }
 0x783   : > { %p2485_p6 = pneg %p2484_p2 }
 0x7f1   : > { %v1314_v35 = vpop.xlane.xlu0 %1313 }
 0x7f2   : > { %2296 = vrcp.f32 %v1314_v35 }
 0x7f5   : > { %v1317_v36 = vpop.xlane.xlu0 %1316 }
 0x7f6   : > { %2298 = vrcp.f32 %v1317_v36 }
 0x7f9   : > { %v1325_v39 = vpop.permute.xlu0 %1324 }
 0x7fa   : > { %v1330_v40 = vsel %vm890_vm3, %v1325_v39, 0 }
 0x7fb   : > { %2109 = vmatpush3.bf16.msra.mxu1 %v1330_v40 }
 0x7fc   : > { %v2297_v41 = vpop.eup %2296  ;;  %2120 = vmatprep.subr.bf16.mxu1 %v2570_v0 }
 0x7fd   : > { %v1320_v43 = vmul.f32 %v2297_v41, %v2293_v17  ;;  %v1421_v50 = vpop.permute.xlu0 %1420  ;;  %v2274_v17 = vld [vmem:[%s3287_s5] sm:$0xff]  }
 0x7ff   : > { %v1322_v44 = vpack.c.bf16 %v1320_v43, %v1320_v43 }
 0x800   : > { %v2299_v45 = vpop.eup %2298 }
 0x801   : > { %v1321_v46 = vmul.f32 %v2299_v45, %v2295_v34  ;;  %2111 = vmatmul.mubr.msk.bf16.vlgmr.msra.gmra.mrb[24].mxu1 %vm770_vm2, %v1322_v44 }
 0x802   : > { %2122 = vmatprep.mubr.msk.bf16.mxu1 %vm2571_vm0, %v2570_v0 }
 0x803   : > { %v1323_v48 = vpack.c.bf16 %v1321_v46, %v1321_v46 }
 0x804   : > { %2121 = vmatpush3.bf16.xpose.msra.mxu1 %v1428_v27 }
 0x805   : > { %2117 = vmatmul.mubr.msk.bf16.vlgmr.msra.gmra.mrb[28].mxu0 %vm770_vm2, %v1323_v48  ;;  %2132 = vmatprep.subr.bf16.mxu1 %v2570_v0 }
 0x806   : > { %2127 = vmatpush3.bf16.xpose.msra.mxu0 %v1478_v49  ;;  %2128 = vmatprep.mubr.msk.bf16.mxu0 %vm2571_vm0, %v2570_v0 }
 0x807   : > { %2138 = vmatprep.subr.bf16.mxu0 %v2570_v0 }
 0x80b   : > { %2123 = vmatmul.mubr.msk.bf16.vlgmr.msra.gmra.mrb[28].mxu1 %vm770_vm2, %v1421_v50 }
 0x80c   : > { %2134 = vmatprep.mubr.msk.bf16.mxu1 %vm2571_vm0, %v2570_v0 }
 0x80d   : > { %2129 = vmatmul.mubr.msk.bf16.vlgmr.msra.gmra.mrb[32].mxu0 %vm770_vm2, %v1471_v51 }
 0x80e   : > { %2140 = vmatprep.mubr.msk.bf16.mxu0 %vm2571_vm0, %v2570_v0 }
 0x8d4   : > { %v1366_v52 = vpop.f32.mrb[24].mxu1 }
 0x8d5   : > { %v2112_v53 = vpop.f32.mrb[25].mxu1 }
 0x8d6   : > { %v1369_v54 = vpop.f32.mrb[26].mxu1 }
 0x8d7   : > { %v2113_v55 = vpop.f32.mrb[27].mxu1 }
 0x8d8   : > { %v1414_v56 = vpop.f32.mrb[28].mxu0 }
 0x8d9   : > { %v2255_v57 = vpack.i.bf16 %v1414_v56, %v1366_v52  ;;  %v2118_v58 = vpop.f32.mrb[29].mxu0 }
 0x8da   : > { %v1417_v59 = vpop.f32.mrb[30].mxu0  ;;  %v1961_v58 = vld [vmem:[%s3288_s26] ss:$0 sm:$0xff] }
 0x8db   : > { %v2119_v60 = vpop.f32.mrb[31].mxu0 }
 0x8de   : > { %v1464_v61 = vpop.f32.mrb[28].mxu1 }
 0x8df   : > { %v2124_v62 = vpop.f32.mrb[29].mxu1  ;;  %v1520_v63 = vsel %vm770_vm2, %v1464_v61, -inf }
 0x8e0   : > { %1521 = vmax.xlane.f32.xlu0 %v1520_v63  ;;  %v1467_v2 = vpop.f32.mrb[30].mxu1  ;;  %v1514_v3 = vpop.f32.mrb[32].mxu0 }
 0x8e1   : > { %v2125_v4 = vpop.f32.mrb[31].mxu1  ;;  %v2130_v7 = vpop.f32.mrb[33].mxu0  ;;  %v1523_v8 = vsel %vm770_vm2, %v1514_v3, -inf }
 0x8e2   : > { %1524 = vmax.xlane.f32.xlu1 %v1523_v8  ;;  %v1517_v9 = vpop.f32.mrb[34].mxu0 }
 0x8e3   : > { %v2131_v10 = vpop.f32.mrb[35].mxu0 }
 0x8f3   : > { %1592 = vrot.lane.b32.xlu1 %v3001_v38, %s2574_s6 }
 0x8f7   : > { %2251 = vrot.lane.b32.xlu1 %v2250_v6, %s2575_s15 }
 0x8fb   : > { %2256 = vrot.lane.b32.xlu1 %v2255_v57, %s2576_s20 }
 0x96d   : > { %v1522_v11 = vpop.xlane.xlu0 %1521 }
 0x96e   : > { %v1526_v13 = vsub.f32 %v1464_v61, %v1522_v11 }
 0x96f   : > { %v1525_v14 = vpop.xlane.xlu1 %1524 }
 0x970   : > { %v1528_v15 = vmul.f32 1.442695, %v1526_v13  ;;  %v1527_v18 = vsub.f32 %v1514_v3, %v1525_v14 }
 0x972   : > { %2300 = vpow2.f32 %v1528_v15  ;;  %v1530_v19 = vmul.f32 1.442695, %v1527_v18 }
 0x973   : > { %v1593_v20 = vpop.permute.xlu1 %1592 }
 0x974   : > { %2302 = vpow2.f32 %v1530_v19  ;;  %v1598_v21 = vsel %vm890_vm3, %v1593_v20, 0 }
 0x975   : > { %2139 = vmatpush3.bf16.msra.mxu0 %v1598_v21 }
 0x977   : > { %v2252_v44 = vpop.permute.xlu1 %2251 }
 0x978   : > { %v2254_v46 = vunpack.i.h.bf16 %v2252_v44 }
 0x97a   : > { %v1665_v49 = vsel %vm770_vm2, %v3037_v16, %v2254_v46 }
 0x97b   : > { %v2257_v45 = vpop.permute.xlu1 %2256 }
 0x97c   : > { %v2301_v38 = vpop.eup %2300  ;;  %v2259_v47 = vunpack.i.h.bf16 %v2257_v45  ;;  %v2258_v27 = vunpack.i.l.bf16 %v2257_v45 }
 0x97d   : > { %v1532_v23 = vsel %vm770_vm2, %v2301_v38, 0.0 }
 0x97e   : > { %v2303_v24 = vpop.eup %2302  ;;  %1533 = vadd.xlane.f32.xlu0 %v1532_v23  ;;  %v1668_v54 = vsel %vm1666_vm4, %v1665_v49, %v2259_v47 }
 0x97f   : > { %v1535_v1 = vsel %vm770_vm2, %v2303_v24, 0.0 }
 0x982   : > { %1536 = vadd.xlane.f32.xlu0 %v1535_v1 }
 0x998   : > { %1544 = vrot.lane.b32.xlu0 %v2999_v37, %s2574_s6  ;;  %s2578_s6 = smov [#allocation13]  }
 0x999   : > { %s2486_s20 = sshll.u32 %s2578_s6, 4  ;;  %s2487_s20 = int_to_ptr.vmem [resolvable:$false] %s2486_s20 }
 0x99a   : > { %s2488_s16 = scalar_lea.vmem %s2487_s20, 512  ;;  %p2489_p9 = scmp.lt.s32.totalorder %s3153_s24, %s2487_s20 }
 0x99b   : > { %p2490_p10 = scmp.lt.s32.totalorder %s2488_s16, %s2482_s22 }
 0x99d   : > { %p2491_p4 = por %p2490_p10, %p2489_p9 }
 0x99f   : > { %p2492_p5 = pnand %p2491_p4, %p2485_p6 }
 0xa0b   : > { %v1534_v5 = vpop.xlane.xlu0 %1533 }
 0xa0c   : > { %2304 = vrcp.f32 %v1534_v5 }
 0xa0f   : > { %v1537_v6 = vpop.xlane.xlu0 %1536 }
 0xa10   : > { %2306 = vrcp.f32 %v1537_v6 }
 0xa13   : > { %v1545_v25 = vpop.permute.xlu0 %1544 }
 0xa14   : > { %v1550_v26 = vsel %vm890_vm3, %v1545_v25, 0 }
 0xa15   : > { %2133 = vmatpush3.bf16.msra.mxu1 %v1550_v26 }
 0xa16   : > { %v2305_v28 = vpop.eup %2304  ;;  %2144 = vmatprep.subr.bf16.mxu1 %v2570_v0 }
 0xa17   : > { %v1540_v30 = vmul.f32 %v2305_v28, %v2301_v38 }
 0xa19   : > { %v1542_v31 = vpack.c.bf16 %v1540_v30, %v1540_v30 }
 0xa1a   : > { %v2307_v32 = vpop.eup %2306 }
 0xa1b   : > { %v1541_v33 = vmul.f32 %v2307_v32, %v2303_v24  ;;  %2135 = vmatmul.mubr.msk.bf16.vlgmr.msra.gmra.mrb[32].mxu1 %vm770_vm2, %v1542_v31 }
 0xa1c   : > { %2148 = vmatprep.mubr.msk.bf16.mxu1 %vm2571_vm0, %v2570_v0  ;;  %2145 = vmatpush3.bf16.msra.mxu1 %v2274_v17 }
 0xa1d   : > { %v1543_v37 = vpack.c.bf16 %v1541_v33, %v1541_v33  ;;  %2146 = vmatprep.subr.bf16.mxu1 %v2570_v0  ;;  %v2253_v0 = vunpack.i.l.bf16 %v2252_v44 }
 0xa1f   : > { %2141 = vmatmul.mubr.msk.bf16.vlgmr.msra.gmra.mrb[36].mxu0 %vm770_vm2, %v1543_v37  ;;  %v1664_v50 = vsel %vm770_vm2, %v3035_v12, %v2253_v0 }
 0xa20   : > { %2147 = vmatpush3.bf16.msra.mxu1 %v2275_v22  ;;  %v1667_v53 = vsel %vm1666_vm4, %v1664_v50, %v2258_v27 }
 0xaee   : > { %v1586_v34 = vpop.f32.mrb[32].mxu1 }
 0xaef   : > { %v2136_v29 = vpop.f32.mrb[33].mxu1 }
 0xaf0   : > { %v1589_v35 = vpop.f32.mrb[34].mxu1 }
 0xaf1   : > { %v2137_v36 = vpop.f32.mrb[35].mxu1 }
 0xaf2   : > { %v1634_v39 = vpop.f32.mrb[36].mxu0 }
 0xaf3   : > { %v2260_v40 = vpack.i.bf16 %v1634_v39, %v1586_v34  ;;  %v2142_v41 = vpop.f32.mrb[37].mxu0 }
 0xaf4   : > { %v1637_v42 = vpop.f32.mrb[38].mxu0 }
 0xaf5   : > { %2261 = vrot.lane.b32.xlu0 %v2260_v40, %s2577_s17  ;;  %v2143_v43 = vpop.f32.mrb[39].mxu0 }
 0xb67   : > { %v2262_v48 = vpop.permute.xlu0 %2261 }
 0xb68   : > { %v2264_v51 = vunpack.i.h.bf16 %v2262_v48  ;;  %v2263_v52 = vunpack.i.l.bf16 %v2262_v48 }
 0xb6a   : > { %v1671_v55 = vsel %vm1669_vm5, %v1668_v54, %v2264_v51  ;;  %v1670_v56 = vsel %vm1669_vm5, %v1667_v53, %v2263_v52 }
 0xb6b   : > { %v1672_v57 = vpack.c.bf16 %v1671_v55, %v1670_v56 }
 0xb6d   : > { %2149 = vmatmul.mubr.msk.bf16.vlgmr.msra.gmra.mrb[36].mxu1 %vm563_vm1, %v1672_v57 }
 0xc40   : > { %v1733_v16 = vpop.f32.mrb[36].mxu1 }
 0xc41   : > { %v1734_v12 = vadd.f32 %v1961_v58, %v1733_v16  ;;  %v2150_v59 = vpop.f32.mrb[37].mxu1 }
 0xc42   : > { %v1736_v60 = vpop.f32.mrb[38].mxu1 }
 0xc43   : > { %1740 = vst.msk [vmem:[%s523_s14] sm:$0xff] %vm563_vm1, %v1734_v12  ;;  %v1737_v61 = vadd.f32 %v1961_v58, %v1736_v60  ;;  %v2151_v62 = vpop.f32.mrb[39].mxu1 }
 0xc45   : > { %1741 = vst.msk [vmem:[%s523_s14 + $0x8] sm:$0xff] %vm563_vm1, %v1737_v61 }
 0xc46   : > { %2495 = shalt.err (!%p2492_p5)
}
 0xc47   : > { %s2496_s25 = scalar_lea.hbm %s3159_s13, 256  ;;  %s2500_s17 = scalar_lea.hbm %s3290_s4, 512 }
 0xc48   : > { %p2497_p8 = scmp.ne.s32.totalorder %s3159_s13, %s2496_s25  ;;  %p2501_p11 = scmp.lt.u32.totalorder %s3159_s13, %s3290_s4 }
 0xc49   : > { %p2502_p13 = scmp.lt.u32.totalorder %s2500_s17, %s2496_s25  ;;  %p2504_p7 = scmp.lt.u32.totalorder %s2496_s25, %s3159_s13 }
 0xc4a   : > { %p2498_p1 = pnand %p2497_p8, %p3291_p12 }
 0xc4b   : > { %p2503_p3 = por %p2502_p13, %p2501_p11 }
 0xc4c   : > { %p2499_p0 = pneg %p2498_p1 }
 0xc4d   : > { %p2505_p2 = por %p2504_p7, %p2503_p3 }
 0xc4f   : > { %p2506_p6 = pnand %p2505_p2, %p2499_p0 }
 0xc51   : > { %2509 = shalt.err (!%p2506_p6)
}
 0xc52   : > { %s2579_s11 = smov 128  }
 0xc53   : > { %2170 = dma.vmem_to_hbm [thread:$0]  (%p3291_p12), %s3153_s24, 256, %s3159_s13, %s1743_s21, %s2579_s11, %s2579_s11, %s2575_s15  }
 0xc54 PF: > { %s3292_s26 = sld [smem:[#allocation19_spill]]  ;;  %s3293_s14 = sld [smem:[#allocation24_spill]] }
 0xc55   : > { %s3294_s3 = sld [smem:[#allocation20_spill]] }
 0xc5a   : > { %s1771_s1 = sand.u32 1, %s3292_s26   ;;  %p3295_p9 = scmp.ne.s32.totalorder %s3293_s14, 0 }
 0xc5b   : > { %p3296_p10 = scmp.ge.s32.totalorder %s3294_s3, 2  ;;  %s1772_s10 = scalar_lea.sflag [#allocation4], %s1771_s1 }
 0xc5d   : > { %p2193_p4 = pnand %p3296_p10, %p3295_p9 }
 0xc5f   : > { %2543 = dma.done.wait (!%p2193_p4), %s1772_s10, 256  }
 0xc60   : > { %2545 = vsyncadd (!%p2193_p4), %s1772_s10, 4294967040  ;;  %s3297_s20 = sld [smem:[#allocation21_spill]]  ;;  %s3298_s29 = sld [smem:[#allocation22_spill]] }
 0xc61   : > { %s3299_s17 = smov %s2552_s18  ;;  %s3300_s18 = smov %s2556_s19 }
 0xc66   : > { %p29_p5 = scmp.ge.s32.totalorder %s3297_s20, 4   ;;  %s3301_s19 = smov %s3298_s29 }
 0xc68   :  { %31 = sbr.rel (!%p29_p5) target bundleno = 18 (0x12), region = 145 }
 0xc6f   :  { %1777 = vsyncpa [#allocation3], 1 }
 0xc70   :  { %1779 = vsyncpa [#allocation3 + $0x1], 1 }
 0xc71   :  { %1780 = vsyncpa [#allocation6], 1 }
 0xc72   :  { %1782 = vsyncpa [#allocation6 + $0x1], 1 }
 0xc73   :  { %1783 = vsyncpa [#allocation9], 1 }
 0xc74   :  { %1784 = vsyncpa [#allocation12], 1 }
 0xc75   :  { %1785 = vsyncpa [#allocation4], 1 }
 0xc76   :  { %1787 = vsyncpa [#allocation4 + $0x1], 1 }

// kernel: tpu_custom_call.1
= control target key start
LH: loop header
LB: loop body
LE: loop exit
PB: predicated region body
PF: predicated region fallthrough
CT: control target
= control target key end

     0   :  { %s3205_s0 = inlined_call_operand.hbm [shape: bf16[4,8,32], index: 0, kind: input, shape index: {}]   ;;  %s3206_s1 = inlined_call_operand.hbm [shape: bf16[4,8,32], index: 1, kind: input, shape index: {}]   ;;  %s3207_s2 = inlined_call_operand.hbm [shape: bf16[4,8,32], index: 2, kind: input, shape index: {}]   ;;  %s3208_s3 = inlined_call_operand.hbm [shape: bf16[32,32], index: 3, kind: input, shape index: {}]   ;;  %s3209_s4 = inlined_call_operand.vmem [shape: f32[1,32], index: 4, kind: input, shape index: {}]   ;;  %s3210_s5 = inlined_call_operand.vmem [shape: bf16[32,32], index: 5, kind: input, shape index: {}]   ;;  %s3211_s6 = inlined_call_operand.vmem [shape: f32[1,32], index: 6, kind: input, shape index: {}]   ;;  %s3212_s7 = inlined_call_operand.hbm [shape: bf16[32,32], index: 7, kind: input, shape index: {}]   ;;  %s3213_s8 = inlined_call_operand.hbm [shape: f32[1,32], index: 8, kind: input, shape index: {}]   ;;  %s3214_s9 = inlined_call_operand.vmem [shape: bf16[32,32], index: 9, kind: input, shape index: {}]   ;;  %s3215_s10 = inlined_call_operand.vmem [shape: f32[1,32], index: 10, kind: input, shape index: {}]   ;;  %s3216_s11 = inlined_call_operand.hbm [shape: f32[4,8,32], index: 11, kind: output, shape index: {}]  }
   0x1   :  { %3244 = sst [smem:[#allocation25_spill]] %s3206_s1 }
   0x2   :  { %3245 = sst [smem:[#allocation26_spill]] %s3208_s3 }
   0x3   :  { %3246 = sst [smem:[#allocation27_spill]] %s3209_s4 }
   0x4   :  { %3247 = sst [smem:[#allocation28_spill]] %s3210_s5 }
   0x5   :  { %3248 = sst [smem:[#allocation29_spill]] %s3211_s6 }
   0x6   :  { %3249 = sst [smem:[#allocation30_spill]] %s3214_s9 }
   0x7   :  { %3250 = sst [smem:[#allocation31_spill]] %s3215_s10 }
   0x8   :  { %3251 = sst [smem:[#allocation32_spill]] %s3216_s11 }
   0x9   :  { %16 = vsyncpa [#allocation3], 0 }
   0xa   :  { %18 = vsyncpa [#allocation3 + $0x1], 0 }
   0xb   :  { %19 = vsyncpa [#allocation6], 0 }
   0xc   :  { %21 = vsyncpa [#allocation6 + $0x1], 0 }
   0xd   :  { %22 = vsyncpa [#allocation9], 0 }
   0xe   :  { %23 = vsyncpa [#allocation12], 0 }
   0xf   :  { %24 = vsyncpa [#allocation4], 0 }
  0x10   :  { %26 = vsyncpa [#allocation4 + $0x1], 0  ;;  %s2640_s17 = smov 0   ;;  %s2642_s18 = smov 0  }
  0x11   :  { %s2644_s19 = smov 0   ;;  %s2646_s20 = smov 0  }
  0x12 LB: > { %3252 = sst [smem:[#allocation19_spill]] %s2548_s17  ;;  %s2661_s21 = sadd.s32 4294967295, %s2560_s20   ;;  %s2560_s20 = sphi %s2646_s20, %s3297_s20   ;;  %s2556_s19 = sphi %s2644_s19, %s3301_s19   ;;  %s2552_s18 = sphi %s2642_s18, %s3300_s18   ;;  %s2548_s17 = sphi %s2640_s17, %s3299_s17  }
  0x13   : > { %3253 = sst [smem:[#allocation20_spill]] %s2560_s20  ;;  %s1901_s22 = sadd.s32 4294967294, %s2560_s20  }
  0x14   : > { %s2665_s23 = sadd.s32 1, %s2560_s20   ;;  %s39_s24 = sadd.s32 1, %s2556_s19 }
  0x15   : > { %3254 = sst [smem:[#allocation21_spill]] %s2665_s23  ;;  %s36_s25 = ssub.s32 %s2560_s20, %s2665_s23 }
  0x16   : > { %p46_p0 = scmp.ne.s32.totalorder %s2556_s19, %s2552_s18  ;;  %p37_p1 = scmp.eq.s32.totalorder %s36_s25, 0 }
  0x17   : > { %p47_p2 = scmp.eq.s32.totalorder %s2560_s20, 0  ;;  %p52_p3 = scmp.ne.s32.totalorder %s2552_s18, %s2548_s17 }
  0x18   : > { %p3222_p4 = scmp.eq.s32.totalorder %s2661_s21, 0  ;;  %p296_p7 = scmp.eq.s32.totalorder %s2661_s21, 1 }
  0x19   : > { %s2677_s26 = scalar_select %p37_p1, %s2556_s19, %s39_s24  }
  0x1a   : > { %p2679_p5 = por %p47_p2, %p46_p0  ;;  %p2685_p6 = por %p3222_p4, %p52_p3 }
  0x1b   : > { %3255 = sst [smem:[#allocation22_spill]] %s2677_s26  ;;  %p302_p8 = scmp.eq.s32.totalorder %s1901_s22, 1 }
  0x1c   : > { %s3256_s27 = scalar_select %p2679_p5, 1, 0 }
  0x1d   : > { %s3257_s28 = scalar_select %p2685_p6, 1, 0 }
  0x1e   : > { %p1902_p9 = scmp.ge.s32.totalorder %s2560_s20, 1  ;;  %p309_p10 = scmp.lt.s32.totalorder %s2560_s20, 3 }
  0x1f   : > { %p2692_p11 = por %p296_p7, %p46_p0  ;;  %p2696_p12 = por %p302_p8, %p52_p3 }
  0x20   : > { %p2700_p13 = pnand %p1902_p9, %p309_p10  ;;  %s2562_s13 = smov [#allocation8]  }
  0x21   : > { %s3258_s29 = scalar_select %p2692_p11, 1, 0 }
  0x22   : > { %s3260_s30 = scalar_select %p2696_p12, 1, 0 }
  0x23   : > { %3259 = sst [smem:[#allocation23_spill]] %s3258_s29  ;;  %p2172_p1 = pneg %p2700_p13 }
  0x24   : > { %3261 = sst [smem:[#allocation24_spill]] %s3260_s30  ;;  %s321_s14 = sshll.u32 %s2562_s13, 4  ;;  %s322_s14 = int_to_ptr.vmem [resolvable:$true] %s321_s14 }
  0x25   : > { %s3262_s12 = scalar_select %p2700_p13, 1, 0 }
  0x26   : > { %p2708_p2 = pnand %p2172_p1, %p3222_p4  ;;  %s3221_s16 = sand.u32 1, %s2556_s19  }
  0x27   : > { %s2717_s22 = sshll.u32 %s3221_s16, 3  ;;  %s3264_s3 = sld [smem:[#allocation26_spill]] }
  0x28   : > { %s3263_s15 = scalar_select %p2708_p2, 1, 0 }
  0x29   : > { %p2727_p8 = pneg %p2708_p2 }
  0x2b   : > { %s3265_s13 = scalar_select %p2727_p8, 1, 0 }
  0x2d   : > { %s2308_s26 = scalar_lea.hbm %s3264_s3, 256 }
  0x2e   : > { %p2309_p7 = scmp.ne.s32.totalorder %s3264_s3, %s2308_s26  ;;  %p2315_p1 = scmp.lt.u32.totalorder %s2308_s26, %s3264_s3 }
  0x30   : > { %p2311_p9 = pnand %p2727_p8, %p2309_p7 }
  0x32   : > { %p2312_p10 = pneg %p2311_p9 }
  0x34   : > { %p2317_p0 = pnand %p2315_p1, %p2312_p10 }
  0x36   : > { %2320 = shalt.err (!%p2317_p0)
}
  0x37   : > { %s2321_s24 = scalar_lea.vmem %s322_s14, 256  ;;  %p2329_p11 = scmp.lt.s32.totalorder %s322_s14, %s322_s14 }
  0x38   : > { %p2322_p4 = scmp.ne.s32.totalorder %s322_s14, %s2321_s24  ;;  %p2330_p6 = scmp.lt.s32.totalorder %s2321_s24, %s2321_s24 }
  0x3a   : > { %p2324_p3 = pnand %p2322_p4, %p2727_p8  ;;  %p2331_p13 = por %p2330_p6, %p2329_p11 }
  0x3c   : > { %p2325_p12 = pneg %p2324_p3 }
  0x3e   : > { %p2332_p5 = pnand %p2331_p13, %p2325_p12 }
  0x40   : > { %2335 = shalt.err (!%p2332_p5)
}
  0x41   : > { %s3229_s23 = smov 64   ;;  %s3231_s17 = smov 4  }
  0x42   : > { %2175 = dma.hbm_to_vmem [thread:$0]  (!%p2708_p2), %s3264_s3, 256, %s322_s14, [#allocation9], %s3229_s23, %s3229_s23, %s3231_s17  }
  0x43   : > { %s2747_s16 = sshll.u32 %s2560_s20, 7  ;;  %p3266_p4 = scmp.ne.s32.totalorder %s3256_s27, 0 }
  0x44   : > { %p3267_p5 = scmp.lt.s32.totalorder %s2560_s20, 2  ;;  %s395_s24 = sand.u32 1, %s2560_s20  }
  0x45   : > { %s3269_s1 = sld [smem:[#allocation25_spill]]  ;;  %s399_s14 = scalar_lea.vmem [#allocation5], %s2717_s22 }
  0x46   : > { %p2753_p6 = pnand %p3267_p5, %p3266_p4  ;;  %s406_s26 = sshll.u32 %s399_s14, 4  ;;  %s2765_s26 = int_to_ptr.vmem [resolvable:$true] %s406_s26 }
  0x47   : > { %s2767_s27 = scalar_lea.sflag [#allocation6], %s395_s24 }
  0x48   : > { %s3268_s25 = scalar_select %p2753_p6, 1, 0 }
  0x49   : > { %p2773_p12 = pneg %p2753_p6 }
  0x4b   : > { %s2762_s10 = scalar_lea.hbm %s3269_s1, %s2747_s16  ;;  %s2341_s17 = scalar_lea.hbm %s3269_s1, 256 }
  0x4c   : > { %s2336_s30 = scalar_lea.hbm %s2762_s10, 128  ;;  %p2342_p3 = scmp.lt.u32.totalorder %s2762_s10, %s3269_s1 }
  0x4d   : > { %p2337_p11 = scmp.ne.s32.totalorder %s2762_s10, %s2336_s30  ;;  %p2343_p7 = scmp.lt.u32.totalorder %s2341_s17, %s2336_s30 }
  0x4e   : > { %s3270_s23 = scalar_select %p2773_p12, 1, 0 }
  0x4f   : > { %p2339_p13 = pnand %p2773_p12, %p2337_p11  ;;  %p2344_p9 = por %p2343_p7, %p2342_p3 }
  0x50   : > { %p2345_p10 = scmp.lt.u32.totalorder %s2336_s30, %s2762_s10 }
  0x51   : > { %p2340_p0 = pneg %p2339_p13 }
  0x52   : > { %p2346_p1 = por %p2345_p10, %p2344_p9 }
  0x54   : > { %p2347_p4 = pnand %p2346_p1, %p2340_p0 }
  0x56   : > { %2350 = shalt.err (!%p2347_p4)
}
  0x57   : > { %s2351_s24 = scalar_lea.vmem %s2765_s26, 128  ;;  %s2565_s11 = smov [#allocation5]  }
  0x58   : > { %p2352_p5 = scmp.ne.s32.totalorder %s2765_s26, %s2351_s24  ;;  %s2356_s29 = sshll.u32 %s2565_s11, 4  ;;  %s2357_s29 = int_to_ptr.vmem [resolvable:$false] %s2356_s29 }
  0x59   : > { %s2358_s3 = scalar_lea.vmem %s2357_s29, 256  ;;  %p2359_p2 = scmp.lt.s32.totalorder %s2765_s26, %s2357_s29 }
  0x5a   : > { %p2354_p11 = pnand %p2352_p5, %p2773_p12  ;;  %p2360_p8 = scmp.lt.s32.totalorder %s2358_s3, %s2351_s24 }
  0x5c   : > { %p2355_p13 = pneg %p2354_p11  ;;  %p2361_p3 = por %p2360_p8, %p2359_p2 }
  0x5e   : > { %p2362_p7 = pnand %p2361_p3, %p2355_p13 }
  0x60   : > { %2365 = shalt.err (!%p2362_p7)
}
  0x61   : > { %s3271_s17 = smov 4   ;;  %s3272_s30 = smov 64  }
  0x62   : > { %2188 = dma.hbm_to_vmem [thread:$0]  (!%p2753_p6), %s2762_s10, 128, %s2765_s26, %s2767_s27, %s3272_s30, %s3272_s30, %s3271_s17  }
  0x63   : > { %s2566_s14 = smov [#allocation10]   ;;  %s2567_s11 = smov [#allocation11]  }
  0x64   : > { %s343_s1 = sshll.u32 %s2566_s14, 4  ;;  %s357_s20 = sshll.u32 %s2567_s11, 4  ;;  %s344_s1 = int_to_ptr.vmem [resolvable:$true] %s343_s1  ;;  %s358_s20 = int_to_ptr.vmem [resolvable:$true] %s357_s20 }
  0x65   : > { %s2366_s3 = scalar_lea.hbm %s3212_s7, 256  ;;  %p3273_p8 = scmp.ne.s32.totalorder %s3265_s13, 0 }
  0x66   : > { %p2367_p2 = scmp.ne.s32.totalorder %s3212_s7, %s2366_s3  ;;  %p2373_p10 = scmp.lt.u32.totalorder %s2366_s3, %s3212_s7 }
  0x68   : > { %p2369_p0 = pnand %p2367_p2, %p3273_p8 }
  0x6a   : > { %p2370_p9 = pneg %p2369_p0 }
  0x6c   : > { %p2375_p1 = pnand %p2373_p10, %p2370_p9 }
  0x6e   : > { %2378 = shalt.err (!%p2375_p1)
}
  0x6f   : > { %s2379_s10 = scalar_lea.vmem %s344_s1, 256  ;;  %p2387_p13 = scmp.lt.s32.totalorder %s344_s1, %s344_s1 }
  0x70   : > { %p2380_p4 = scmp.ne.s32.totalorder %s344_s1, %s2379_s10  ;;  %p2388_p3 = scmp.lt.s32.totalorder %s2379_s10, %s2379_s10 }
  0x72   : > { %p2382_p5 = pnand %p2380_p4, %p3273_p8  ;;  %p2389_p7 = por %p2388_p3, %p2387_p13 }
  0x74   : > { %p2383_p11 = pneg %p2382_p5 }
  0x76   : > { %p2390_p6 = pnand %p2389_p7, %p2383_p11 }
  0x78   : > { %2393 = shalt.err (!%p2390_p6)
}
  0x79   : > { %p3274_p2 = scmp.ne.s32.totalorder %s3263_s15, 0  ;;  %s2394_s26 = scalar_lea.hbm %s3213_s8, 16 }
  0x7a   : > { %p2395_p0 = scmp.ne.s32.totalorder %s3213_s8, %s2394_s26  ;;  %p2401_p10 = scmp.lt.u32.totalorder %s2394_s26, %s3213_s8 }
  0x7b   : > { %2178 = dma.hbm_to_vmem [thread:$0]  (!%p3274_p2), %s3212_s7, 256, %s344_s1, [#allocation9], %s3272_s30, %s3272_s30, %s3271_s17  }
  0x7c   : > { %p2397_p6 = pnand %p2395_p0, %p3273_p8 }
  0x7e   : > { %p2398_p9 = pneg %p2397_p6 }
  0x80   : > { %p2403_p1 = pnand %p2401_p10, %p2398_p9 }
  0x82   : > { %2406 = shalt.err (!%p2403_p1)
}
  0x83   : > { %s2407_s3 = scalar_lea.vmem %s358_s20, 16  ;;  %s2414_s1 = scalar_lea.vmem %s358_s20, 32 }
  0x84   : > { %p2408_p4 = scmp.ne.s32.totalorder %s358_s20, %s2407_s3  ;;  %p2415_p13 = scmp.lt.s32.totalorder %s358_s20, %s358_s20 }
  0x85   : > { %p2416_p3 = scmp.lt.s32.totalorder %s2414_s1, %s2407_s3 }
  0x86   : > { %p2410_p5 = pnand %p2408_p4, %p3273_p8 }
  0x87   : > { %p2417_p7 = por %p2416_p3, %p2415_p13 }
  0x88   : > { %p2411_p11 = pneg %p2410_p5 }
  0x8a   : > { %p2418_p12 = pnand %p2417_p7, %p2411_p11 }
  0x8c   : > { %2421 = shalt.err (!%p2418_p12)
}
  0x8d   : > { %2181 = dma.hbm_to_vmem [thread:$0]  (!%p3274_p2), %s3213_s8, 16, %s358_s20, [#allocation12]  }
  0x8e   : > { %s2843_s6 = scalar_lea.hbm %s3205_s0, %s2747_s16  ;;  %s378_s9 = scalar_lea.vmem [#allocation2], %s2717_s22 }
  0x8f   : > { %s385_s15 = sshll.u32 %s378_s9, 4  ;;  %s2852_s11 = scalar_lea.hbm %s3207_s2, %s2747_s16  ;;  %s2846_s15 = int_to_ptr.vmem [resolvable:$true] %s385_s15 }
  0x90   : > { %s3275_s29 = sand.u32 1, %s2556_s19   ;;  %s2422_s24 = scalar_lea.hbm %s2843_s6, 128 }
  0x91   : > { %s2856_s20 = scalar_lea.sflag [#allocation3], %s3275_s29  ;;  %p2423_p12 = scmp.ne.s32.totalorder %s2843_s6, %s2422_s24 }
  0x92   : > { %p3276_p8 = scmp.ne.s32.totalorder %s3270_s23, 0  ;;  %s2427_s10 = scalar_lea.hbm %s3205_s0, 256 }
  0x93   : > { %p2428_p6 = scmp.lt.u32.totalorder %s2843_s6, %s3205_s0  ;;  %p2429_p9 = scmp.lt.u32.totalorder %s2427_s10, %s2422_s24 }
  0x94   : > { %p2425_p2 = pnand %p2423_p12, %p3276_p8  ;;  %p2431_p1 = scmp.lt.u32.totalorder %s2422_s24, %s2843_s6 }
  0x95   : > { %p2430_p10 = por %p2429_p9, %p2428_p6 }
  0x96   : > { %p2426_p0 = pneg %p2425_p2 }
  0x97   : > { %p2432_p4 = por %p2431_p1, %p2430_p10 }
  0x99   : > { %p2433_p5 = pnand %p2432_p4, %p2426_p0 }
  0x9b   : > { %2436 = shalt.err (!%p2433_p5)
}
  0x9c   : > { %s2437_s16 = scalar_lea.vmem %s2846_s15, 128  ;;  %s2568_s5 = smov [#allocation2]  }
  0x9d   : > { %p2438_p11 = scmp.ne.s32.totalorder %s2846_s15, %s2437_s16  ;;  %s2442_s9 = sshll.u32 %s2568_s5, 4  ;;  %s2443_s9 = int_to_ptr.vmem [resolvable:$false] %s2442_s9 }
  0x9e   : > { %s2444_s26 = scalar_lea.vmem %s2443_s9, 256  ;;  %p2445_p7 = scmp.lt.s32.totalorder %s2846_s15, %s2443_s9 }
  0x9f   : > { %p2440_p13 = pnand %p2438_p11, %p3276_p8  ;;  %p2446_p12 = scmp.lt.s32.totalorder %s2444_s26, %s2437_s16 }
  0xa1   : > { %p2441_p3 = pneg %p2440_p13  ;;  %p2447_p2 = por %p2446_p12, %p2445_p7 }
  0xa3   : > { %p2448_p6 = pnand %p2447_p2, %p2441_p3 }
  0xa5   : > { %2451 = shalt.err (!%p2448_p6)
}
  0xa6   : > { %p3277_p0 = scmp.ne.s32.totalorder %s3268_s25, 0  ;;  %s420_s14 = scalar_lea.vmem [#allocation7], %s2717_s22 }
  0xa7   : > { %s427_s29 = sshll.u32 %s420_s14, 4  ;;  %s2452_s24 = scalar_lea.hbm %s2852_s11, 128  ;;  %s2884_s29 = int_to_ptr.vmem [resolvable:$true] %s427_s29 }
  0xa8   : > { %2185 = dma.hbm_to_vmem [thread:$0]  (!%p3277_p0), %s2843_s6, 128, %s2846_s15, %s2856_s20, %s3272_s30, %s3272_s30, %s3271_s17  }
  0xa9   : > { %p2453_p9 = scmp.ne.s32.totalorder %s2852_s11, %s2452_s24  ;;  %s2457_s10 = scalar_lea.hbm %s3207_s2, 256 }
  0xaa   : > { %p2458_p4 = scmp.lt.u32.totalorder %s2852_s11, %s3207_s2  ;;  %p2459_p5 = scmp.lt.u32.totalorder %s2457_s10, %s2452_s24 }
  0xab   : > { %p2455_p10 = pnand %p2453_p9, %p3276_p8  ;;  %p2461_p13 = scmp.lt.u32.totalorder %s2452_s24, %s2852_s11 }
  0xac   : > { %p2460_p11 = por %p2459_p5, %p2458_p4 }
  0xad   : > { %p2456_p1 = pneg %p2455_p10 }
  0xae   : > { %p2462_p3 = por %p2461_p13, %p2460_p11 }
  0xb0   : > { %p2463_p7 = pnand %p2462_p3, %p2456_p1 }
  0xb2   : > { %2466 = shalt.err (!%p2463_p7)
}
  0xb3   : > { %s2467_s22 = scalar_lea.vmem %s2884_s29, 128  ;;  %s2569_s6 = smov [#allocation7]  }
  0xb4   : > { %p2468_p12 = scmp.ne.s32.totalorder %s2884_s29, %s2467_s22  ;;  %s2472_s15 = sshll.u32 %s2569_s6, 4  ;;  %s2473_s15 = int_to_ptr.vmem [resolvable:$false] %s2472_s15 }
  0xb5   : > { %s2474_s20 = scalar_lea.vmem %s2473_s15, 256  ;;  %p2475_p9 = scmp.lt.s32.totalorder %s2884_s29, %s2473_s15 }
  0xb6   : > { %p2470_p2 = pnand %p2468_p12, %p3276_p8  ;;  %p2476_p10 = scmp.lt.s32.totalorder %s2474_s20, %s2467_s22 }
  0xb8   : > { %p2471_p6 = pneg %p2470_p2  ;;  %p2477_p4 = por %p2476_p10, %p2475_p9 }
  0xba   : > { %p2478_p5 = pnand %p2477_p4, %p2471_p6 }
  0xbc   : > { %2481 = shalt.err (!%p2478_p5)
}
  0xbd   : > { %2191 = dma.hbm_to_vmem [thread:$0]  (!%p3277_p0), %s2852_s11, 128, %s2884_s29, %s2767_s27, %s3272_s30, %s3272_s30, %s3271_s17  }
  0xbe   : > { %p3278_p8 = scmp.ne.s32.totalorder %s3262_s12, 0 }
  0xbf   : > { %s2914_s23 = sand.u32 (!%p3278_p8), 1, %s2552_s18   ;;  %p3279_p1 = scmp.ne.s32.totalorder (!%p3278_p8), %s3257_s28, 0 }
  0xc0   : > { %439 = sbr.rel (%p3278_p8) target bundleno = 3156 (0xc54), region = 64  ;;  %s2917_s16 = sshll.u32 (!%p3278_p8), %s2914_s23, 3 }
  0xc1   : > { %s442_s25 = scalar_lea.sflag (!%p3278_p8), [#allocation3], %s2914_s23  ;;  %s445_s5 = scalar_lea.vmem (!%p3278_p8), [#allocation2], %s2917_s16 }
  0xc7   : > { %2527 = dma.done.wait (%p3279_p1), %s442_s25, 128  }
  0xc8   : > { %2529 = vsyncadd (%p3279_p1), %s442_s25, 4294967168  ;;  %s450_s12 = sand.u32 1, %s2661_s21   ;;  %s454_s17 = scalar_lea.vmem [#allocation5], %s2917_s16 }
  0xc9   : > { %s451_s27 = scalar_lea.sflag [#allocation6], %s450_s12 }
  0xca   : > { %2531 = dma.done.wait (%p3279_p1), %s451_s27, 256  }
  0xcb   : > { %2533 = vsyncadd (%p3279_p1), %s451_s27, 4294967040  ;;  %s463_s30 = scalar_lea.vmem [#allocation7], %s2917_s16  ;;  %p3280_p0 = scmp.eq.s32.totalorder %s2661_s21, 0 }
  0xcd   : > { %2535 = dma.done.wait (%p3280_p0), [#allocation9], 512   ;;  %p3281_p11 = pmov %p3280_p0 }
  0xce   : > { %p3282_p13 = pmov %p3280_p0 }
  0xcf   : > { %2537 = vsyncadd (%p3281_p11), [#allocation9], 4294966784 }
  0xd0   : > { %2539 = dma.done.wait (%p3282_p13), [#allocation12], 16   ;;  %p3283_p3 = pmov %p3280_p0 }
  0xd1   : > { %v2570_v0 = vmov 0.0   ;;  %vm2571_vm0 = vmmov 0   ;;  %s3284_s9 = sld [smem:[#allocation28_spill]]  ;;  %v2267_v3 = vld [vmem:[#allocation8] sm:$0xff]   ;;  %v2269_v4 = vld [vmem:[#allocation8 + $0x8] sm:$0xff]   ;;  %vm563_vm1 = vcmask 261120  }
  0xd2   : > { %2541 = vsyncadd (%p3283_p3), [#allocation12], 4294967280  ;;  %2032 = vmatprep.subr.bf16.mxu1 %v2570_v0  ;;  %2024 = vmatprep.subr.bf16.mxu0 %v2570_v0  ;;  %v2268_v5 = vld [vmem:[%s454_s17] sm:$0xff]   ;;  %v2270_v6 = vld [vmem:[%s445_s5] sm:$0xff]   ;;  %s3285_s3 = sld [smem:[#allocation29_spill]]  ;;  %s3286_s4 = sld [smem:[#allocation27_spill]] }
  0xd3   : > { %2036 = vmatprep.mubr.msk.bf16.mxu1 %vm2571_vm0, %v2570_v0  ;;  %2028 = vmatprep.mubr.msk.bf16.mxu0 %vm2571_vm0, %v2570_v0  ;;  %v2271_v7 = vld [vmem:[#allocation10] sm:$0xff]   ;;  %v2272_v8 = vld [vmem:[#allocation10 + $0x8] sm:$0xff]   ;;  %vm770_vm2 = vcmask 64512   ;;  %s2572_s13 = smov 120   ;;  %v1938_v30 = vld [vmem:[#allocation11] ss:$0 sm:$0xff] }
  0xd4   : > { %2025 = vmatpush3.bf16.msra.mxu0 %v2267_v3  ;;  %v2273_v9 = vld [vmem:[%s463_s30] sm:$0xff]   ;;  %vm890_vm3 = vcmask 1043456   ;;  %s2573_s22 = smov 112   ;;  %s2574_s6 = smov 104   ;;  %vm1666_vm4 = vcmask 130048   ;;  %vm1669_vm5 = vcmask 195584  }
  0xd5   : > { %2026 = vmatprep.subr.bf16.mxu0 %v2570_v0  ;;  %s2575_s15 = smov 8   ;;  %s2576_s20 = smov 16  }
  0xd6   : > { %s3287_s5 = sld [smem:[#allocation30_spill]]  ;;  %s2577_s17 = smov 24  }
  0xd7   : > { %v2265_v1 = vld [vmem:[%s3284_s9] sm:$0xff]   ;;  %v2266_v2 = vld [vmem:[%s3284_s9 + $0x8] sm:$0xff]   ;;  %s1923_s30 = sshll.u32 %s2914_s23, 4  ;;  %s3288_s26 = sld [smem:[#allocation31_spill]] }
  0xd8   : > { %2033 = vmatpush3.bf16.msra.mxu1 %v2265_v1  ;;  %2027 = vmatpush3.bf16.msra.mxu0 %v2269_v4  ;;  %v1931_v10 = vld [vmem:[%s3285_s3] ss:$0 sm:$0xff]  ;;  %s523_s14 = scalar_lea.vmem [#allocation13], %s1923_s30  ;;  %s3289_s29 = sld [smem:[#allocation23_spill]] }
  0xd9   : > { %2034 = vmatprep.subr.bf16.mxu1 %v2570_v0  ;;  %2040 = vmatprep.subr.bf16.mxu0 %v2570_v0  ;;  %v1924_v15 = vld [vmem:[%s3286_s4] ss:$0 sm:$0xff]  ;;  %s1756_s24 = sshll.u32 %s523_s14, 4  ;;  %s1979_s3 = sshll.u32 %s2661_s21, 8  ;;  %s3153_s24 = int_to_ptr.vmem [resolvable:$true] %s1756_s24 }
  0xda   : > { %s3290_s4 = sld [smem:[#allocation32_spill]]  ;;  %s1743_s21 = scalar_lea.sflag [#allocation4], %s2914_s23 }
  0xdb   : > { %2029 = vmatmul.mubr.msk.bf16.vlgmr.msra.gmra.mrb[0].mxu0 %vm563_vm1, %v2270_v6 }
  0xdc   : > { %2035 = vmatpush3.bf16.msra.mxu1 %v2266_v2  ;;  %2041 = vmatpush3.bf16.msra.mxu0 %v2271_v7 }
  0xdd   : > { %2048 = vmatprep.subr.bf16.mxu1 %v2570_v0  ;;  %2044 = vmatprep.mubr.msk.bf16.mxu0 %vm2571_vm0, %v2570_v0 }
  0xde   : > { %2042 = vmatprep.subr.bf16.mxu0 %v2570_v0  ;;  %p3291_p12 = scmp.ne.s32.totalorder %s3289_s29, 0 }
  0xdf   : > { %2037 = vmatmul.mubr.msk.bf16.vlgmr.msra.gmra.mrb[0].mxu1 %vm563_vm1, %v2268_v5 }
  0xe0   : > { %2050 = vmatprep.mubr.msk.bf16.mxu1 %vm2571_vm0, %v2570_v0  ;;  %2043 = vmatpush3.bf16.msra.mxu0 %v2272_v8 }
  0xe1   : > { %2054 = vmatprep.subr.bf16.mxu0 %v2570_v0 }
  0xe3   : > { %2045 = vmatmul.mubr.msk.bf16.vlgmr.msra.gmra.mrb[4].mxu0 %vm563_vm1, %v2273_v9 }
  0xe4   : > { %2056 = vmatprep.mubr.msk.bf16.mxu0 %vm2571_vm0, %v2570_v0 }
 0x1ae   : > { %v601_v16 = vpop.f32.mrb[0].mxu0 }
 0x1af   : > { %v2030_v20 = vpop.f32.mrb[1].mxu0  ;;  %v602_v23 = vadd.f32 %v1924_v15, %v601_v16 }
 0x1b0   : > { %v604_v21 = vpop.f32.mrb[2].mxu0 }
 0x1b1   : > { %v2031_v25 = vpop.f32.mrb[3].mxu0  ;;  %v2986_v27 = vpack.c.bf16 %v602_v23, %v602_v23  ;;  %v605_v28 = vadd.f32 %v1924_v15, %v604_v21 }
 0x1b2   : > { %v679_v11 = vpop.f32.mrb[0].mxu1 }
 0x1b3   : > { %v680_v12 = vadd.f32 %v1931_v10, %v679_v11  ;;  %v2038_v13 = vpop.f32.mrb[1].mxu1  ;;  %v2989_v29 = vpack.c.bf16 %v605_v28, %v605_v28 }
 0x1b4   : > { %v682_v14 = vpop.f32.mrb[2].mxu1 }
 0x1b5   : > { %v2975_v17 = vpack.c.bf16 %v680_v12, %v680_v12  ;;  %v683_v18 = vadd.f32 %v1931_v10, %v682_v14  ;;  %v2039_v19 = vpop.f32.mrb[3].mxu1 }
 0x1b6   : > { %v757_v31 = vpop.f32.mrb[4].mxu0 }
 0x1b7   : > { %v2977_v22 = vpack.c.bf16 %v683_v18, %v683_v18  ;;  %v775_v24 = vsel %vm770_vm2, %v2975_v17, 0  ;;  %v758_v32 = vadd.f32 %v1938_v30, %v757_v31  ;;  %v2046_v33 = vpop.f32.mrb[5].mxu0 }
 0x1b8   : > { %2049 = vmatpush3.bf16.xpose.msra.mxu1 %v775_v24  ;;  %v760_v34 = vpop.f32.mrb[6].mxu0 }
 0x1b9   : > { %1032 = vrot.lane.b32.xlu1 %v2977_v22, %s2572_s13  ;;  %v821_v26 = vsel %vm770_vm2, %v2977_v22, 0  ;;  %2060 = vmatprep.subr.bf16.mxu1 %v2570_v0  ;;  %v761_v35 = vadd.f32 %v1938_v30, %v760_v34  ;;  %v2047_v36 = vpop.f32.mrb[7].mxu0  ;;  %v2999_v37 = vpack.c.bf16 %v758_v32, %v758_v32 }
 0x1ba   : > { %2055 = vmatpush3.bf16.xpose.msra.mxu0 %v821_v26 }
 0x1bb   : > { %2066 = vmatprep.subr.bf16.mxu0 %v2570_v0  ;;  %v3001_v38 = vpack.c.bf16 %v761_v35, %v761_v35  ;;  %v892_v39 = vsel %vm890_vm3, %v2999_v37, 0 }
 0x1bd   : > { %v938_v40 = vsel %vm890_vm3, %v3001_v38, 0 }
 0x1bf   : > { %2051 = vmatmul.mubr.msk.bf16.vlgmr.msra.gmra.mrb[4].mxu1 %vm770_vm2, %v2986_v27 }
 0x1c0   : > { %2062 = vmatprep.mubr.msk.bf16.mxu1 %vm2571_vm0, %v2570_v0  ;;  %2061 = vmatpush3.bf16.msra.mxu1 %v892_v39 }
 0x1c1   : > { %2057 = vmatmul.mubr.msk.bf16.vlgmr.msra.gmra.mrb[8].mxu0 %vm770_vm2, %v2989_v29  ;;  %2072 = vmatprep.subr.bf16.mxu1 %v2570_v0 }
 0x1c2   : > { %2068 = vmatprep.mubr.msk.bf16.mxu0 %vm2571_vm0, %v2570_v0  ;;  %2067 = vmatpush3.bf16.msra.mxu0 %v938_v40 }
 0x1c3   : > { %2078 = vmatprep.subr.bf16.mxu0 %v2570_v0 }
 0x22b   : > { %v1033_v61 = vpop.permute.xlu1 %1032 }
 0x22c   : > { %v1038_v9 = vsel %vm770_vm2, %v1033_v61, 0 }
 0x292   : > { %v811_v41 = vpop.f32.mrb[4].mxu1 }
 0x293   : > { %v2052_v42 = vpop.f32.mrb[5].mxu1  ;;  %v863_v43 = vsel %vm770_vm2, %v811_v41, -inf }
 0x294   : > { %864 = vmax.xlane.f32.xlu0 %v863_v43  ;;  %v814_v44 = vpop.f32.mrb[6].mxu1  ;;  %v857_v45 = vpop.f32.mrb[8].mxu0 }
 0x295   : > { %v2053_v46 = vpop.f32.mrb[7].mxu1  ;;  %v2058_v47 = vpop.f32.mrb[9].mxu0  ;;  %v866_v50 = vsel %vm770_vm2, %v857_v45, -inf }
 0x296   : > { %v860_v48 = vpop.f32.mrb[10].mxu0 }
 0x297   : > { %v2059_v49 = vpop.f32.mrb[11].mxu0 }
 0x298   : > { %867 = vmax.xlane.f32.xlu0 %v866_v50 }
 0x2ae   : > { %982 = vrot.lane.b32.xlu0 %v2975_v17, %s2572_s13 }
 0x321   : > { %v865_v51 = vpop.xlane.xlu0 %864 }
 0x322   : > { %v869_v52 = vsub.f32 %v811_v41, %v865_v51 }
 0x324   : > { %v871_v53 = vmul.f32 1.442695, %v869_v52 }
 0x325   : > { %v868_v54 = vpop.xlane.xlu0 %867 }
 0x326   : > { %2276 = vpow2.f32 %v871_v53  ;;  %v870_v55 = vsub.f32 %v857_v45, %v868_v54 }
 0x328   : > { %v873_v56 = vmul.f32 1.442695, %v870_v55 }
 0x329   : > { %v983_v3 = vpop.permute.xlu0 %982 }
 0x32a   : > { %2278 = vpow2.f32 %v873_v56  ;;  %v988_v6 = vsel %vm770_vm2, %v983_v3, 0 }
 0x330   : > { %v2277_v57 = vpop.eup %2276 }
 0x331   : > { %v875_v58 = vsel %vm770_vm2, %v2277_v57, 0.0 }
 0x332   : > { %876 = vadd.xlane.f32.xlu1 %v875_v58 }
 0x334   : > { %v2279_v59 = vpop.eup %2278 }
 0x335   : > { %v878_v60 = vsel %vm770_vm2, %v2279_v59, 0.0 }
 0x336   : > { %879 = vadd.xlane.f32.xlu1 %v878_v60 }
 0x347   : > { %980 = vrot.lane.b32.xlu1 %v2986_v27, %s2572_s13 }
 0x34b   : > { %1030 = vrot.lane.b32.xlu1 %v2989_v29, %s2572_s13 }
 0x3bf   : > { %v877_v62 = vpop.xlane.xlu1 %876 }
 0x3c0   : > { %2280 = vrcp.f32 %v877_v62 }
 0x3c3   : > { %v880_v63 = vpop.xlane.xlu1 %879 }
 0x3c4   : > { %2282 = vrcp.f32 %v880_v63 }
 0x3c7   : > { %v981_v10 = vpop.permute.xlu1 %980 }
 0x3ca   : > { %v2281_v1 = vpop.eup %2280 }
 0x3cb   : > { %v883_v2 = vmul.f32 %v2281_v1, %v2277_v57  ;;  %v1031_v11 = vpop.permute.xlu1 %1030 }
 0x3cd   : > { %v885_v4 = vpack.c.bf16 %v883_v2, %v883_v2 }
 0x3ce   : > { %v2283_v5 = vpop.eup %2282 }
 0x3cf   : > { %v884_v7 = vmul.f32 %v2283_v5, %v2279_v59  ;;  %2063 = vmatmul.mubr.msk.bf16.vlgmr.msra.gmra.mrb[8].mxu1 %vm770_vm2, %v885_v4 }
 0x3d0   : > { %2073 = vmatpush3.bf16.xpose.msra.mxu1 %v988_v6  ;;  %2074 = vmatprep.mubr.msk.bf16.mxu1 %vm2571_vm0, %v2570_v0 }
 0x3d1   : > { %v886_v8 = vpack.c.bf16 %v884_v7, %v884_v7  ;;  %2084 = vmatprep.subr.bf16.mxu1 %v2570_v0 }
 0x3d3   : > { %2069 = vmatmul.mubr.msk.bf16.vlgmr.msra.gmra.mrb[12].mxu0 %vm770_vm2, %v886_v8 }
 0x3d4   : > { %2079 = vmatpush3.bf16.xpose.msra.mxu0 %v1038_v9  ;;  %2080 = vmatprep.mubr.msk.bf16.mxu0 %vm2571_vm0, %v2570_v0 }
 0x3d5   : > { %2090 = vmatprep.subr.bf16.mxu0 %v2570_v0 }
 0x3d7   : > { %2075 = vmatmul.mubr.msk.bf16.vlgmr.msra.gmra.mrb[12].mxu1 %vm770_vm2, %v981_v10 }
 0x3d8   : > { %2086 = vmatprep.mubr.msk.bf16.mxu1 %vm2571_vm0, %v2570_v0 }
 0x3db   : > { %2081 = vmatmul.mubr.msk.bf16.vlgmr.msra.gmra.mrb[16].mxu0 %vm770_vm2, %v1031_v11 }
 0x3dc   : > { %2092 = vmatprep.mubr.msk.bf16.mxu0 %vm2571_vm0, %v2570_v0 }
 0x4a2   : > { %v3035_v12 = vpop.f32.mrb[8].mxu1 }
 0x4a3   : > { %v2064_v13 = vpop.f32.mrb[9].mxu1 }
 0x4a4   : > { %v931_v14 = vpop.f32.mrb[10].mxu1 }
 0x4a5   : > { %v2065_v15 = vpop.f32.mrb[11].mxu1 }
 0x4a6   : > { %v3037_v16 = vpop.f32.mrb[12].mxu0 }
 0x4a7   : > { %v2070_v18 = vpop.f32.mrb[13].mxu0 }
 0x4a8   : > { %v977_v19 = vpop.f32.mrb[14].mxu0 }
 0x4a9   : > { %v2071_v20 = vpop.f32.mrb[15].mxu0 }
 0x4aa   : > { %v1024_v21 = vpop.f32.mrb[12].mxu1 }
 0x4ab   : > { %v2076_v23 = vpop.f32.mrb[13].mxu1  ;;  %v1080_v24 = vsel %vm770_vm2, %v1024_v21, -inf }
 0x4ac   : > { %1081 = vmax.xlane.f32.xlu0 %v1080_v24  ;;  %v1027_v25 = vpop.f32.mrb[14].mxu1 }
 0x4ad   : > { %v2077_v26 = vpop.f32.mrb[15].mxu1 }
 0x4ae   : > { %v1074_v28 = vpop.f32.mrb[16].mxu0 }
 0x4af   : > { %v2082_v30 = vpop.f32.mrb[17].mxu0  ;;  %v1083_v31 = vsel %vm770_vm2, %v1074_v28, -inf }
 0x4b0   : > { %1084 = vmax.xlane.f32.xlu1 %v1083_v31  ;;  %v1077_v32 = vpop.f32.mrb[18].mxu0 }
 0x4b1   : > { %v2083_v33 = vpop.f32.mrb[19].mxu0 }
 0x4c1   : > { %1152 = vrot.lane.b32.xlu1 %v3001_v38, %s2572_s13 }
 0x4c5   : > { %1202 = vrot.lane.b32.xlu1 %v2975_v17, %s2573_s22 }
 0x4c9   : > { %1252 = vrot.lane.b32.xlu1 %v2977_v22, %s2573_s22 }
 0x4cd   : > { %1250 = vrot.lane.b32.xlu1 %v2989_v29, %s2573_s22 }
 0x539   : > { %v1082_v34 = vpop.xlane.xlu0 %1081 }
 0x53a   : > { %v1086_v35 = vsub.f32 %v1024_v21, %v1082_v34 }
 0x53c   : > { %v1088_v36 = vmul.f32 1.442695, %v1086_v35 }
 0x53d   : > { %v1085_v39 = vpop.xlane.xlu1 %1084 }
 0x53e   : > { %2284 = vpow2.f32 %v1088_v36  ;;  %v1087_v40 = vsub.f32 %v1074_v28, %v1085_v39 }
 0x540   : > { %v1090_v41 = vmul.f32 1.442695, %v1087_v40 }
 0x541   : > { %v1153_v42 = vpop.permute.xlu1 %1152 }
 0x542   : > { %2286 = vpow2.f32 %v1090_v41  ;;  %v1158_v43 = vsel %vm890_vm3, %v1153_v42, 0 }
 0x543   : > { %2091 = vmatpush3.bf16.msra.mxu0 %v1158_v43 }
 0x544   : > { %2102 = vmatprep.subr.bf16.mxu0 %v2570_v0 }
 0x545   : > { %v1203_v53 = vpop.permute.xlu1 %1202 }
 0x546   : > { %v1208_v59 = vsel %vm770_vm2, %v1203_v53, 0 }
 0x548   : > { %v2285_v44 = vpop.eup %2284 }
 0x549   : > { %v1092_v45 = vsel %vm770_vm2, %v2285_v44, 0.0  ;;  %v1253_v58 = vpop.permute.xlu1 %1252 }
 0x54a   : > { %1093 = vadd.xlane.f32.xlu0 %v1092_v45  ;;  %v1258_v61 = vsel %vm770_vm2, %v1253_v58, 0 }
 0x54c   : > { %v2287_v46 = vpop.eup %2286 }
 0x54d   : > { %v1095_v47 = vsel %vm770_vm2, %v2287_v46, 0.0  ;;  %v1251_v63 = vpop.permute.xlu1 %1250 }
 0x54e   : > { %1096 = vadd.xlane.f32.xlu0 %v1095_v47 }
 0x564   : > { %1104 = vrot.lane.b32.xlu0 %v2999_v37, %s2572_s13  ;;  %s3159_s13 = scalar_lea.hbm %s3290_s4, %s1979_s3 }
 0x568   : > { %1200 = vrot.lane.b32.xlu0 %v2986_v27, %s2573_s22 }
 0x5d7   : > { %v1094_v48 = vpop.xlane.xlu0 %1093 }
 0x5d8   : > { %2288 = vrcp.f32 %v1094_v48 }
 0x5db   : > { %v1097_v49 = vpop.xlane.xlu0 %1096 }
 0x5dc   : > { %2290 = vrcp.f32 %v1097_v49 }
 0x5df   : > { %v1105_v50 = vpop.permute.xlu0 %1104 }
 0x5e0   : > { %v1110_v51 = vsel %vm890_vm3, %v1105_v50, 0 }
 0x5e1   : > { %2085 = vmatpush3.bf16.msra.mxu1 %v1110_v51 }
 0x5e2   : > { %v2289_v52 = vpop.eup %2288  ;;  %2096 = vmatprep.subr.bf16.mxu1 %v2570_v0 }
 0x5e3   : > { %v1100_v54 = vmul.f32 %v2289_v52, %v2285_v44  ;;  %v1201_v62 = vpop.permute.xlu0 %1200 }
 0x5e5   : > { %v1102_v55 = vpack.c.bf16 %v1100_v54, %v1100_v54 }
 0x5e6   : > { %v2291_v56 = vpop.eup %2290 }
 0x5e7   : > { %v1101_v57 = vmul.f32 %v2291_v56, %v2287_v46  ;;  %2087 = vmatmul.mubr.msk.bf16.vlgmr.msra.gmra.mrb[16].mxu1 %vm770_vm2, %v1102_v55 }
 0x5e8   : > { %2098 = vmatprep.mubr.msk.bf16.mxu1 %vm2571_vm0, %v2570_v0 }
 0x5e9   : > { %v1103_v60 = vpack.c.bf16 %v1101_v57, %v1101_v57 }
 0x5ea   : > { %2097 = vmatpush3.bf16.xpose.msra.mxu1 %v1208_v59 }
 0x5eb   : > { %2093 = vmatmul.mubr.msk.bf16.vlgmr.msra.gmra.mrb[20].mxu0 %vm770_vm2, %v1103_v60  ;;  %2108 = vmatprep.subr.bf16.mxu1 %v2570_v0 }
 0x5ec   : > { %2103 = vmatpush3.bf16.xpose.msra.mxu0 %v1258_v61  ;;  %2104 = vmatprep.mubr.msk.bf16.mxu0 %vm2571_vm0, %v2570_v0 }
 0x5ed   : > { %2114 = vmatprep.subr.bf16.mxu0 %v2570_v0 }
 0x5f1   : > { %2099 = vmatmul.mubr.msk.bf16.vlgmr.msra.gmra.mrb[20].mxu1 %vm770_vm2, %v1201_v62 }
 0x5f2   : > { %2110 = vmatprep.mubr.msk.bf16.mxu1 %vm2571_vm0, %v2570_v0 }
 0x5f3   : > { %2105 = vmatmul.mubr.msk.bf16.vlgmr.msra.gmra.mrb[24].mxu0 %vm770_vm2, %v1251_v63 }
 0x5f4   : > { %2116 = vmatprep.mubr.msk.bf16.mxu0 %vm2571_vm0, %v2570_v0 }
 0x6ba   : > { %v3075_v1 = vpop.f32.mrb[16].mxu1 }
 0x6bb   : > { %v2088_v2 = vpop.f32.mrb[17].mxu1 }
 0x6bc   : > { %v1149_v3 = vpop.f32.mrb[18].mxu1 }
 0x6bd   : > { %v2089_v4 = vpop.f32.mrb[19].mxu1 }
 0x6be   : > { %v3077_v5 = vpop.f32.mrb[20].mxu0 }
 0x6bf   : > { %v2250_v6 = vpack.i.bf16 %v3077_v5, %v3075_v1  ;;  %v2094_v7 = vpop.f32.mrb[21].mxu0 }
 0x6c0   : > { %v1197_v8 = vpop.f32.mrb[22].mxu0 }
 0x6c1   : > { %v2095_v9 = vpop.f32.mrb[23].mxu0 }
 0x6c4   : > { %v1244_v10 = vpop.f32.mrb[20].mxu1 }
 0x6c5   : > { %v2100_v11 = vpop.f32.mrb[21].mxu1  ;;  %v1300_v13 = vsel %vm770_vm2, %v1244_v10, -inf }
 0x6c6   : > { %1301 = vmax.xlane.f32.xlu0 %v1300_v13  ;;  %v1247_v14 = vpop.f32.mrb[22].mxu1  ;;  %v1294_v15 = vpop.f32.mrb[24].mxu0 }
 0x6c7   : > { %v2101_v18 = vpop.f32.mrb[23].mxu1  ;;  %v2106_v19 = vpop.f32.mrb[25].mxu0  ;;  %v1303_v20 = vsel %vm770_vm2, %v1294_v15, -inf }
 0x6c8   : > { %1304 = vmax.xlane.f32.xlu1 %v1303_v20  ;;  %v1297_v21 = vpop.f32.mrb[26].mxu0 }
 0x6c9   : > { %v2107_v23 = vpop.f32.mrb[27].mxu0 }
 0x6d9   : > { %1372 = vrot.lane.b32.xlu1 %v3001_v38, %s2573_s22 }
 0x6dd   : > { %1422 = vrot.lane.b32.xlu1 %v2975_v17, %s2574_s6 }
 0x6e1   : > { %1472 = vrot.lane.b32.xlu1 %v2977_v22, %s2574_s6 }
 0x6e5   : > { %1470 = vrot.lane.b32.xlu1 %v2989_v29, %s2574_s6 }
 0x753   : > { %v1302_v24 = vpop.xlane.xlu0 %1301 }
 0x754   : > { %v1306_v25 = vsub.f32 %v1244_v10, %v1302_v24 }
 0x755   : > { %v1305_v26 = vpop.xlane.xlu1 %1304 }
 0x756   : > { %v1308_v28 = vmul.f32 1.442695, %v1306_v25  ;;  %v1307_v30 = vsub.f32 %v1294_v15, %v1305_v26 }
 0x758   : > { %2292 = vpow2.f32 %v1308_v28  ;;  %v1310_v31 = vmul.f32 1.442695, %v1307_v30 }
 0x759   : > { %v1373_v32 = vpop.permute.xlu1 %1372 }
 0x75a   : > { %2294 = vpow2.f32 %v1310_v31  ;;  %v1378_v33 = vsel %vm890_vm3, %v1373_v32, 0 }
 0x75b   : > { %2115 = vmatpush3.bf16.msra.mxu0 %v1378_v33 }
 0x75c   : > { %2126 = vmatprep.subr.bf16.mxu0 %v2570_v0 }
 0x75d   : > { %v1423_v42 = vpop.permute.xlu1 %1422 }
 0x761   : > { %v1473_v47 = vpop.permute.xlu1 %1472 }
 0x762   : > { %v2293_v17 = vpop.eup %2292  ;;  %v1478_v49 = vsel %vm770_vm2, %v1473_v47, 0 }
 0x763   : > { %v1312_v22 = vsel %vm770_vm2, %v2293_v17, 0.0 }
 0x764   : > { %v2295_v34 = vpop.eup %2294  ;;  %1313 = vadd.xlane.f32.xlu0 %v1312_v22  ;;  %v2275_v22 = vld [vmem:[%s3287_s5 + $0x8] sm:$0xff]  }
 0x765   : > { %v1315_v29 = vsel %vm770_vm2, %v2295_v34, 0.0  ;;  %v1471_v51 = vpop.permute.xlu1 %1470 }
 0x768   : > { %1316 = vadd.xlane.f32.xlu0 %v1315_v29 }
 0x77e   : > { %1324 = vrot.lane.b32.xlu0 %v2999_v37, %s2573_s22  ;;  %s2482_s22 = scalar_lea.vmem %s3153_s24, 256 }
 0x77f   : > { %p2483_p7 = scmp.ne.s32.totalorder %s3153_s24, %s2482_s22 }
 0x781   : > { %p2484_p2 = pnand %p2483_p7, %p3291_p12 }
 0x782   : > { %1420 = vrot.lane.b32.xlu0 %v2986_v27, %s2574_s6  ;;  %v1428_v27 = vsel %vm770_vm2, %v1423_v42, 0 }
 0x783   : > { %p2485_p6 = pneg %p2484_p2 }
 0x7f1   : > { %v1314_v35 = vpop.xlane.xlu0 %1313 }
 0x7f2   : > { %2296 = vrcp.f32 %v1314_v35 }
 0x7f5   : > { %v1317_v36 = vpop.xlane.xlu0 %1316 }
 0x7f6   : > { %2298 = vrcp.f32 %v1317_v36 }
 0x7f9   : > { %v1325_v39 = vpop.permute.xlu0 %1324 }
 0x7fa   : > { %v1330_v40 = vsel %vm890_vm3, %v1325_v39, 0 }
 0x7fb   : > { %2109 = vmatpush3.bf16.msra.mxu1 %v1330_v40 }
 0x7fc   : > { %v2297_v41 = vpop.eup %2296  ;;  %2120 = vmatprep.subr.bf16.mxu1 %v2570_v0 }
 0x7fd   : > { %v1320_v43 = vmul.f32 %v2297_v41, %v2293_v17  ;;  %v1421_v50 = vpop.permute.xlu0 %1420  ;;  %v2274_v17 = vld [vmem:[%s3287_s5] sm:$0xff]  }
 0x7ff   : > { %v1322_v44 = vpack.c.bf16 %v1320_v43, %v1320_v43 }
 0x800   : > { %v2299_v45 = vpop.eup %2298 }
 0x801   : > { %v1321_v46 = vmul.f32 %v2299_v45, %v2295_v34  ;;  %2111 = vmatmul.mubr.msk.bf16.vlgmr.msra.gmra.mrb[24].mxu1 %vm770_vm2, %v1322_v44 }
 0x802   : > { %2122 = vmatprep.mubr.msk.bf16.mxu1 %vm2571_vm0, %v2570_v0 }
 0x803   : > { %v1323_v48 = vpack.c.bf16 %v1321_v46, %v1321_v46 }
 0x804   : > { %2121 = vmatpush3.bf16.xpose.msra.mxu1 %v1428_v27 }
 0x805   : > { %2117 = vmatmul.mubr.msk.bf16.vlgmr.msra.gmra.mrb[28].mxu0 %vm770_vm2, %v1323_v48  ;;  %2132 = vmatprep.subr.bf16.mxu1 %v2570_v0 }
 0x806   : > { %2127 = vmatpush3.bf16.xpose.msra.mxu0 %v1478_v49  ;;  %2128 = vmatprep.mubr.msk.bf16.mxu0 %vm2571_vm0, %v2570_v0 }
 0x807   : > { %2138 = vmatprep.subr.bf16.mxu0 %v2570_v0 }
 0x80b   : > { %2123 = vmatmul.mubr.msk.bf16.vlgmr.msra.gmra.mrb[28].mxu1 %vm770_vm2, %v1421_v50 }
 0x80c   : > { %2134 = vmatprep.mubr.msk.bf16.mxu1 %vm2571_vm0, %v2570_v0 }
 0x80d   : > { %2129 = vmatmul.mubr.msk.bf16.vlgmr.msra.gmra.mrb[32].mxu0 %vm770_vm2, %v1471_v51 }
 0x80e   : > { %2140 = vmatprep.mubr.msk.bf16.mxu0 %vm2571_vm0, %v2570_v0 }
 0x8d4   : > { %v1366_v52 = vpop.f32.mrb[24].mxu1 }
 0x8d5   : > { %v2112_v53 = vpop.f32.mrb[25].mxu1 }
 0x8d6   : > { %v1369_v54 = vpop.f32.mrb[26].mxu1 }
 0x8d7   : > { %v2113_v55 = vpop.f32.mrb[27].mxu1 }
 0x8d8   : > { %v1414_v56 = vpop.f32.mrb[28].mxu0 }
 0x8d9   : > { %v2255_v57 = vpack.i.bf16 %v1414_v56, %v1366_v52  ;;  %v2118_v58 = vpop.f32.mrb[29].mxu0 }
 0x8da   : > { %v1417_v59 = vpop.f32.mrb[30].mxu0  ;;  %v1961_v58 = vld [vmem:[%s3288_s26] ss:$0 sm:$0xff] }
 0x8db   : > { %v2119_v60 = vpop.f32.mrb[31].mxu0 }
 0x8de   : > { %v1464_v61 = vpop.f32.mrb[28].mxu1 }
 0x8df   : > { %v2124_v62 = vpop.f32.mrb[29].mxu1  ;;  %v1520_v63 = vsel %vm770_vm2, %v1464_v61, -inf }
 0x8e0   : > { %1521 = vmax.xlane.f32.xlu0 %v1520_v63  ;;  %v1467_v2 = vpop.f32.mrb[30].mxu1  ;;  %v1514_v3 = vpop.f32.mrb[32].mxu0 }
 0x8e1   : > { %v2125_v4 = vpop.f32.mrb[31].mxu1  ;;  %v2130_v7 = vpop.f32.mrb[33].mxu0  ;;  %v1523_v8 = vsel %vm770_vm2, %v1514_v3, -inf }
 0x8e2   : > { %1524 = vmax.xlane.f32.xlu1 %v1523_v8  ;;  %v1517_v9 = vpop.f32.mrb[34].mxu0 }
 0x8e3   : > { %v2131_v10 = vpop.f32.mrb[35].mxu0 }
 0x8f3   : > { %1592 = vrot.lane.b32.xlu1 %v3001_v38, %s2574_s6 }
 0x8f7   : > { %2251 = vrot.lane.b32.xlu1 %v2250_v6, %s2575_s15 }
 0x8fb   : > { %2256 = vrot.lane.b32.xlu1 %v2255_v57, %s2576_s20 }
 0x96d   : > { %v1522_v11 = vpop.xlane.xlu0 %1521 }
 0x96e   : > { %v1526_v13 = vsub.f32 %v1464_v61, %v1522_v11 }
 0x96f   : > { %v1525_v14 = vpop.xlane.xlu1 %1524 }
 0x970   : > { %v1528_v15 = vmul.f32 1.442695, %v1526_v13  ;;  %v1527_v18 = vsub.f32 %v1514_v3, %v1525_v14 }
 0x972   : > { %2300 = vpow2.f32 %v1528_v15  ;;  %v1530_v19 = vmul.f32 1.442695, %v1527_v18 }
 0x973   : > { %v1593_v20 = vpop.permute.xlu1 %1592 }
 0x974   : > { %2302 = vpow2.f32 %v1530_v19  ;;  %v1598_v21 = vsel %vm890_vm3, %v1593_v20, 0 }
 0x975   : > { %2139 = vmatpush3.bf16.msra.mxu0 %v1598_v21 }
 0x977   : > { %v2252_v44 = vpop.permute.xlu1 %2251 }
 0x978   : > { %v2254_v46 = vunpack.i.h.bf16 %v2252_v44 }
 0x97a   : > { %v1665_v49 = vsel %vm770_vm2, %v3037_v16, %v2254_v46 }
 0x97b   : > { %v2257_v45 = vpop.permute.xlu1 %2256 }
 0x97c   : > { %v2301_v38 = vpop.eup %2300  ;;  %v2259_v47 = vunpack.i.h.bf16 %v2257_v45  ;;  %v2258_v27 = vunpack.i.l.bf16 %v2257_v45 }
 0x97d   : > { %v1532_v23 = vsel %vm770_vm2, %v2301_v38, 0.0 }
 0x97e   : > { %v2303_v24 = vpop.eup %2302  ;;  %1533 = vadd.xlane.f32.xlu0 %v1532_v23  ;;  %v1668_v54 = vsel %vm1666_vm4, %v1665_v49, %v2259_v47 }
 0x97f   : > { %v1535_v1 = vsel %vm770_vm2, %v2303_v24, 0.0 }
 0x982   : > { %1536 = vadd.xlane.f32.xlu0 %v1535_v1 }
 0x998   : > { %1544 = vrot.lane.b32.xlu0 %v2999_v37, %s2574_s6  ;;  %s2578_s6 = smov [#allocation13]  }
 0x999   : > { %s2486_s20 = sshll.u32 %s2578_s6, 4  ;;  %s2487_s20 = int_to_ptr.vmem [resolvable:$false] %s2486_s20 }
 0x99a   : > { %s2488_s16 = scalar_lea.vmem %s2487_s20, 512  ;;  %p2489_p9 = scmp.lt.s32.totalorder %s3153_s24, %s2487_s20 }
 0x99b   : > { %p2490_p10 = scmp.lt.s32.totalorder %s2488_s16, %s2482_s22 }
 0x99d   : > { %p2491_p4 = por %p2490_p10, %p2489_p9 }
 0x99f   : > { %p2492_p5 = pnand %p2491_p4, %p2485_p6 }
 0xa0b   : > { %v1534_v5 = vpop.xlane.xlu0 %1533 }
 0xa0c   : > { %2304 = vrcp.f32 %v1534_v5 }
 0xa0f   : > { %v1537_v6 = vpop.xlane.xlu0 %1536 }
 0xa10   : > { %2306 = vrcp.f32 %v1537_v6 }
 0xa13   : > { %v1545_v25 = vpop.permute.xlu0 %1544 }
 0xa14   : > { %v1550_v26 = vsel %vm890_vm3, %v1545_v25, 0 }
 0xa15   : > { %2133 = vmatpush3.bf16.msra.mxu1 %v1550_v26 }
 0xa16   : > { %v2305_v28 = vpop.eup %2304  ;;  %2144 = vmatprep.subr.bf16.mxu1 %v2570_v0 }
 0xa17   : > { %v1540_v30 = vmul.f32 %v2305_v28, %v2301_v38 }
 0xa19   : > { %v1542_v31 = vpack.c.bf16 %v1540_v30, %v1540_v30 }
 0xa1a   : > { %v2307_v32 = vpop.eup %2306 }
 0xa1b   : > { %v1541_v33 = vmul.f32 %v2307_v32, %v2303_v24  ;;  %2135 = vmatmul.mubr.msk.bf16.vlgmr.msra.gmra.mrb[32].mxu1 %vm770_vm2, %v1542_v31 }
 0xa1c   : > { %2148 = vmatprep.mubr.msk.bf16.mxu1 %vm2571_vm0, %v2570_v0  ;;  %2145 = vmatpush3.bf16.msra.mxu1 %v2274_v17 }
 0xa1d   : > { %v1543_v37 = vpack.c.bf16 %v1541_v33, %v1541_v33  ;;  %2146 = vmatprep.subr.bf16.mxu1 %v2570_v0  ;;  %v2253_v0 = vunpack.i.l.bf16 %v2252_v44 }
 0xa1f   : > { %2141 = vmatmul.mubr.msk.bf16.vlgmr.msra.gmra.mrb[36].mxu0 %vm770_vm2, %v1543_v37  ;;  %v1664_v50 = vsel %vm770_vm2, %v3035_v12, %v2253_v0 }
 0xa20   : > { %2147 = vmatpush3.bf16.msra.mxu1 %v2275_v22  ;;  %v1667_v53 = vsel %vm1666_vm4, %v1664_v50, %v2258_v27 }
 0xaee   : > { %v1586_v34 = vpop.f32.mrb[32].mxu1 }
 0xaef   : > { %v2136_v29 = vpop.f32.mrb[33].mxu1 }
 0xaf0   : > { %v1589_v35 = vpop.f32.mrb[34].mxu1 }
 0xaf1   : > { %v2137_v36 = vpop.f32.mrb[35].mxu1 }
 0xaf2   : > { %v1634_v39 = vpop.f32.mrb[36].mxu0 }
 0xaf3   : > { %v2260_v40 = vpack.i.bf16 %v1634_v39, %v1586_v34  ;;  %v2142_v41 = vpop.f32.mrb[37].mxu0 }
 0xaf4   : > { %v1637_v42 = vpop.f32.mrb[38].mxu0 }
 0xaf5   : > { %2261 = vrot.lane.b32.xlu0 %v2260_v40, %s2577_s17  ;;  %v2143_v43 = vpop.f32.mrb[39].mxu0 }
 0xb67   : > { %v2262_v48 = vpop.permute.xlu0 %2261 }
 0xb68   : > { %v2264_v51 = vunpack.i.h.bf16 %v2262_v48  ;;  %v2263_v52 = vunpack.i.l.bf16 %v2262_v48 }
 0xb6a   : > { %v1671_v55 = vsel %vm1669_vm5, %v1668_v54, %v2264_v51  ;;  %v1670_v56 = vsel %vm1669_vm5, %v1667_v53, %v2263_v52 }
 0xb6b   : > { %v1672_v57 = vpack.c.bf16 %v1671_v55, %v1670_v56 }
 0xb6d   : > { %2149 = vmatmul.mubr.msk.bf16.vlgmr.msra.gmra.mrb[36].mxu1 %vm563_vm1, %v1672_v57 }
 0xc40   : > { %v1733_v16 = vpop.f32.mrb[36].mxu1 }
 0xc41   : > { %v1734_v12 = vadd.f32 %v1961_v58, %v1733_v16  ;;  %v2150_v59 = vpop.f32.mrb[37].mxu1 }
 0xc42   : > { %v1736_v60 = vpop.f32.mrb[38].mxu1 }
 0xc43   : > { %1740 = vst.msk [vmem:[%s523_s14] sm:$0xff] %vm563_vm1, %v1734_v12  ;;  %v1737_v61 = vadd.f32 %v1961_v58, %v1736_v60  ;;  %v2151_v62 = vpop.f32.mrb[39].mxu1 }
 0xc45   : > { %1741 = vst.msk [vmem:[%s523_s14 + $0x8] sm:$0xff] %vm563_vm1, %v1737_v61 }
 0xc46   : > { %2495 = shalt.err (!%p2492_p5)
}
 0xc47   : > { %s2496_s25 = scalar_lea.hbm %s3159_s13, 256  ;;  %s2500_s17 = scalar_lea.hbm %s3290_s4, 512 }
 0xc48   : > { %p2497_p8 = scmp.ne.s32.totalorder %s3159_s13, %s2496_s25  ;;  %p2501_p11 = scmp.lt.u32.totalorder %s3159_s13, %s3290_s4 }
 0xc49   : > { %p2502_p13 = scmp.lt.u32.totalorder %s2500_s17, %s2496_s25  ;;  %p2504_p7 = scmp.lt.u32.totalorder %s2496_s25, %s3159_s13 }
 0xc4a   : > { %p2498_p1 = pnand %p2497_p8, %p3291_p12 }
 0xc4b   : > { %p2503_p3 = por %p2502_p13, %p2501_p11 }
 0xc4c   : > { %p2499_p0 = pneg %p2498_p1 }
 0xc4d   : > { %p2505_p2 = por %p2504_p7, %p2503_p3 }
 0xc4f   : > { %p2506_p6 = pnand %p2505_p2, %p2499_p0 }
 0xc51   : > { %2509 = shalt.err (!%p2506_p6)
}
 0xc52   : > { %s2579_s11 = smov 128  }
 0xc53   : > { %2170 = dma.vmem_to_hbm [thread:$0]  (%p3291_p12), %s3153_s24, 256, %s3159_s13, %s1743_s21, %s2579_s11, %s2579_s11, %s2575_s15  }
 0xc54 PF: > { %s3292_s26 = sld [smem:[#allocation19_spill]]  ;;  %s3293_s14 = sld [smem:[#allocation24_spill]] }
 0xc55   : > { %s3294_s3 = sld [smem:[#allocation20_spill]] }
 0xc5a   : > { %s1771_s1 = sand.u32 1, %s3292_s26   ;;  %p3295_p9 = scmp.ne.s32.totalorder %s3293_s14, 0 }
 0xc5b   : > { %p3296_p10 = scmp.ge.s32.totalorder %s3294_s3, 2  ;;  %s1772_s10 = scalar_lea.sflag [#allocation4], %s1771_s1 }
 0xc5d   : > { %p2193_p4 = pnand %p3296_p10, %p3295_p9 }
 0xc5f   : > { %2543 = dma.done.wait (!%p2193_p4), %s1772_s10, 256  }
 0xc60   : > { %2545 = vsyncadd (!%p2193_p4), %s1772_s10, 4294967040  ;;  %s3297_s20 = sld [smem:[#allocation21_spill]]  ;;  %s3298_s29 = sld [smem:[#allocation22_spill]] }
 0xc61   : > { %s3299_s17 = smov %s2552_s18  ;;  %s3300_s18 = smov %s2556_s19 }
 0xc66   : > { %p29_p5 = scmp.ge.s32.totalorder %s3297_s20, 4   ;;  %s3301_s19 = smov %s3298_s29 }
 0xc68   :  { %31 = sbr.rel (!%p29_p5) target bundleno = 18 (0x12), region = 145 }
 0xc6f   :  { %1777 = vsyncpa [#allocation3], 1 }
 0xc70   :  { %1779 = vsyncpa [#allocation3 + $0x1], 1 }
 0xc71   :  { %1780 = vsyncpa [#allocation6], 1 }
 0xc72   :  { %1782 = vsyncpa [#allocation6 + $0x1], 1 }
 0xc73   :  { %1783 = vsyncpa [#allocation9], 1 }
 0xc74   :  { %1784 = vsyncpa [#allocation12], 1 }
 0xc75   :  { %1785 = vsyncpa [#allocation4], 1 }
 0xc76   :  { %1787 = vsyncpa [#allocation4 + $0x1], 1 }

</bundles_post_ra>
